<compile_context>
chip_gen: v7x
topology: tpu7x:2x2x1
jax: 0.10.0
libtpu: 0.0.40
codegen_flags: <defaults>
</compile_context>

<pallas_src>
import jax
import jax.numpy as jnp
from jax.experimental import pallas as pl
from jax.experimental.pallas import tpu as pltpu

LANE = 128


def _pick_vmem_limit():
    """3/4 of physical VMEM, clamped to [32 MiB, 96 MiB].

    v7x (64 MiB physical) -> 48 MiB; v5e/v6e (128 MiB) -> 96 MiB.
    """
    try:
        cap = int(pltpu.get_tpu_info().vmem_capacity_bytes)
    except Exception:  # conservative fallback if the query is unavailable
        cap = 64 * 1024 * 1024
    return max(32 * 1024 * 1024, min(cap * 3 // 4, 96 * 1024 * 1024))


VMEM_LIMIT = _pick_vmem_limit()


def _round_up(x, m):
    return ((x + m - 1) // m) * m


def _pad2d(a, rows, cols):
    return jnp.pad(a, ((0, rows - a.shape[0]), (0, cols - a.shape[1])))


def _pick_tn(np_):
    # v6e/v7x MXU passes are 256 wide: use 256-lane output tiles when they
    # divide the padded channel count, else 128 (v5e / small channel counts).
    return 256 if np_ % 256 == 0 else LANE


def _pick_tm(m, cap):
    if m >= cap:
        return cap
    return _round_up(m, 16)


# ----------------------------------------------------------------------------
# Cheap mish: mish(y) = y * tanh(softplus(y)) = y * t(t+2) / (t(t+2)+2), t=e^y
# One EUP exp + one approx reciprocal instead of exp+log1p+tanh.
# ----------------------------------------------------------------------------
def _mish_f32(y):
    t = jnp.exp(jnp.minimum(y, 20.0))  # clamp keeps the unused branch finite
    u = t * (t + 2.0)
    m = y * u * pl.reciprocal(u + 2.0, approx=True)
    return jnp.where(y > 20.0, y, m)


# ----------------------------------------------------------------------------
# Kernel A: tiled matmul + bias + mish (1x1 convs; BN folded into weights)
# ----------------------------------------------------------------------------
def _mm_bias_mish_kernel(x_ref, w_ref, b_ref, o_ref, acc_ref):
    k = pl.program_id(2)

    @pl.when(k == 0)
    def _init():
        acc_ref[...] = jnp.zeros_like(acc_ref)

    acc_ref[...] += jnp.dot(x_ref[...], w_ref[...],
                            preferred_element_type=jnp.float32)

    @pl.when(k == pl.num_programs(2) - 1)
    def _finalize():
        o_ref[...] = _mish_f32(acc_ref[...] + b_ref[...]).astype(o_ref.dtype)


def _matmul_bias_mish(xm, wm, bias):
    """xm:(M,Kp) bf16, wm:(Kp,Np) bf16, bias:(1,Np) f32 -> (M,Np) bf16."""
    M, Kp = xm.shape
    Np = wm.shape[1]

    tm = _pick_tm(M, 512)
    Mp = _round_up(M, tm)
    if Mp != M:
        xm = jnp.pad(xm, ((0, Mp - M), (0, 0)))
    tn = _pick_tn(Np)
    tk = 512 if Kp % 512 == 0 else (256 if Kp % 256 == 0 else 128)

    out = pl.pallas_call(
        _mm_bias_mish_kernel,
        out_shape=jax.ShapeDtypeStruct((Mp, Np), jnp.bfloat16),
        grid_spec=pltpu.PrefetchScalarGridSpec(
            num_scalar_prefetch=0,
            grid=(Mp // tm, Np // tn, Kp // tk),
            in_specs=[
                pl.BlockSpec((tm, tk), lambda i, j, k: (i, k)),
                pl.BlockSpec((tk, tn), lambda i, j, k: (k, j)),
                pl.BlockSpec((1, tn), lambda i, j, k: (0, j)),
            ],
            out_specs=pl.BlockSpec((tm, tn), lambda i, j, k: (i, j)),
            scratch_shapes=[pltpu.VMEM((tm, tn), jnp.float32)],
        ),
        compiler_params=pltpu.CompilerParams(
            dimension_semantics=("parallel", "parallel", "arbitrary"),
            vmem_limit_bytes=VMEM_LIMIT,
        ),
        cost_estimate=pl.CostEstimate(
            flops=2 * Mp * Kp * Np,
            transcendentals=Mp * Np,
            bytes_accessed=2 * (Mp * Kp + Kp * Np + Mp * Np),
        ),
    )(xm, wm, bias)
    return out[:M] if Mp != M else out


# ----------------------------------------------------------------------------
# Kernel B: conv3 (1x1) fused with conv4 (1x1 over torch.cat([x, route])).
# conv3's result is computed once per row tile (j == 0) into a VMEM scratch;
# conv4's concat is fused as two K-halves.  tm is capped at 256 so the two
# dots + mish epilogues never spill the vreg file.
# ----------------------------------------------------------------------------
def _conv3_conv4_kernel(x_ref, w3_ref, b3_ref, r_ref, w4a_ref, w4b_ref, b4_ref,
                        o_ref, h_ref):
    @pl.when(pl.program_id(1) == 0)
    def _conv3():
        h = jnp.dot(x_ref[...], w3_ref[...], preferred_element_type=jnp.float32)
        h_ref[...] = _mish_f32(h + b3_ref[...]).astype(h_ref.dtype)

    acc = jnp.dot(h_ref[...], w4a_ref[...], preferred_element_type=jnp.float32)
    acc = acc + jnp.dot(r_ref[...], w4b_ref[...],
                        preferred_element_type=jnp.float32)
    o_ref[...] = _mish_f32(acc + b4_ref[...]).astype(o_ref.dtype)


def _conv3_conv4_fused(x, w3, b3, route, w4a, w4b, b4):
    """y = mish(conv4(cat[mish(conv3(x)), route])) with concat + conv3 fused."""
    M, Fp = x.shape
    Np = w4a.shape[1]
    tm = _pick_tm(M, 256)
    Mp = _round_up(M, tm)
    if Mp != M:
        x = jnp.pad(x, ((0, Mp - M), (0, 0)))
        route = jnp.pad(route, ((0, Mp - M), (0, 0)))
    tn = _pick_tn(Np)

    out = pl.pallas_call(
        _conv3_conv4_kernel,
        out_shape=jax.ShapeDtypeStruct((Mp, Np), jnp.bfloat16),
        grid_spec=pltpu.PrefetchScalarGridSpec(
            num_scalar_prefetch=0,
            grid=(Mp // tm, Np // tn),
            in_specs=[
                pl.BlockSpec((tm, Fp), lambda i, j: (i, 0)),   # x (conv3 input)
                pl.BlockSpec((Fp, Fp), lambda i, j: (0, 0)),   # w3
                pl.BlockSpec((1, Fp), lambda i, j: (0, 0)),    # b3
                pl.BlockSpec((tm, Fp), lambda i, j: (i, 0)),   # route
                pl.BlockSpec((Fp, tn), lambda i, j: (0, j)),   # w4 (conv3 half)
                pl.BlockSpec((Fp, tn), lambda i, j: (0, j)),   # w4 (route half)
                pl.BlockSpec((1, tn), lambda i, j: (0, j)),    # b4
            ],
            out_specs=pl.BlockSpec((tm, tn), lambda i, j: (i, j)),
            scratch_shapes=[pltpu.VMEM((tm, Fp), jnp.bfloat16)],
        ),
        compiler_params=pltpu.CompilerParams(
            # j must run in order within each i so the j==0 step fills h_ref.
            dimension_semantics=("parallel", "arbitrary"),
            vmem_limit_bytes=VMEM_LIMIT,
        ),
        cost_estimate=pl.CostEstimate(
            flops=2 * Mp * Fp * (Fp + 2 * Np),
            transcendentals=2 * Mp * Np,
            bytes_accessed=2 * (2 * Mp * Fp + Fp * (Fp + 2 * Np) + Mp * Np),
        ),
    )(x, w3, b3, route, w4a, w4b, b4)
    return out[:M] if Mp != M else out


# ----------------------------------------------------------------------------
# Kernel C: generic tap-loop conv over a VMEM-resident pre-padded image
# (+ bias + mish, optional fused residual add).
#   * 3x3 stride-1 res-block convs: tap grid 3x3 over (Ho+2, Wo+2) image.
#   * conv0 (3x3 stride-2): tap grid 2x2 over the space-to-depth image
#     padded by one block row/col at top/left.
# Accumulation is incremental; one W-shifted view per column offset is reused
# for all row offsets.
# ----------------------------------------------------------------------------
def _make_taps_kernel(tap_h, tap_w, Ho, Wo, with_residual):
    def kernel(xp_ref, w_ref, b_ref, *rest):
        if with_residual:
            r_ref, o_ref = rest
        else:
            (o_ref,) = rest
        C = xp_ref.shape[3]
        acc = None
        for dj in range(tap_w):
            xw = xp_ref[0, :, dj:dj + Wo, :]         # one W-shift per dj
            for di in range(tap_h):
                t = di * tap_w + dj
                tap = xw[di:di + Ho].reshape(Ho * Wo, C)
                p = jnp.dot(tap, w_ref[t], preferred_element_type=jnp.float32)
                acc = p if acc is None else acc + p  # incremental accumulation
        y = _mish_f32(acc + b_ref[...])
        if with_residual:
            y = y + r_ref[...].astype(jnp.float32)
        o_ref[...] = y.astype(o_ref.dtype)
    return kernel


def _conv_taps_bias_mish(xpad, w_taps, bias, tap_h, tap_w, N, Ho, Wo,
                         residual=None):
    """xpad:(N, Ho+tap_h-1, Wo+tap_w-1, Cp) bf16; w_taps:(tap_h*tap_w, Cp, Np)
    bf16 (tap index = di*tap_w + dj); bias:(1,Np) f32; residual optional
    (N*Ho*Wo, Np) bf16 fused into the epilogue.  Returns (N*Ho*Wo, Np) bf16."""
    _, Hp, Wp, Cp = xpad.shape
    T, _, Np = w_taps.shape
    assert T == tap_h * tap_w and Hp == Ho + tap_h - 1 and Wp == Wo + tap_w - 1
    M = N * Ho * Wo
    # TODO(synk): support odd spatial sizes (out block rows must tile by 8).
    assert (Ho * Wo) % 8 == 0, "Ho*Wo must be a multiple of 8"
    tn = _pick_tn(Np)

    kernel = _make_taps_kernel(tap_h, tap_w, Ho, Wo, residual is not None)
    in_specs = [
        # TODO(synk): whole image per grid step; for very large feature maps
        # on v7x (64 MiB VMEM) this should become output-row bands w/ a halo.
        pl.BlockSpec((1, Hp, Wp, Cp), lambda n, j: (n, 0, 0, 0)),
        pl.BlockSpec((T, Cp, tn), lambda n, j: (0, 0, j)),
        pl.BlockSpec((1, tn), lambda n, j: (0, j)),
    ]
    args = [xpad, w_taps, bias]
    if residual is not None:
        in_specs.append(pl.BlockSpec((Ho * Wo, tn), lambda n, j: (n, j)))
        args.append(residual)

    return pl.pallas_call(
        kernel,
        out_shape=jax.ShapeDtypeStruct((M, Np), jnp.bfloat16),
        grid_spec=pltpu.PrefetchScalarGridSpec(
            num_scalar_prefetch=0,
            grid=(N, Np // tn),
            in_specs=in_specs,
            out_specs=pl.BlockSpec((Ho * Wo, tn), lambda n, j: (n, j)),
        ),
        compiler_params=pltpu.CompilerParams(
            dimension_semantics=("parallel", "parallel"),
            vmem_limit_bytes=VMEM_LIMIT,
        ),
        cost_estimate=pl.CostEstimate(
            flops=2 * M * T * Cp * Np,
            transcendentals=M * Np,
            bytes_accessed=2 * (N * Hp * Wp * Cp + T * Cp * Np + 2 * M * Np),
        ),
    )(*args)


# ----------------------------------------------------------------------------
# Space-to-depth (2x2) so conv0's stride-2 3x3 becomes a stride-1 2x2 conv:
# a single 1x rearrangement instead of a 9x im2col materialization.
# ----------------------------------------------------------------------------
def _space_to_depth2(x_nhwc):
    N, H, W, C = x_nhwc.shape
    He, We = H + (H % 2), W + (W % 2)
    if (He, We) != (H, W):
        x_nhwc = jnp.pad(x_nhwc, ((0, 0), (0, He - H), (0, We - W), (0, 0)))
    Ho, Wo = He // 2, We // 2
    xs = x_nhwc.reshape(N, Ho, 2, Wo, 2, C)
    xs = xs.transpose(0, 1, 3, 2, 4, 5).reshape(N, Ho, Wo, 4 * C)
    return xs, Ho, Wo


# ----------------------------------------------------------------------------
# Parameter construction: deterministic synthetic init, BN folded into the
# weights (scale) + bias, padded to lane-dense shapes, cast to bf16.
# ----------------------------------------------------------------------------
def _make_conv_folded(key, kh, kw, cin, cout, eps=1e-5):
    kw_, kg, kb = jax.random.split(key, 3)
    w = jax.random.normal(kw_, (kh, kw, cin, cout), jnp.float32) * 0.1
    gamma = 1.0 + 0.1 * jax.random.normal(kg, (cout,), jnp.float32)
    beta = 0.1 * jax.random.normal(kb, (cout,), jnp.float32)
    # fresh BatchNorm running stats: mean=0, var=1
    scale = gamma / jnp.sqrt(1.0 + eps)
    return w * scale, beta  # scale folded into weights; bias = beta


# (kh or kw) -> (2x2 block offset, sub-pixel index) for stride-2 -> s2d mapping
_S2D_TAP_MAP = ((0, 1), (1, 0), (1, 1))


def make_cspdarknet_params(key, filters, num_blocks):
    F = filters
    Fp = _round_up(F, LANE)
    F2p = _round_up(2 * F, LANE)
    C4p = _round_up(4 * F, LANE)
    keys = jax.random.split(key, 5 + 2 * num_blocks)

    def pack_mm(idx, kh, kw, cin, cout, kpad, npad):
        w_f, bias = _make_conv_folded(keys[idx], kh, kw, cin, cout)
        wm = _pad2d(w_f.reshape(kh * kw * cin, cout), kpad, npad)
        b = jnp.pad(bias, (0, npad - cout)).reshape(1, npad)
        return wm.astype(jnp.bfloat16), b.astype(jnp.float32)

    def pack_3x3(idx, cin, cout, cpad, npad):
        w_f, bias = _make_conv_folded(keys[idx], 3, 3, cin, cout)
        w9 = jnp.pad(w_f.reshape(9, cin, cout),
                     ((0, 0), (0, cpad - cin), (0, npad - cout)))
        b = jnp.pad(bias, (0, npad - cout)).reshape(1, npad)
        return w9.astype(jnp.bfloat16), b.astype(jnp.float32)

    def pack_conv0_s2d(idx, cin, cout, cpad, npad):
        # Re-express the 3x3 stride-2 conv as a 4-tap 2x2 conv over the
        # space-to-depth input (channel layout (si, sj, c)).
        w_f, bias = _make_conv_folded(keys[idx], 3, 3, cin, cout)
        w4 = jnp.zeros((4, 4 * cin, cout), jnp.float32)
        for kh in range(3):
            bi, si = _S2D_TAP_MAP[kh]
            for kw in range(3):
                bj, sj = _S2D_TAP_MAP[kw]
                t = bi * 2 + bj
                s = (si * 2 + sj) * cin
                w4 = w4.at[t, s:s + cin, :].set(w_f[kh, kw])
        w4 = jnp.pad(w4, ((0, 0), (0, cpad - 4 * cin), (0, npad - cout)))
        b = jnp.pad(bias, (0, npad - cout)).reshape(1, npad)
        return w4.astype(jnp.bfloat16), b.astype(jnp.float32)

    params = {
        "conv0": pack_conv0_s2d(0, F, 2 * F, C4p, F2p),
        "conv1": pack_mm(1, 1, 1, 2 * F, F, F2p, Fp),
        "conv2": pack_mm(2, 1, 1, 2 * F, F, F2p, Fp),
        "conv3": pack_mm(3, 1, 1, F, F, Fp, Fp),
        "res": [
            (pack_mm(5 + 2 * i, 1, 1, F, F, Fp, Fp),
             pack_3x3(6 + 2 * i, F, F, Fp, Fp))
            for i in range(num_blocks)
        ],
    }
    # conv4 split into two K-halves so torch.cat([x, route]) is fused in-kernel
    w4_f, b4 = _make_conv_folded(keys[4], 1, 1, 2 * F, 2 * F)
    w4 = w4_f.reshape(2 * F, 2 * F)
    params["conv4"] = (
        _pad2d(w4[:F, :], Fp, F2p).astype(jnp.bfloat16),   # acts on conv3(x)
        _pad2d(w4[F:, :], Fp, F2p).astype(jnp.bfloat16),   # acts on route
        jnp.pad(b4, (0, F2p - 2 * F)).reshape(1, F2p).astype(jnp.float32),
    )
    return params


# ----------------------------------------------------------------------------
# Forward pass (matches PyTorch semantics, incl. ResBlock returning the last
# residual-branch output `shortcut` rather than the accumulated `x`).
# ----------------------------------------------------------------------------
@jax.jit
def cspdarknet_block_forward(x_nchw, params):
    N, F, H, W = x_nchw.shape
    x = jnp.transpose(x_nchw, (0, 2, 3, 1))            # NCHW -> NHWC

    # conv0: 3x3 stride-2 downsample, F -> 2F channels, via space-to-depth
    # (1x HBM rearrangement) + in-kernel 4-tap 2x2 conv (no 9x im2col).
    xs, Ho, Wo = _space_to_depth2(x)
    C4p = _round_up(xs.shape[-1], LANE)
    xs = jnp.pad(xs, ((0, 0), (1, 0), (1, 0), (0, C4p - xs.shape[-1])))
    xs = xs.astype(jnp.bfloat16)
    x0 = _conv_taps_bias_mish(xs, *params["conv0"], tap_h=2, tap_w=2,
                              N=N, Ho=Ho, Wo=Wo)       # (M, F2p): 2F channels

    route = _matmul_bias_mish(x0, *params["conv1"])    # (M, Fp): F channels
    xcur = _matmul_bias_mish(x0, *params["conv2"])     # (M, Fp): F channels

    # Residual blocks. PyTorch: shortcut = conv3x3(conv1x1(x)); x = x + shortcut
    # each iteration, but the block RETURNS the last `shortcut`, so the fused
    # residual add is applied for all but the last block.
    n_res = len(params["res"])
    for i, (p1x1, p3x3) in enumerate(params["res"]):
        h = _matmul_bias_mish(xcur, *p1x1)             # 1x1, F channels
        # TODO(synk): this spatial 'same' pad is still an XLA-side HBM round
        # trip per res block; in-kernel halo handling would remove it.
        hp = jnp.pad(h.reshape(N, Ho, Wo, -1), ((0, 0), (1, 1), (1, 1), (0, 0)))
        res_in = xcur if i < n_res - 1 else None
        xcur = _conv_taps_bias_mish(hp, p3x3[0], p3x3[1], tap_h=3, tap_w=3,
                                    N=N, Ho=Ho, Wo=Wo, residual=res_in)

    # conv3 (1x1) fused into conv4 (1x1 over torch.cat([x, route], dim=1)).
    w4a, w4b, b4 = params["conv4"]
    y = _conv3_conv4_fused(xcur, *params["conv3"], route, w4a, w4b, b4)

    y = y[:, :2 * F].astype(jnp.float32).reshape(N, Ho, Wo, 2 * F)
    return jnp.transpose(y, (0, 3, 1, 2))              # NHWC -> NCHW


if __name__ == "__main__":
    filters = 4
    num_blocks = 2
    N, H, W = 2, 16, 16

    key = jax.random.PRNGKey(0)
    k_x, k_p = jax.random.split(key)
    x = jax.random.normal(k_x, (N, filters, H, W), jnp.float32)  # NCHW
    params = make_cspdarknet_params(k_p, filters, num_blocks)

    out = cspdarknet_block_forward(x, params)
    jax.block_until_ready(out)

    expected_shape = (N, 2 * filters, H // 2, W // 2)
    assert out.shape == expected_shape, (out.shape, expected_shape)
    assert bool(jnp.all(jnp.isfinite(out)))
    print("KERNEL_OK")
</pallas_src>

<mosaic_0001>
module attributes {stable_mosaic.version = 11 : i64} {
  func.func @kernel(%arg0: i32, %arg1: i32, %arg2: memref<1x9x9x128xbf16, #tpu.memory_space<vmem>>, %arg3: memref<4x128x128xbf16, #tpu.memory_space<vmem>>, %arg4: memref<1x128xf32, #tpu.memory_space<vmem>>, %arg5: memref<64x128xbf16, #tpu.memory_space<vmem>>) attributes {dimension_semantics = [#tpu.dimension_semantics<parallel>, #tpu.dimension_semantics<parallel>], iteration_bounds = array<i64: 2, 1>, scalar_prefetch = 0 : i64, scratch_operands = 0 : i64, tpu.core_type = #tpu.core_type<tc>, window_params = [{transform_indices = @transform_0, window_bounds = array<i64: 1, 9, 9, 128>}, {transform_indices = @transform_1, window_bounds = array<i64: 4, 128, 128>}, {transform_indices = @transform_2, window_bounds = array<i64: 1, 128>}, {transform_indices = @transform_3, window_bounds = array<i64: 64, 128>}]} {
    %c0 = arith.constant 0 : index
    %c0_0 = arith.constant 0 : index
    %c0_1 = arith.constant 0 : index
    %c0_2 = arith.constant 0 : index
    %0 = vector.load %arg2[%c0, %c0_0, %c0_1, %c0_2] : memref<1x9x9x128xbf16, #tpu.memory_space<vmem>>, vector<1x9x8x128xbf16>
    %1 = vector.shape_cast %0 : vector<1x9x8x128xbf16> to vector<9x8x128xbf16>
    %2 = vector.extract_strided_slice %1 {offsets = [0, 0, 0], sizes = [8, 8, 128], strides = [1, 1, 1]} : vector<9x8x128xbf16> to vector<8x8x128xbf16>
    %3 = vector.shape_cast %2 : vector<8x8x128xbf16> to vector<64x128xbf16>
    %c0_3 = arith.constant 0 : index
    %c0_4 = arith.constant 0 : index
    %c0_5 = arith.constant 0 : index
    %4 = vector.load %arg3[%c0_3, %c0_4, %c0_5] : memref<4x128x128xbf16, #tpu.memory_space<vmem>>, vector<1x128x128xbf16>
    %5 = vector.shape_cast %4 : vector<1x128x128xbf16> to vector<128x128xbf16>
    %cst = arith.constant dense<0.000000e+00> : vector<64x128xf32>
    %6 = tpu.matmul %3, %5, %cst {dimension_numbers = #tpu.dot_dimension_numbers<[1], [0], [0], [1], [0, 0, 1, 1], [], []>} : vector<64x128xbf16>, vector<128x128xbf16>, vector<64x128xf32> -> vector<64x128xf32>
    %7 = vector.extract_strided_slice %1 {offsets = [1, 0, 0], sizes = [8, 8, 128], strides = [1, 1, 1]} : vector<9x8x128xbf16> to vector<8x8x128xbf16>
    %8 = vector.shape_cast %7 : vector<8x8x128xbf16> to vector<64x128xbf16>
    %c2 = arith.constant 2 : index
    %c0_6 = arith.constant 0 : index
    %c0_7 = arith.constant 0 : index
    %9 = vector.load %arg3[%c2, %c0_6, %c0_7] : memref<4x128x128xbf16, #tpu.memory_space<vmem>>, vector<1x128x128xbf16>
    %10 = vector.shape_cast %9 : vector<1x128x128xbf16> to vector<128x128xbf16>
    %cst_8 = arith.constant dense<0.000000e+00> : vector<64x128xf32>
    %11 = tpu.matmul %8, %10, %cst_8 {dimension_numbers = #tpu.dot_dimension_numbers<[1], [0], [0], [1], [0, 0, 1, 1], [], []>} : vector<64x128xbf16>, vector<128x128xbf16>, vector<64x128xf32> -> vector<64x128xf32>
    %12 = arith.addf %6, %11 : vector<64x128xf32>
    %c0_9 = arith.constant 0 : index
    %c0_10 = arith.constant 0 : index
    %c1 = arith.constant 1 : index
    %c0_11 = arith.constant 0 : index
    %13 = vector.load %arg2[%c0_9, %c0_10, %c1, %c0_11] : memref<1x9x9x128xbf16, #tpu.memory_space<vmem>>, vector<1x9x8x128xbf16>
    %14 = vector.shape_cast %13 : vector<1x9x8x128xbf16> to vector<9x8x128xbf16>
    %15 = vector.extract_strided_slice %14 {offsets = [0, 0, 0], sizes = [8, 8, 128], strides = [1, 1, 1]} : vector<9x8x128xbf16> to vector<8x8x128xbf16>
    %16 = vector.shape_cast %15 : vector<8x8x128xbf16> to vector<64x128xbf16>
    %c1_12 = arith.constant 1 : index
    %c0_13 = arith.constant 0 : index
    %c0_14 = arith.constant 0 : index
    %17 = vector.load %arg3[%c1_12, %c0_13, %c0_14] : memref<4x128x128xbf16, #tpu.memory_space<vmem>>, vector<1x128x128xbf16>
    %18 = vector.shape_cast %17 : vector<1x128x128xbf16> to vector<128x128xbf16>
    %cst_15 = arith.constant dense<0.000000e+00> : vector<64x128xf32>
    %19 = tpu.matmul %16, %18, %cst_15 {dimension_numbers = #tpu.dot_dimension_numbers<[1], [0], [0], [1], [0, 0, 1, 1], [], []>} : vector<64x128xbf16>, vector<128x128xbf16>, vector<64x128xf32> -> vector<64x128xf32>
    %20 = arith.addf %12, %19 : vector<64x128xf32>
    %21 = vector.extract_strided_slice %14 {offsets = [1, 0, 0], sizes = [8, 8, 128], strides = [1, 1, 1]} : vector<9x8x128xbf16> to vector<8x8x128xbf16>
    %22 = vector.shape_cast %21 : vector<8x8x128xbf16> to vector<64x128xbf16>
    %c3 = arith.constant 3 : index
    %c0_16 = arith.constant 0 : index
    %c0_17 = arith.constant 0 : index
    %23 = vector.load %arg3[%c3, %c0_16, %c0_17] : memref<4x128x128xbf16, #tpu.memory_space<vmem>>, vector<1x128x128xbf16>
    %24 = vector.shape_cast %23 : vector<1x128x128xbf16> to vector<128x128xbf16>
    %cst_18 = arith.constant dense<0.000000e+00> : vector<64x128xf32>
    %25 = tpu.matmul %22, %24, %cst_18 {dimension_numbers = #tpu.dot_dimension_numbers<[1], [0], [0], [1], [0, 0, 1, 1], [], []>} : vector<64x128xbf16>, vector<128x128xbf16>, vector<64x128xf32> -> vector<64x128xf32>
    %26 = arith.addf %20, %25 : vector<64x128xf32>
    %c0_19 = arith.constant 0 : index
    %c0_20 = arith.constant 0 : index
    %27 = vector.load %arg4[%c0_19, %c0_20] : memref<1x128xf32, #tpu.memory_space<vmem>>, vector<1x128xf32>
    %28 = vector.broadcast %27 : vector<1x128xf32> to vector<64x128xf32>
    %29 = arith.addf %26, %28 : vector<64x128xf32>
    %cst_21 = arith.constant 2.000000e+01 : f32
    %30 = vector.broadcast %cst_21 : f32 to vector<64x128xf32>
    %31 = arith.minimumf %29, %30 : vector<64x128xf32>
    %32 = math.exp %31 : vector<64x128xf32>
    %cst_22 = arith.constant 2.000000e+00 : f32
    %33 = vector.broadcast %cst_22 : f32 to vector<64x128xf32>
    %34 = arith.addf %32, %33 : vector<64x128xf32>
    %35 = arith.mulf %32, %34 : vector<64x128xf32>
    %36 = arith.mulf %29, %35 : vector<64x128xf32>
    %cst_23 = arith.constant 2.000000e+00 : f32
    %37 = vector.broadcast %cst_23 : f32 to vector<64x128xf32>
    %38 = arith.addf %35, %37 : vector<64x128xf32>
    %39 = tpu.reciprocal %38 {approx = true} : vector<64x128xf32> -> vector<64x128xf32>
    %40 = arith.mulf %36, %39 : vector<64x128xf32>
    %cst_24 = arith.constant 2.000000e+01 : f32
    %41 = vector.broadcast %cst_24 : f32 to vector<64x128xf32>
    %42 = arith.cmpf ogt, %29, %41 : vector<64x128xf32>
    %43 = arith.select %42, %29, %40 : vector<64x128xi1>, vector<64x128xf32>
    %44 = arith.truncf %43 : vector<64x128xf32> to vector<64x128xbf16>
    %c0_25 = arith.constant 0 : index
    %c0_26 = arith.constant 0 : index
    %45 = vector.load %arg5[%c0_25, %c0_26] : memref<64x128xbf16, #tpu.memory_space<vmem>>, vector<64x128xbf16>
    tpu.vector_store %arg5[%c0_25, %c0_26], %44 {strides = array<i32>} : memref<64x128xbf16, #tpu.memory_space<vmem>>, vector<64x128xbf16>,
    return
  }
  func.func @transform_0(%arg0: i32, %arg1: i32) -> (i32, i32, i32, i32) {
    %c0_i32 = arith.constant 0 : i32
    %c0_i32_0 = arith.constant 0 : i32
    %c0_i32_1 = arith.constant 0 : i32
    %c0_i32_2 = arith.constant 0 : i32
    return %arg0, %c0_i32, %c0_i32_0, %c0_i32_1 : i32, i32, i32, i32
  }
  func.func @transform_1(%arg0: i32, %arg1: i32) -> (i32, i32, i32) {
    %c0_i32 = arith.constant 0 : i32
    %c0_i32_0 = arith.constant 0 : i32
    %c0_i32_1 = arith.constant 0 : i32
    return %c0_i32, %c0_i32_0, %arg1 : i32, i32, i32
  }
  func.func @transform_2(%arg0: i32, %arg1: i32) -> (i32, i32) {
    %c0_i32 = arith.constant 0 : i32
    %c0_i32_0 = arith.constant 0 : i32
    return %c0_i32, %arg1 : i32, i32
  }
  func.func @transform_3(%arg0: i32, %arg1: i32) -> (i32, i32) {
    %c0_i32 = arith.constant 0 : i32
    return %arg0, %arg1 : i32, i32
  }
}

module attributes {stable_mosaic.version = 11 : i64} {
  func.func @kernel(%arg0: i32, %arg1: i32, %arg2: memref<1x10x10x128xbf16, #tpu.memory_space<vmem>>, %arg3: memref<9x128x128xbf16, #tpu.memory_space<vmem>>, %arg4: memref<1x128xf32, #tpu.memory_space<vmem>>, %arg5: memref<64x128xbf16, #tpu.memory_space<vmem>>, %arg6: memref<64x128xbf16, #tpu.memory_space<vmem>>) attributes {dimension_semantics = [#tpu.dimension_semantics<parallel>, #tpu.dimension_semantics<parallel>], iteration_bounds = array<i64: 2, 1>, scalar_prefetch = 0 : i64, scratch_operands = 0 : i64, tpu.core_type = #tpu.core_type<tc>, window_params = [{transform_indices = @transform_0, window_bounds = array<i64: 1, 10, 10, 128>}, {transform_indices = @transform_1, window_bounds = array<i64: 9, 128, 128>}, {transform_indices = @transform_2, window_bounds = array<i64: 1, 128>}, {transform_indices = @transform_3, window_bounds = array<i64: 64, 128>}, {transform_indices = @transform_4, window_bounds = array<i64: 64, 128>}]} {
    %c0 = arith.constant 0 : index
    %c0_0 = arith.constant 0 : index
    %c0_1 = arith.constant 0 : index
    %c0_2 = arith.constant 0 : index
    %0 = vector.load %arg2[%c0, %c0_0, %c0_1, %c0_2] : memref<1x10x10x128xbf16, #tpu.memory_space<vmem>>, vector<1x10x8x128xbf16>
    %1 = vector.shape_cast %0 : vector<1x10x8x128xbf16> to vector<10x8x128xbf16>
    %2 = vector.extract_strided_slice %1 {offsets = [0, 0, 0], sizes = [8, 8, 128], strides = [1, 1, 1]} : vector<10x8x128xbf16> to vector<8x8x128xbf16>
    %3 = vector.shape_cast %2 : vector<8x8x128xbf16> to vector<64x128xbf16>
    %c0_3 = arith.constant 0 : index
    %c0_4 = arith.constant 0 : index
    %c0_5 = arith.constant 0 : index
    %4 = vector.load %arg3[%c0_3, %c0_4, %c0_5] : memref<9x128x128xbf16, #tpu.memory_space<vmem>>, vector<1x128x128xbf16>
    %5 = vector.shape_cast %4 : vector<1x128x128xbf16> to vector<128x128xbf16>
    %cst = arith.constant dense<0.000000e+00> : vector<64x128xf32>
    %6 = tpu.matmul %3, %5, %cst {dimension_numbers = #tpu.dot_dimension_numbers<[1], [0], [0], [1], [0, 0, 1, 1], [], []>} : vector<64x128xbf16>, vector<128x128xbf16>, vector<64x128xf32> -> vector<64x128xf32>
    %7 = vector.extract_strided_slice %1 {offsets = [1, 0, 0], sizes = [8, 8, 128], strides = [1, 1, 1]} : vector<10x8x128xbf16> to vector<8x8x128xbf16>
    %8 = vector.shape_cast %7 : vector<8x8x128xbf16> to vector<64x128xbf16>
    %c3 = arith.constant 3 : index
    %c0_6 = arith.constant 0 : index
    %c0_7 = arith.constant 0 : index
    %9 = vector.load %arg3[%c3, %c0_6, %c0_7] : memref<9x128x128xbf16, #tpu.memory_space<vmem>>, vector<1x128x128xbf16>
    %10 = vector.shape_cast %9 : vector<1x128x128xbf16> to vector<128x128xbf16>
    %cst_8 = arith.constant dense<0.000000e+00> : vector<64x128xf32>
    %11 = tpu.matmul %8, %10, %cst_8 {dimension_numbers = #tpu.dot_dimension_numbers<[1], [0], [0], [1], [0, 0, 1, 1], [], []>} : vector<64x128xbf16>, vector<128x128xbf16>, vector<64x128xf32> -> vector<64x128xf32>
    %12 = arith.addf %6, %11 : vector<64x128xf32>
    %13 = vector.extract_strided_slice %1 {offsets = [2, 0, 0], sizes = [8, 8, 128], strides = [1, 1, 1]} : vector<10x8x128xbf16> to vector<8x8x128xbf16>
    %14 = vector.shape_cast %13 : vector<8x8x128xbf16> to vector<64x128xbf16>
    %c6 = arith.constant 6 : index
    %c0_9 = arith.constant 0 : index
    %c0_10 = arith.constant 0 : index
    %15 = vector.load %arg3[%c6, %c0_9, %c0_10] : memref<9x128x128xbf16, #tpu.memory_space<vmem>>, vector<1x128x128xbf16>
    %16 = vector.shape_cast %15 : vector<1x128x128xbf16> to vector<128x128xbf16>
    %cst_11 = arith.constant dense<0.000000e+00> : vector<64x128xf32>
    %17 = tpu.matmul %14, %16, %cst_11 {dimension_numbers = #tpu.dot_dimension_numbers<[1], [0], [0], [1], [0, 0, 1, 1], [], []>} : vector<64x128xbf16>, vector<128x128xbf16>, vector<64x128xf32> -> vector<64x128xf32>
    %18 = arith.addf %12, %17 : vector<64x128xf32>
    %c0_12 = arith.constant 0 : index
    %c0_13 = arith.constant 0 : index
    %c1 = arith.constant 1 : index
    %c0_14 = arith.constant 0 : index
    %19 = vector.load %arg2[%c0_12, %c0_13, %c1, %c0_14] : memref<1x10x10x128xbf16, #tpu.memory_space<vmem>>, vector<1x10x8x128xbf16>
    %20 = vector.shape_cast %19 : vector<1x10x8x128xbf16> to vector<10x8x128xbf16>
    %21 = vector.extract_strided_slice %20 {offsets = [0, 0, 0], sizes = [8, 8, 128], strides = [1, 1, 1]} : vector<10x8x128xbf16> to vector<8x8x128xbf16>
    %22 = vector.shape_cast %21 : vector<8x8x128xbf16> to vector<64x128xbf16>
    %c1_15 = arith.constant 1 : index
    %c0_16 = arith.constant 0 : index
    %c0_17 = arith.constant 0 : index
    %23 = vector.load %arg3[%c1_15, %c0_16, %c0_17] : memref<9x128x128xbf16, #tpu.memory_space<vmem>>, vector<1x128x128xbf16>
    %24 = vector.shape_cast %23 : vector<1x128x128xbf16> to vector<128x128xbf16>
    %cst_18 = arith.constant dense<0.000000e+00> : vector<64x128xf32>
    %25 = tpu.matmul %22, %24, %cst_18 {dimension_numbers = #tpu.dot_dimension_numbers<[1], [0], [0], [1], [0, 0, 1, 1], [], []>} : vector<64x128xbf16>, vector<128x128xbf16>, vector<64x128xf32> -> vector<64x128xf32>
    %26 = arith.addf %18, %25 : vector<64x128xf32>
    %27 = vector.extract_strided_slice %20 {offsets = [1, 0, 0], sizes = [8, 8, 128], strides = [1, 1, 1]} : vector<10x8x128xbf16> to vector<8x8x128xbf16>
    %28 = vector.shape_cast %27 : vector<8x8x128xbf16> to vector<64x128xbf16>
    %c4 = arith.constant 4 : index
    %c0_19 = arith.constant 0 : index
    %c0_20 = arith.constant 0 : index
    %29 = vector.load %arg3[%c4, %c0_19, %c0_20] : memref<9x128x128xbf16, #tpu.memory_space<vmem>>, vector<1x128x128xbf16>
    %30 = vector.shape_cast %29 : vector<1x128x128xbf16> to vector<128x128xbf16>
    %cst_21 = arith.constant dense<0.000000e+00> : vector<64x128xf32>
    %31 = tpu.matmul %28, %30, %cst_21 {dimension_numbers = #tpu.dot_dimension_numbers<[1], [0], [0], [1], [0, 0, 1, 1], [], []>} : vector<64x128xbf16>, vector<128x128xbf16>, vector<64x128xf32> -> vector<64x128xf32>
    %32 = arith.addf %26, %31 : vector<64x128xf32>
    %33 = vector.extract_strided_slice %20 {offsets = [2, 0, 0], sizes = [8, 8, 128], strides = [1, 1, 1]} : vector<10x8x128xbf16> to vector<8x8x128xbf16>
    %34 = vector.shape_cast %33 : vector<8x8x128xbf16> to vector<64x128xbf16>
    %c7 = arith.constant 7 : index
    %c0_22 = arith.constant 0 : index
    %c0_23 = arith.constant 0 : index
    %35 = vector.load %arg3[%c7, %c0_22, %c0_23] : memref<9x128x128xbf16, #tpu.memory_space<vmem>>, vector<1x128x128xbf16>
    %36 = vector.shape_cast %35 : vector<1x128x128xbf16> to vector<128x128xbf16>
    %cst_24 = arith.constant dense<0.000000e+00> : vector<64x128xf32>
    %37 = tpu.matmul %34, %36, %cst_24 {dimension_numbers = #tpu.dot_dimension_numbers<[1], [0], [0], [1], [0, 0, 1, 1], [], []>} : vector<64x128xbf16>, vector<128x128xbf16>, vector<64x128xf32> -> vector<64x128xf32>
    %38 = arith.addf %32, %37 : vector<64x128xf32>
    %c0_25 = arith.constant 0 : index
    %c0_26 = arith.constant 0 : index
    %c2 = arith.constant 2 : index
    %c0_27 = arith.constant 0 : index
    %39 = vector.load %arg2[%c0_25, %c0_26, %c2, %c0_27] : memref<1x10x10x128xbf16, #tpu.memory_space<vmem>>, vector<1x10x8x128xbf16>
    %40 = vector.shape_cast %39 : vector<1x10x8x128xbf16> to vector<10x8x128xbf16>
    %41 = vector.extract_strided_slice %40 {offsets = [0, 0, 0], sizes = [8, 8, 128], strides = [1, 1, 1]} : vector<10x8x128xbf16> to vector<8x8x128xbf16>
    %42 = vector.shape_cast %41 : vector<8x8x128xbf16> to vector<64x128xbf16>
    %c2_28 = arith.constant 2 : index
    %c0_29 = arith.constant 0 : index
    %c0_30 = arith.constant 0 : index
    %43 = vector.load %arg3[%c2_28, %c0_29, %c0_30] : memref<9x128x128xbf16, #tpu.memory_space<vmem>>, vector<1x128x128xbf16>
    %44 = vector.shape_cast %43 : vector<1x128x128xbf16> to vector<128x128xbf16>
    %cst_31 = arith.constant dense<0.000000e+00> : vector<64x128xf32>
    %45 = tpu.matmul %42, %44, %cst_31 {dimension_numbers = #tpu.dot_dimension_numbers<[1], [0], [0], [1], [0, 0, 1, 1], [], []>} : vector<64x128xbf16>, vector<128x128xbf16>, vector<64x128xf32> -> vector<64x128xf32>
    %46 = arith.addf %38, %45 : vector<64x128xf32>
    %47 = vector.extract_strided_slice %40 {offsets = [1, 0, 0], sizes = [8, 8, 128], strides = [1, 1, 1]} : vector<10x8x128xbf16> to vector<8x8x128xbf16>
    %48 = vector.shape_cast %47 : vector<8x8x128xbf16> to vector<64x128xbf16>
    %c5 = arith.constant 5 : index
    %c0_32 = arith.constant 0 : index
    %c0_33 = arith.constant 0 : index
    %49 = vector.load %arg3[%c5, %c0_32, %c0_33] : memref<9x128x128xbf16, #tpu.memory_space<vmem>>, vector<1x128x128xbf16>
    %50 = vector.shape_cast %49 : vector<1x128x128xbf16> to vector<128x128xbf16>
    %cst_34 = arith.constant dense<0.000000e+00> : vector<64x128xf32>
    %51 = tpu.matmul %48, %50, %cst_34 {dimension_numbers = #tpu.dot_dimension_numbers<[1], [0], [0], [1], [0, 0, 1, 1], [], []>} : vector<64x128xbf16>, vector<128x128xbf16>, vector<64x128xf32> -> vector<64x128xf32>
    %52 = arith.addf %46, %51 : vector<64x128xf32>
    %53 = vector.extract_strided_slice %40 {offsets = [2, 0, 0], sizes = [8, 8, 128], strides = [1, 1, 1]} : vector<10x8x128xbf16> to vector<8x8x128xbf16>
    %54 = vector.shape_cast %53 : vector<8x8x128xbf16> to vector<64x128xbf16>
    %c8 = arith.constant 8 : index
    %c0_35 = arith.constant 0 : index
    %c0_36 = arith.constant 0 : index
    %55 = vector.load %arg3[%c8, %c0_35, %c0_36] : memref<9x128x128xbf16, #tpu.memory_space<vmem>>, vector<1x128x128xbf16>
    %56 = vector.shape_cast %55 : vector<1x128x128xbf16> to vector<128x128xbf16>
    %cst_37 = arith.constant dense<0.000000e+00> : vector<64x128xf32>
    %57 = tpu.matmul %54, %56, %cst_37 {dimension_numbers = #tpu.dot_dimension_numbers<[1], [0], [0], [1], [0, 0, 1, 1], [], []>} : vector<64x128xbf16>, vector<128x128xbf16>, vector<64x128xf32> -> vector<64x128xf32>
    %58 = arith.addf %52, %57 : vector<64x128xf32>
    %c0_38 = arith.constant 0 : index
    %c0_39 = arith.constant 0 : index
    %59 = vector.load %arg4[%c0_38, %c0_39] : memref<1x128xf32, #tpu.memory_space<vmem>>, vector<1x128xf32>
    %60 = vector.broadcast %59 : vector<1x128xf32> to vector<64x128xf32>
    %61 = arith.addf %58, %60 : vector<64x128xf32>
    %cst_40 = arith.constant 2.000000e+01 : f32
    %62 = vector.broadcast %cst_40 : f32 to vector<64x128xf32>
    %63 = arith.minimumf %61, %62 : vector<64x128xf32>
    %64 = math.exp %63 : vector<64x128xf32>
    %cst_41 = arith.constant 2.000000e+00 : f32
    %65 = vector.broadcast %cst_41 : f32 to vector<64x128xf32>
    %66 = arith.addf %64, %65 : vector<64x128xf32>
    %67 = arith.mulf %64, %66 : vector<64x128xf32>
    %68 = arith.mulf %61, %67 : vector<64x128xf32>
    %cst_42 = arith.constant 2.000000e+00 : f32
    %69 = vector.broadcast %cst_42 : f32 to vector<64x128xf32>
    %70 = arith.addf %67, %69 : vector<64x128xf32>
    %71 = tpu.reciprocal %70 {approx = true} : vector<64x128xf32> -> vector<64x128xf32>
    %72 = arith.mulf %68, %71 : vector<64x128xf32>
    %cst_43 = arith.constant 2.000000e+01 : f32
    %73 = vector.broadcast %cst_43 : f32 to vector<64x128xf32>
    %74 = arith.cmpf ogt, %61, %73 : vector<64x128xf32>
    %75 = arith.select %74, %61, %72 : vector<64x128xi1>, vector<64x128xf32>
    %c0_44 = arith.constant 0 : index
    %c0_45 = arith.constant 0 : index
    %76 = vector.load %arg5[%c0_44, %c0_45] : memref<64x128xbf16, #tpu.memory_space<vmem>>, vector<64x128xbf16>
    %77 = arith.extf %76 : vector<64x128xbf16> to vector<64x128xf32>
    %78 = arith.addf %75, %77 : vector<64x128xf32>
    %79 = arith.truncf %78 : vector<64x128xf32> to vector<64x128xbf16>
    %c0_46 = arith.constant 0 : index
    %c0_47 = arith.constant 0 : index
    %80 = vector.load %arg6[%c0_46, %c0_47] : memref<64x128xbf16, #tpu.memory_space<vmem>>, vector<64x128xbf16>
    tpu.vector_store %arg6[%c0_46, %c0_47], %79 {strides = array<i32>} : memref<64x128xbf16, #tpu.memory_space<vmem>>, vector<64x128xbf16>,
    return
  }
  func.func @transform_0(%arg0: i32, %arg1: i32) -> (i32, i32, i32, i32) {
    %c0_i32 = arith.constant 0 : i32
    %c0_i32_0 = arith.constant 0 : i32
    %c0_i32_1 = arith.constant 0 : i32
    %c0_i32_2 = arith.constant 0 : i32
    return %arg0, %c0_i32, %c0_i32_0, %c0_i32_1 : i32, i32, i32, i32
  }
  func.func @transform_1(%arg0: i32, %arg1: i32) -> (i32, i32, i32) {
    %c0_i32 = arith.constant 0 : i32
    %c0_i32_0 = arith.constant 0 : i32
    %c0_i32_1 = arith.constant 0 : i32
    return %c0_i32, %c0_i32_0, %arg1 : i32, i32, i32
  }
  func.func @transform_2(%arg0: i32, %arg1: i32) -> (i32, i32) {
    %c0_i32 = arith.constant 0 : i32
    %c0_i32_0 = arith.constant 0 : i32
    return %c0_i32, %arg1 : i32, i32
  }
  func.func @transform_3(%arg0: i32, %arg1: i32) -> (i32, i32) {
    %c0_i32 = arith.constant 0 : i32
    return %arg0, %arg1 : i32, i32
  }
  func.func @transform_4(%arg0: i32, %arg1: i32) -> (i32, i32) {
    %c0_i32 = arith.constant 0 : i32
    return %arg0, %arg1 : i32, i32
  }
}

module attributes {stable_mosaic.version = 11 : i64} {
  func.func @_mm_bias_mish_kernel(%arg0: i32, %arg1: i32, %arg2: i32, %arg3: memref<128x128xbf16, #tpu.memory_space<vmem>>, %arg4: memref<128x128xbf16, #tpu.memory_space<vmem>>, %arg5: memref<1x128xf32, #tpu.memory_space<vmem>>, %arg6: memref<128x128xbf16, #tpu.memory_space<vmem>>, %arg7: memref<128x128xf32, #tpu.memory_space<vmem>>) attributes {dimension_semantics = [#tpu.dimension_semantics<parallel>, #tpu.dimension_semantics<parallel>, #tpu.dimension_semantics<arbitrary>], iteration_bounds = array<i64: 1, 1, 1>, scalar_prefetch = 0 : i64, scratch_operands = 1 : i64, tpu.core_type = #tpu.core_type<tc>, window_params = [{transform_indices = @transform_0, window_bounds = array<i64: 128, 128>}, {transform_indices = @transform_1, window_bounds = array<i64: 128, 128>}, {transform_indices = @transform_2, window_bounds = array<i64: 1, 128>}, {transform_indices = @transform_3, window_bounds = array<i64: 128, 128>}]} {
    %c0_i32 = arith.constant 0 : i32
    %0 = arith.cmpi eq, %arg2, %c0_i32 : i32
    %1 = arith.extui %0 : i1 to i32
    %c0_i32_0 = arith.constant 0 : i32
    %2 = arith.cmpi ne, %1, %c0_i32_0 : i32
    scf.if %2 {
      %cst_10 = arith.constant 0.000000e+00 : f32
      %12 = vector.broadcast %cst_10 : f32 to vector<128x128xf32>
      %c0_11 = arith.constant 0 : index
      %c0_12 = arith.constant 0 : index
      %13 = vector.load %arg7[%c0_11, %c0_12] : memref<128x128xf32, #tpu.memory_space<vmem>>, vector<128x128xf32>
      tpu.vector_store %arg7[%c0_11, %c0_12], %12 {strides = array<i32>} : memref<128x128xf32, #tpu.memory_space<vmem>>, vector<128x128xf32>,
    } else {
    }
    %c0 = arith.constant 0 : index
    %c0_1 = arith.constant 0 : index
    %3 = vector.load %arg7[%c0, %c0_1] : memref<128x128xf32, #tpu.memory_space<vmem>>, vector<128x128xf32>
    %c0_2 = arith.constant 0 : index
    %c0_3 = arith.constant 0 : index
    %4 = vector.load %arg3[%c0_2, %c0_3] : memref<128x128xbf16, #tpu.memory_space<vmem>>, vector<128x128xbf16>
    %c0_4 = arith.constant 0 : index
    %c0_5 = arith.constant 0 : index
    %5 = vector.load %arg4[%c0_4, %c0_5] : memref<128x128xbf16, #tpu.memory_space<vmem>>, vector<128x128xbf16>
    %cst = arith.constant dense<0.000000e+00> : vector<128x128xf32>
    %6 = tpu.matmul %4, %5, %cst {dimension_numbers = #tpu.dot_dimension_numbers<[1], [0], [0], [1], [0, 0, 1, 1], [], []>} : vector<128x128xbf16>, vector<128x128xbf16>, vector<128x128xf32> -> vector<128x128xf32>
    %7 = arith.addf %3, %6 : vector<128x128xf32>
    %c0_6 = arith.constant 0 : index
    %c0_7 = arith.constant 0 : index
    %8 = vector.load %arg7[%c0_6, %c0_7] : memref<128x128xf32, #tpu.memory_space<vmem>>, vector<128x128xf32>
    tpu.vector_store %arg7[%c0_6, %c0_7], %7 {strides = array<i32>} : memref<128x128xf32, #tpu.memory_space<vmem>>, vector<128x128xf32>,
    %c0_i32_8 = arith.constant 0 : i32
    %9 = arith.cmpi eq, %arg2, %c0_i32_8 : i32
    %10 = arith.extui %9 : i1 to i32
    %c0_i32_9 = arith.constant 0 : i32
    %11 = arith.cmpi ne, %10, %c0_i32_9 : i32
    scf.if %11 {
      %c0_10 = arith.constant 0 : index
      %c0_11 = arith.constant 0 : index
      %12 = vector.load %arg7[%c0_10, %c0_11] : memref<128x128xf32, #tpu.memory_space<vmem>>, vector<128x128xf32>
      %c0_12 = arith.constant 0 : index
      %c0_13 = arith.constant 0 : index
      %13 = vector.load %arg5[%c0_12, %c0_13] : memref<1x128xf32, #tpu.memory_space<vmem>>, vector<1x128xf32>
      %14 = vector.broadcast %13 : vector<1x128xf32> to vector<128x128xf32>
      %15 = arith.addf %12, %14 : vector<128x128xf32>
      %cst_14 = arith.constant 2.000000e+01 : f32
      %16 = vector.broadcast %cst_14 : f32 to vector<128x128xf32>
      %17 = arith.minimumf %15, %16 : vector<128x128xf32>
      %18 = math.exp %17 : vector<128x128xf32>
      %cst_15 = arith.constant 2.000000e+00 : f32
      %19 = vector.broadcast %cst_15 : f32 to vector<128x128xf32>
      %20 = arith.addf %18, %19 : vector<128x128xf32>
      %21 = arith.mulf %18, %20 : vector<128x128xf32>
      %22 = arith.mulf %15, %21 : vector<128x128xf32>
      %cst_16 = arith.constant 2.000000e+00 : f32
      %23 = vector.broadcast %cst_16 : f32 to vector<128x128xf32>
      %24 = arith.addf %21, %23 : vector<128x128xf32>
      %25 = tpu.reciprocal %24 {approx = true} : vector<128x128xf32> -> vector<128x128xf32>
      %26 = arith.mulf %22, %25 : vector<128x128xf32>
      %cst_17 = arith.constant 2.000000e+01 : f32
      %27 = vector.broadcast %cst_17 : f32 to vector<128x128xf32>
      %28 = arith.cmpf ogt, %15, %27 : vector<128x128xf32>
      %29 = arith.select %28, %15, %26 : vector<128x128xi1>, vector<128x128xf32>
      %30 = arith.truncf %29 : vector<128x128xf32> to vector<128x128xbf16>
      %c0_18 = arith.constant 0 : index
      %c0_19 = arith.constant 0 : index
      %31 = vector.load %arg6[%c0_18, %c0_19] : memref<128x128xbf16, #tpu.memory_space<vmem>>, vector<128x128xbf16>
      tpu.vector_store %arg6[%c0_18, %c0_19], %30 {strides = array<i32>} : memref<128x128xbf16, #tpu.memory_space<vmem>>, vector<128x128xbf16>,
    } else {
    }
    return
  }
  func.func @transform_0(%arg0: i32, %arg1: i32, %arg2: i32) -> (i32, i32) {
    %c0_i32 = arith.constant 0 : i32
    return %arg0, %arg2 : i32, i32
  }
  func.func @transform_1(%arg0: i32, %arg1: i32, %arg2: i32) -> (i32, i32) {
    %c0_i32 = arith.constant 0 : i32
    return %arg2, %arg1 : i32, i32
  }
  func.func @transform_2(%arg0: i32, %arg1: i32, %arg2: i32) -> (i32, i32) {
    %c0_i32 = arith.constant 0 : i32
    %c0_i32_0 = arith.constant 0 : i32
    return %c0_i32, %arg1 : i32, i32
  }
  func.func @transform_3(%arg0: i32, %arg1: i32, %arg2: i32) -> (i32, i32) {
    %c0_i32 = arith.constant 0 : i32
    return %arg0, %arg1 : i32, i32
  }
}

module attributes {stable_mosaic.version = 11 : i64} {
  func.func @kernel(%arg0: i32, %arg1: i32, %arg2: memref<1x10x10x128xbf16, #tpu.memory_space<vmem>>, %arg3: memref<9x128x128xbf16, #tpu.memory_space<vmem>>, %arg4: memref<1x128xf32, #tpu.memory_space<vmem>>, %arg5: memref<64x128xbf16, #tpu.memory_space<vmem>>) attributes {dimension_semantics = [#tpu.dimension_semantics<parallel>, #tpu.dimension_semantics<parallel>], iteration_bounds = array<i64: 2, 1>, scalar_prefetch = 0 : i64, scratch_operands = 0 : i64, tpu.core_type = #tpu.core_type<tc>, window_params = [{transform_indices = @transform_0, window_bounds = array<i64: 1, 10, 10, 128>}, {transform_indices = @transform_1, window_bounds = array<i64: 9, 128, 128>}, {transform_indices = @transform_2, window_bounds = array<i64: 1, 128>}, {transform_indices = @transform_3, window_bounds = array<i64: 64, 128>}]} {
    %c0 = arith.constant 0 : index
    %c0_0 = arith.constant 0 : index
    %c0_1 = arith.constant 0 : index
    %c0_2 = arith.constant 0 : index
    %0 = vector.load %arg2[%c0, %c0_0, %c0_1, %c0_2] : memref<1x10x10x128xbf16, #tpu.memory_space<vmem>>, vector<1x10x8x128xbf16>
    %1 = vector.shape_cast %0 : vector<1x10x8x128xbf16> to vector<10x8x128xbf16>
    %2 = vector.extract_strided_slice %1 {offsets = [0, 0, 0], sizes = [8, 8, 128], strides = [1, 1, 1]} : vector<10x8x128xbf16> to vector<8x8x128xbf16>
    %3 = vector.shape_cast %2 : vector<8x8x128xbf16> to vector<64x128xbf16>
    %c0_3 = arith.constant 0 : index
    %c0_4 = arith.constant 0 : index
    %c0_5 = arith.constant 0 : index
    %4 = vector.load %arg3[%c0_3, %c0_4, %c0_5] : memref<9x128x128xbf16, #tpu.memory_space<vmem>>, vector<1x128x128xbf16>
    %5 = vector.shape_cast %4 : vector<1x128x128xbf16> to vector<128x128xbf16>
    %cst = arith.constant dense<0.000000e+00> : vector<64x128xf32>
    %6 = tpu.matmul %3, %5, %cst {dimension_numbers = #tpu.dot_dimension_numbers<[1], [0], [0], [1], [0, 0, 1, 1], [], []>} : vector<64x128xbf16>, vector<128x128xbf16>, vector<64x128xf32> -> vector<64x128xf32>
    %7 = vector.extract_strided_slice %1 {offsets = [1, 0, 0], sizes = [8, 8, 128], strides = [1, 1, 1]} : vector<10x8x128xbf16> to vector<8x8x128xbf16>
    %8 = vector.shape_cast %7 : vector<8x8x128xbf16> to vector<64x128xbf16>
    %c3 = arith.constant 3 : index
    %c0_6 = arith.constant 0 : index
    %c0_7 = arith.constant 0 : index
    %9 = vector.load %arg3[%c3, %c0_6, %c0_7] : memref<9x128x128xbf16, #tpu.memory_space<vmem>>, vector<1x128x128xbf16>
    %10 = vector.shape_cast %9 : vector<1x128x128xbf16> to vector<128x128xbf16>
    %cst_8 = arith.constant dense<0.000000e+00> : vector<64x128xf32>
    %11 = tpu.matmul %8, %10, %cst_8 {dimension_numbers = #tpu.dot_dimension_numbers<[1], [0], [0], [1], [0, 0, 1, 1], [], []>} : vector<64x128xbf16>, vector<128x128xbf16>, vector<64x128xf32> -> vector<64x128xf32>
    %12 = arith.addf %6, %11 : vector<64x128xf32>
    %13 = vector.extract_strided_slice %1 {offsets = [2, 0, 0], sizes = [8, 8, 128], strides = [1, 1, 1]} : vector<10x8x128xbf16> to vector<8x8x128xbf16>
    %14 = vector.shape_cast %13 : vector<8x8x128xbf16> to vector<64x128xbf16>
    %c6 = arith.constant 6 : index
    %c0_9 = arith.constant 0 : index
    %c0_10 = arith.constant 0 : index
    %15 = vector.load %arg3[%c6, %c0_9, %c0_10] : memref<9x128x128xbf16, #tpu.memory_space<vmem>>, vector<1x128x128xbf16>
    %16 = vector.shape_cast %15 : vector<1x128x128xbf16> to vector<128x128xbf16>
    %cst_11 = arith.constant dense<0.000000e+00> : vector<64x128xf32>
    %17 = tpu.matmul %14, %16, %cst_11 {dimension_numbers = #tpu.dot_dimension_numbers<[1], [0], [0], [1], [0, 0, 1, 1], [], []>} : vector<64x128xbf16>, vector<128x128xbf16>, vector<64x128xf32> -> vector<64x128xf32>
    %18 = arith.addf %12, %17 : vector<64x128xf32>
    %c0_12 = arith.constant 0 : index
    %c0_13 = arith.constant 0 : index
    %c1 = arith.constant 1 : index
    %c0_14 = arith.constant 0 : index
    %19 = vector.load %arg2[%c0_12, %c0_13, %c1, %c0_14] : memref<1x10x10x128xbf16, #tpu.memory_space<vmem>>, vector<1x10x8x128xbf16>
    %20 = vector.shape_cast %19 : vector<1x10x8x128xbf16> to vector<10x8x128xbf16>
    %21 = vector.extract_strided_slice %20 {offsets = [0, 0, 0], sizes = [8, 8, 128], strides = [1, 1, 1]} : vector<10x8x128xbf16> to vector<8x8x128xbf16>
    %22 = vector.shape_cast %21 : vector<8x8x128xbf16> to vector<64x128xbf16>
    %c1_15 = arith.constant 1 : index
    %c0_16 = arith.constant 0 : index
    %c0_17 = arith.constant 0 : index
    %23 = vector.load %arg3[%c1_15, %c0_16, %c0_17] : memref<9x128x128xbf16, #tpu.memory_space<vmem>>, vector<1x128x128xbf16>
    %24 = vector.shape_cast %23 : vector<1x128x128xbf16> to vector<128x128xbf16>
    %cst_18 = arith.constant dense<0.000000e+00> : vector<64x128xf32>
    %25 = tpu.matmul %22, %24, %cst_18 {dimension_numbers = #tpu.dot_dimension_numbers<[1], [0], [0], [1], [0, 0, 1, 1], [], []>} : vector<64x128xbf16>, vector<128x128xbf16>, vector<64x128xf32> -> vector<64x128xf32>
    %26 = arith.addf %18, %25 : vector<64x128xf32>
    %27 = vector.extract_strided_slice %20 {offsets = [1, 0, 0], sizes = [8, 8, 128], strides = [1, 1, 1]} : vector<10x8x128xbf16> to vector<8x8x128xbf16>
    %28 = vector.shape_cast %27 : vector<8x8x128xbf16> to vector<64x128xbf16>
    %c4 = arith.constant 4 : index
    %c0_19 = arith.constant 0 : index
    %c0_20 = arith.constant 0 : index
    %29 = vector.load %arg3[%c4, %c0_19, %c0_20] : memref<9x128x128xbf16, #tpu.memory_space<vmem>>, vector<1x128x128xbf16>
    %30 = vector.shape_cast %29 : vector<1x128x128xbf16> to vector<128x128xbf16>
    %cst_21 = arith.constant dense<0.000000e+00> : vector<64x128xf32>
    %31 = tpu.matmul %28, %30, %cst_21 {dimension_numbers = #tpu.dot_dimension_numbers<[1], [0], [0], [1], [0, 0, 1, 1], [], []>} : vector<64x128xbf16>, vector<128x128xbf16>, vector<64x128xf32> -> vector<64x128xf32>
    %32 = arith.addf %26, %31 : vector<64x128xf32>
    %33 = vector.extract_strided_slice %20 {offsets = [2, 0, 0], sizes = [8, 8, 128], strides = [1, 1, 1]} : vector<10x8x128xbf16> to vector<8x8x128xbf16>
    %34 = vector.shape_cast %33 : vector<8x8x128xbf16> to vector<64x128xbf16>
    %c7 = arith.constant 7 : index
    %c0_22 = arith.constant 0 : index
    %c0_23 = arith.constant 0 : index
    %35 = vector.load %arg3[%c7, %c0_22, %c0_23] : memref<9x128x128xbf16, #tpu.memory_space<vmem>>, vector<1x128x128xbf16>
    %36 = vector.shape_cast %35 : vector<1x128x128xbf16> to vector<128x128xbf16>
    %cst_24 = arith.constant dense<0.000000e+00> : vector<64x128xf32>
    %37 = tpu.matmul %34, %36, %cst_24 {dimension_numbers = #tpu.dot_dimension_numbers<[1], [0], [0], [1], [0, 0, 1, 1], [], []>} : vector<64x128xbf16>, vector<128x128xbf16>, vector<64x128xf32> -> vector<64x128xf32>
    %38 = arith.addf %32, %37 : vector<64x128xf32>
    %c0_25 = arith.constant 0 : index
    %c0_26 = arith.constant 0 : index
    %c2 = arith.constant 2 : index
    %c0_27 = arith.constant 0 : index
    %39 = vector.load %arg2[%c0_25, %c0_26, %c2, %c0_27] : memref<1x10x10x128xbf16, #tpu.memory_space<vmem>>, vector<1x10x8x128xbf16>
    %40 = vector.shape_cast %39 : vector<1x10x8x128xbf16> to vector<10x8x128xbf16>
    %41 = vector.extract_strided_slice %40 {offsets = [0, 0, 0], sizes = [8, 8, 128], strides = [1, 1, 1]} : vector<10x8x128xbf16> to vector<8x8x128xbf16>
    %42 = vector.shape_cast %41 : vector<8x8x128xbf16> to vector<64x128xbf16>
    %c2_28 = arith.constant 2 : index
    %c0_29 = arith.constant 0 : index
    %c0_30 = arith.constant 0 : index
    %43 = vector.load %arg3[%c2_28, %c0_29, %c0_30] : memref<9x128x128xbf16, #tpu.memory_space<vmem>>, vector<1x128x128xbf16>
    %44 = vector.shape_cast %43 : vector<1x128x128xbf16> to vector<128x128xbf16>
    %cst_31 = arith.constant dense<0.000000e+00> : vector<64x128xf32>
    %45 = tpu.matmul %42, %44, %cst_31 {dimension_numbers = #tpu.dot_dimension_numbers<[1], [0], [0], [1], [0, 0, 1, 1], [], []>} : vector<64x128xbf16>, vector<128x128xbf16>, vector<64x128xf32> -> vector<64x128xf32>
    %46 = arith.addf %38, %45 : vector<64x128xf32>
    %47 = vector.extract_strided_slice %40 {offsets = [1, 0, 0], sizes = [8, 8, 128], strides = [1, 1, 1]} : vector<10x8x128xbf16> to vector<8x8x128xbf16>
    %48 = vector.shape_cast %47 : vector<8x8x128xbf16> to vector<64x128xbf16>
    %c5 = arith.constant 5 : index
    %c0_32 = arith.constant 0 : index
    %c0_33 = arith.constant 0 : index
    %49 = vector.load %arg3[%c5, %c0_32, %c0_33] : memref<9x128x128xbf16, #tpu.memory_space<vmem>>, vector<1x128x128xbf16>
    %50 = vector.shape_cast %49 : vector<1x128x128xbf16> to vector<128x128xbf16>
    %cst_34 = arith.constant dense<0.000000e+00> : vector<64x128xf32>
    %51 = tpu.matmul %48, %50, %cst_34 {dimension_numbers = #tpu.dot_dimension_numbers<[1], [0], [0], [1], [0, 0, 1, 1], [], []>} : vector<64x128xbf16>, vector<128x128xbf16>, vector<64x128xf32> -> vector<64x128xf32>
    %52 = arith.addf %46, %51 : vector<64x128xf32>
    %53 = vector.extract_strided_slice %40 {offsets = [2, 0, 0], sizes = [8, 8, 128], strides = [1, 1, 1]} : vector<10x8x128xbf16> to vector<8x8x128xbf16>
    %54 = vector.shape_cast %53 : vector<8x8x128xbf16> to vector<64x128xbf16>
    %c8 = arith.constant 8 : index
    %c0_35 = arith.constant 0 : index
    %c0_36 = arith.constant 0 : index
    %55 = vector.load %arg3[%c8, %c0_35, %c0_36] : memref<9x128x128xbf16, #tpu.memory_space<vmem>>, vector<1x128x128xbf16>
    %56 = vector.shape_cast %55 : vector<1x128x128xbf16> to vector<128x128xbf16>
    %cst_37 = arith.constant dense<0.000000e+00> : vector<64x128xf32>
    %57 = tpu.matmul %54, %56, %cst_37 {dimension_numbers = #tpu.dot_dimension_numbers<[1], [0], [0], [1], [0, 0, 1, 1], [], []>} : vector<64x128xbf16>, vector<128x128xbf16>, vector<64x128xf32> -> vector<64x128xf32>
    %58 = arith.addf %52, %57 : vector<64x128xf32>
    %c0_38 = arith.constant 0 : index
    %c0_39 = arith.constant 0 : index
    %59 = vector.load %arg4[%c0_38, %c0_39] : memref<1x128xf32, #tpu.memory_space<vmem>>, vector<1x128xf32>
    %60 = vector.broadcast %59 : vector<1x128xf32> to vector<64x128xf32>
    %61 = arith.addf %58, %60 : vector<64x128xf32>
    %cst_40 = arith.constant 2.000000e+01 : f32
    %62 = vector.broadcast %cst_40 : f32 to vector<64x128xf32>
    %63 = arith.minimumf %61, %62 : vector<64x128xf32>
    %64 = math.exp %63 : vector<64x128xf32>
    %cst_41 = arith.constant 2.000000e+00 : f32
    %65 = vector.broadcast %cst_41 : f32 to vector<64x128xf32>
    %66 = arith.addf %64, %65 : vector<64x128xf32>
    %67 = arith.mulf %64, %66 : vector<64x128xf32>
    %68 = arith.mulf %61, %67 : vector<64x128xf32>
    %cst_42 = arith.constant 2.000000e+00 : f32
    %69 = vector.broadcast %cst_42 : f32 to vector<64x128xf32>
    %70 = arith.addf %67, %69 : vector<64x128xf32>
    %71 = tpu.reciprocal %70 {approx = true} : vector<64x128xf32> -> vector<64x128xf32>
    %72 = arith.mulf %68, %71 : vector<64x128xf32>
    %cst_43 = arith.constant 2.000000e+01 : f32
    %73 = vector.broadcast %cst_43 : f32 to vector<64x128xf32>
    %74 = arith.cmpf ogt, %61, %73 : vector<64x128xf32>
    %75 = arith.select %74, %61, %72 : vector<64x128xi1>, vector<64x128xf32>
    %76 = arith.truncf %75 : vector<64x128xf32> to vector<64x128xbf16>
    %c0_44 = arith.constant 0 : index
    %c0_45 = arith.constant 0 : index
    %77 = vector.load %arg5[%c0_44, %c0_45] : memref<64x128xbf16, #tpu.memory_space<vmem>>, vector<64x128xbf16>
    tpu.vector_store %arg5[%c0_44, %c0_45], %76 {strides = array<i32>} : memref<64x128xbf16, #tpu.memory_space<vmem>>, vector<64x128xbf16>,
    return
  }
  func.func @transform_0(%arg0: i32, %arg1: i32) -> (i32, i32, i32, i32) {
    %c0_i32 = arith.constant 0 : i32
    %c0_i32_0 = arith.constant 0 : i32
    %c0_i32_1 = arith.constant 0 : i32
    %c0_i32_2 = arith.constant 0 : i32
    return %arg0, %c0_i32, %c0_i32_0, %c0_i32_1 : i32, i32, i32, i32
  }
  func.func @transform_1(%arg0: i32, %arg1: i32) -> (i32, i32, i32) {
    %c0_i32 = arith.constant 0 : i32
    %c0_i32_0 = arith.constant 0 : i32
    %c0_i32_1 = arith.constant 0 : i32
    return %c0_i32, %c0_i32_0, %arg1 : i32, i32, i32
  }
  func.func @transform_2(%arg0: i32, %arg1: i32) -> (i32, i32) {
    %c0_i32 = arith.constant 0 : i32
    %c0_i32_0 = arith.constant 0 : i32
    return %c0_i32, %arg1 : i32, i32
  }
  func.func @transform_3(%arg0: i32, %arg1: i32) -> (i32, i32) {
    %c0_i32 = arith.constant 0 : i32
    return %arg0, %arg1 : i32, i32
  }
}

module attributes {stable_mosaic.version = 11 : i64} {
  func.func @_conv3_conv4_kernel(%arg0: i32, %arg1: i32, %arg2: memref<128x128xbf16, #tpu.memory_space<vmem>>, %arg3: memref<128x128xbf16, #tpu.memory_space<vmem>>, %arg4: memref<1x128xf32, #tpu.memory_space<vmem>>, %arg5: memref<128x128xbf16, #tpu.memory_space<vmem>>, %arg6: memref<128x128xbf16, #tpu.memory_space<vmem>>, %arg7: memref<128x128xbf16, #tpu.memory_space<vmem>>, %arg8: memref<1x128xf32, #tpu.memory_space<vmem>>, %arg9: memref<128x128xbf16, #tpu.memory_space<vmem>>, %arg10: memref<128x128xbf16, #tpu.memory_space<vmem>>) attributes {dimension_semantics = [#tpu.dimension_semantics<parallel>, #tpu.dimension_semantics<arbitrary>], iteration_bounds = array<i64: 1, 1>, scalar_prefetch = 0 : i64, scratch_operands = 1 : i64, tpu.core_type = #tpu.core_type<tc>, window_params = [{transform_indices = @transform_0, window_bounds = array<i64: 128, 128>}, {pipeline_mode = #tpu.pipeline_mode<synchronous>, transform_indices = @transform_1, window_bounds = array<i64: 128, 128>}, {pipeline_mode = #tpu.pipeline_mode<synchronous>, transform_indices = @transform_2, window_bounds = array<i64: 1, 128>}, {transform_indices = @transform_3, window_bounds = array<i64: 128, 128>}, {transform_indices = @transform_4, window_bounds = array<i64: 128, 128>}, {transform_indices = @transform_5, window_bounds = array<i64: 128, 128>}, {transform_indices = @transform_6, window_bounds = array<i64: 1, 128>}, {transform_indices = @transform_7, window_bounds = array<i64: 128, 128>}]} {
    %c0_i32 = arith.constant 0 : i32
    %0 = arith.cmpi eq, %arg1, %c0_i32 : i32
    %1 = arith.extui %0 : i1 to i32
    %c0_i32_0 = arith.constant 0 : i32
    %2 = arith.cmpi ne, %1, %c0_i32_0 : i32
    scf.if %2 {
      %c0_17 = arith.constant 0 : index
      %c0_18 = arith.constant 0 : index
      %29 = vector.load %arg2[%c0_17, %c0_18] : memref<128x128xbf16, #tpu.memory_space<vmem>>, vector<128x128xbf16>
      %c0_19 = arith.constant 0 : index
      %c0_20 = arith.constant 0 : index
      %30 = vector.load %arg3[%c0_19, %c0_20] : memref<128x128xbf16, #tpu.memory_space<vmem>>, vector<128x128xbf16>
      %cst_21 = arith.constant dense<0.000000e+00> : vector<128x128xf32>
      %31 = tpu.matmul %29, %30, %cst_21 {dimension_numbers = #tpu.dot_dimension_numbers<[1], [0], [0], [1], [0, 0, 1, 1], [], []>} : vector<128x128xbf16>, vector<128x128xbf16>, vector<128x128xf32> -> vector<128x128xf32>
      %c0_22 = arith.constant 0 : index
      %c0_23 = arith.constant 0 : index
      %32 = vector.load %arg4[%c0_22, %c0_23] : memref<1x128xf32, #tpu.memory_space<vmem>>, vector<1x128xf32>
      %33 = vector.broadcast %32 : vector<1x128xf32> to vector<128x128xf32>
      %34 = arith.addf %31, %33 : vector<128x128xf32>
      %cst_24 = arith.constant 2.000000e+01 : f32
      %35 = vector.broadcast %cst_24 : f32 to vector<128x128xf32>
      %36 = arith.minimumf %34, %35 : vector<128x128xf32>
      %37 = math.exp %36 : vector<128x128xf32>
      %cst_25 = arith.constant 2.000000e+00 : f32
      %38 = vector.broadcast %cst_25 : f32 to vector<128x128xf32>
      %39 = arith.addf %37, %38 : vector<128x128xf32>
      %40 = arith.mulf %37, %39 : vector<128x128xf32>
      %41 = arith.mulf %34, %40 : vector<128x128xf32>
      %cst_26 = arith.constant 2.000000e+00 : f32
      %42 = vector.broadcast %cst_26 : f32 to vector<128x128xf32>
      %43 = arith.addf %40, %42 : vector<128x128xf32>
      %44 = tpu.reciprocal %43 {approx = true} : vector<128x128xf32> -> vector<128x128xf32>
      %45 = arith.mulf %41, %44 : vector<128x128xf32>
      %cst_27 = arith.constant 2.000000e+01 : f32
      %46 = vector.broadcast %cst_27 : f32 to vector<128x128xf32>
      %47 = arith.cmpf ogt, %34, %46 : vector<128x128xf32>
      %48 = arith.select %47, %34, %45 : vector<128x128xi1>, vector<128x128xf32>
      %49 = arith.truncf %48 : vector<128x128xf32> to vector<128x128xbf16>
      %c0_28 = arith.constant 0 : index
      %c0_29 = arith.constant 0 : index
      %50 = vector.load %arg10[%c0_28, %c0_29] : memref<128x128xbf16, #tpu.memory_space<vmem>>, vector<128x128xbf16>
      tpu.vector_store %arg10[%c0_28, %c0_29], %49 {strides = array<i32>} : memref<128x128xbf16, #tpu.memory_space<vmem>>, vector<128x128xbf16>,
    } else {
    }
    %c0 = arith.constant 0 : index
    %c0_1 = arith.constant 0 : index
    %3 = vector.load %arg10[%c0, %c0_1] : memref<128x128xbf16, #tpu.memory_space<vmem>>, vector<128x128xbf16>
    %c0_2 = arith.constant 0 : index
    %c0_3 = arith.constant 0 : index
    %4 = vector.load %arg6[%c0_2, %c0_3] : memref<128x128xbf16, #tpu.memory_space<vmem>>, vector<128x128xbf16>
    %cst = arith.constant dense<0.000000e+00> : vector<128x128xf32>
    %5 = tpu.matmul %3, %4, %cst {dimension_numbers = #tpu.dot_dimension_numbers<[1], [0], [0], [1], [0, 0, 1, 1], [], []>} : vector<128x128xbf16>, vector<128x128xbf16>, vector<128x128xf32> -> vector<128x128xf32>
    %c0_4 = arith.constant 0 : index
    %c0_5 = arith.constant 0 : index
    %6 = vector.load %arg5[%c0_4, %c0_5] : memref<128x128xbf16, #tpu.memory_space<vmem>>, vector<128x128xbf16>
    %c0_6 = arith.constant 0 : index
    %c0_7 = arith.constant 0 : index
    %7 = vector.load %arg7[%c0_6, %c0_7] : memref<128x128xbf16, #tpu.memory_space<vmem>>, vector<128x128xbf16>
    %cst_8 = arith.constant dense<0.000000e+00> : vector<128x128xf32>
    %8 = tpu.matmul %6, %7, %cst_8 {dimension_numbers = #tpu.dot_dimension_numbers<[1], [0], [0], [1], [0, 0, 1, 1], [], []>} : vector<128x128xbf16>, vector<128x128xbf16>, vector<128x128xf32> -> vector<128x128xf32>
    %9 = arith.addf %5, %8 : vector<128x128xf32>
    %c0_9 = arith.constant 0 : index
    %c0_10 = arith.constant 0 : index
    %10 = vector.load %arg8[%c0_9, %c0_10] : memref<1x128xf32, #tpu.memory_space<vmem>>, vector<1x128xf32>
    %11 = vector.broadcast %10 : vector<1x128xf32> to vector<128x128xf32>
    %12 = arith.addf %9, %11 : vector<128x128xf32>
    %cst_11 = arith.constant 2.000000e+01 : f32
    %13 = vector.broadcast %cst_11 : f32 to vector<128x128xf32>
    %14 = arith.minimumf %12, %13 : vector<128x128xf32>
    %15 = math.exp %14 : vector<128x128xf32>
    %cst_12 = arith.constant 2.000000e+00 : f32
    %16 = vector.broadcast %cst_12 : f32 to vector<128x128xf32>
    %17 = arith.addf %15, %16 : vector<128x128xf32>
    %18 = arith.mulf %15, %17 : vector<128x128xf32>
    %19 = arith.mulf %12, %18 : vector<128x128xf32>
    %cst_13 = arith.constant 2.000000e+00 : f32
    %20 = vector.broadcast %cst_13 : f32 to vector<128x128xf32>
    %21 = arith.addf %18, %20 : vector<128x128xf32>
    %22 = tpu.reciprocal %21 {approx = true} : vector<128x128xf32> -> vector<128x128xf32>
    %23 = arith.mulf %19, %22 : vector<128x128xf32>
    %cst_14 = arith.constant 2.000000e+01 : f32
    %24 = vector.broadcast %cst_14 : f32 to vector<128x128xf32>
    %25 = arith.cmpf ogt, %12, %24 : vector<128x128xf32>
    %26 = arith.select %25, %12, %23 : vector<128x128xi1>, vector<128x128xf32>
    %27 = arith.truncf %26 : vector<128x128xf32> to vector<128x128xbf16>
    %c0_15 = arith.constant 0 : index
    %c0_16 = arith.constant 0 : index
    %28 = vector.load %arg9[%c0_15, %c0_16] : memref<128x128xbf16, #tpu.memory_space<vmem>>, vector<128x128xbf16>
    tpu.vector_store %arg9[%c0_15, %c0_16], %27 {strides = array<i32>} : memref<128x128xbf16, #tpu.memory_space<vmem>>, vector<128x128xbf16>,
    return
  }
  func.func @transform_0(%arg0: i32, %arg1: i32) -> (i32, i32) {
    %c0_i32 = arith.constant 0 : i32
    %c0_i32_0 = arith.constant 0 : i32
    return %arg0, %c0_i32 : i32, i32
  }
  func.func @transform_1(%arg0: i32, %arg1: i32) -> (i32, i32) {
    %c0_i32 = arith.constant 0 : i32
    %c0_i32_0 = arith.constant 0 : i32
    %c0_i32_1 = arith.constant 0 : i32
    return %c0_i32, %c0_i32_0 : i32, i32
  }
  func.func @transform_2(%arg0: i32, %arg1: i32) -> (i32, i32) {
    %c0_i32 = arith.constant 0 : i32
    %c0_i32_0 = arith.constant 0 : i32
    %c0_i32_1 = arith.constant 0 : i32
    return %c0_i32, %c0_i32_0 : i32, i32
  }
  func.func @transform_3(%arg0: i32, %arg1: i32) -> (i32, i32) {
    %c0_i32 = arith.constant 0 : i32
    %c0_i32_0 = arith.constant 0 : i32
    return %arg0, %c0_i32 : i32, i32
  }
  func.func @transform_4(%arg0: i32, %arg1: i32) -> (i32, i32) {
    %c0_i32 = arith.constant 0 : i32
    %c0_i32_0 = arith.constant 0 : i32
    return %c0_i32, %arg1 : i32, i32
  }
  func.func @transform_5(%arg0: i32, %arg1: i32) -> (i32, i32) {
    %c0_i32 = arith.constant 0 : i32
    %c0_i32_0 = arith.constant 0 : i32
    return %c0_i32, %arg1 : i32, i32
  }
  func.func @transform_6(%arg0: i32, %arg1: i32) -> (i32, i32) {
    %c0_i32 = arith.constant 0 : i32
    %c0_i32_0 = arith.constant 0 : i32
    return %c0_i32, %arg1 : i32, i32
  }
  func.func @transform_7(%arg0: i32, %arg1: i32) -> (i32, i32) {
    %c0_i32 = arith.constant 0 : i32
    return %arg0, %arg1 : i32, i32
  }
}

</mosaic_0001>

<bundles_post_ra>
// kernel: cspdarknet_block_forward.10
= control target key start
LH: loop header
LB: loop body
LE: loop exit
PB: predicated region body
PF: predicated region fallthrough
CT: control target
= control target key end

     0   :  { %s1075_s1 = inlined_call_operand.vmem [shape: bf16[128,128], index: 1, kind: input, shape index: {}]   ;;  %s1076_s0 = inlined_call_operand.vmem [shape: bf16[128,128], index: 0, kind: input, shape index: {}]   ;;  %s1077_s2 = inlined_call_operand.vmem [shape: f32[1,128], index: 2, kind: input, shape index: {}]   ;;  %s1078_s3 = inlined_call_operand.vmem [shape: bf16[128,128], index: 3, kind: output, shape index: {}]  }
   0x1   :  { %v770_v0 = vld [vmem:[%s1075_s1] sm:$0xff]   ;;  %v771_v1 = vld [vmem:[%s1075_s1 + $0x8] sm:$0xff]   ;;  %v772_v2 = vld [vmem:[%s1075_s1 + $0x10] sm:$0xff]  }
   0x2   :  { %722 = vmatprep.subr.bf16.mxu0 %v770_v0  ;;  %754 = vmatprep.subr.bf16.mxu1 %v770_v0  ;;  %v773_v3 = vld [vmem:[%s1075_s1 + $0x18] sm:$0xff]   ;;  %v778_v4 = vld [vmem:[%s1076_s0] sm:$0xff]   ;;  %v775_v7 = vld [vmem:[%s1075_s1 + $0x28] sm:$0xff]  }
   0x3   :  { %723 = vmatpush3.bf16.msra.mxu0 %v770_v0  ;;  %762 = vmatpush3.bf16.msra.mxu1 %v770_v0  ;;  %v779_v5 = vld [vmem:[%s1076_s0 + $0x20] sm:$0xff]   ;;  %v776_v8 = vld [vmem:[%s1075_s1 + $0x30] sm:$0xff]   ;;  %v777_v9 = vld [vmem:[%s1075_s1 + $0x38] sm:$0xff]  }
   0x4   :  { %724 = vmatprep.subr.bf16.mxu0 %v771_v1  ;;  %755 = vmatprep.subr.bf16.mxu1 %v771_v1  ;;  %v774_v6 = vld [vmem:[%s1075_s1 + $0x20] sm:$0xff]   ;;  %v780_v10 = vld [vmem:[%s1076_s0 + $0x8] sm:$0xff]   ;;  %v782_v12 = vld [vmem:[%s1076_s0 + $0x10] sm:$0xff]  }
   0x5   :  { %738 = vmatprep.mubr.bf16.mxu0 %v778_v4  ;;  %746 = vmatprep.mubr.bf16.mxu1 %v779_v5  ;;  %v781_v11 = vld [vmem:[%s1076_s0 + $0x28] sm:$0xff]   ;;  %v783_v13 = vld [vmem:[%s1076_s0 + $0x30] sm:$0xff]   ;;  %v784_v14 = vld [vmem:[%s1076_s0 + $0x18] sm:$0xff]  }
   0x6   :  { %v785_v15 = vld [vmem:[%s1076_s0 + $0x38] sm:$0xff]   ;;  %v921_v16 = vld [vmem:[%s1077_s2] ss:$0 sm:$0xff] }
   0x7   :  { %725 = vmatpush3.bf16.msra.mxu0 %v771_v1  ;;  %763 = vmatpush3.bf16.msra.mxu1 %v771_v1 }
   0x8   :  { %726 = vmatprep.subr.bf16.mxu0 %v772_v2  ;;  %756 = vmatprep.subr.bf16.mxu1 %v772_v2 }
   0xb   :  { %727 = vmatpush3.bf16.msra.mxu0 %v772_v2  ;;  %764 = vmatpush3.bf16.msra.mxu1 %v772_v2 }
   0xc   :  { %728 = vmatprep.subr.bf16.mxu0 %v773_v3  ;;  %757 = vmatprep.subr.bf16.mxu1 %v773_v3 }
   0xf   :  { %729 = vmatpush3.bf16.msra.mxu0 %v773_v3  ;;  %765 = vmatpush3.bf16.msra.mxu1 %v773_v3 }
  0x10   :  { %730 = vmatprep.subr.bf16.mxu0 %v774_v6  ;;  %758 = vmatprep.subr.bf16.mxu1 %v774_v6 }
  0x13   :  { %731 = vmatpush3.bf16.msra.mxu0 %v774_v6  ;;  %766 = vmatpush3.bf16.msra.mxu1 %v774_v6 }
  0x14   :  { %732 = vmatprep.subr.bf16.mxu0 %v775_v7  ;;  %759 = vmatprep.subr.bf16.mxu1 %v775_v7 }
  0x17   :  { %733 = vmatpush3.bf16.msra.mxu0 %v775_v7  ;;  %767 = vmatpush3.bf16.msra.mxu1 %v775_v7 }
  0x18   :  { %734 = vmatprep.subr.bf16.mxu0 %v776_v8  ;;  %760 = vmatprep.subr.bf16.mxu1 %v776_v8 }
  0x1b   :  { %735 = vmatpush3.bf16.msra.mxu0 %v776_v8  ;;  %768 = vmatpush3.bf16.msra.mxu1 %v776_v8 }
  0x1c   :  { %736 = vmatprep.subr.bf16.mxu0 %v777_v9  ;;  %761 = vmatprep.subr.bf16.mxu1 %v777_v9 }
  0x1f   :  { %737 = vmatpush3.bf16.msra.mxu0 %v777_v9  ;;  %769 = vmatpush3.bf16.msra.mxu1 %v777_v9 }
  0x22   :  { %739 = vmatmul.mubr.bf16.vlgmr.msra.gmra.mrb[0].mxu0 %v780_v10  ;;  %747 = vmatmul.mubr.bf16.vlgmr.msra.gmra.mrb[0].mxu1 %v781_v11 }
  0x23   :  { %742 = vmatprep.mubr.bf16.mxu0 %v782_v12  ;;  %750 = vmatprep.mubr.bf16.mxu1 %v783_v13 }
  0x2a   :  { %743 = vmatmul.mubr.bf16.gmra.mrb[4].mxu0 %v784_v14  ;;  %751 = vmatmul.mubr.bf16.gmra.mrb[4].mxu1 %v785_v15 }
  0xf5   :  { %v740_v17 = vpop.f32.mrb[0].mxu0  ;;  %v748_v18 = vpop.f32.mrb[0].mxu1 }
  0xf6   :  { %v924_v19 = vadd.f32 %v740_v17, %v921_v16  ;;  %v927_v20 = vadd.f32 %v748_v18, %v921_v16  ;;  %v213_v21 = vpop.f32.mrb[1].mxu0  ;;  %v245_v22 = vpop.f32.mrb[1].mxu1 }
  0xf7   :  { %v930_v23 = vadd.f32 %v921_v16, %v213_v21  ;;  %v933_v24 = vadd.f32 %v921_v16, %v245_v22  ;;  %v741_v25 = vpop.f32.mrb[2].mxu0  ;;  %v749_v26 = vpop.f32.mrb[2].mxu1 }
  0xf8   :  { %v352_v27 = vmin.f32 %v924_v19, 20.0  ;;  %v360_v28 = vmin.f32 %v927_v20, 20.0  ;;  %v216_v29 = vpop.f32.mrb[3].mxu0  ;;  %v248_v30 = vpop.f32.mrb[3].mxu1  ;;  %v940_v35 = vadd.f32 %v741_v25, %v921_v16  ;;  %v943_v36 = vadd.f32 %v749_v26, %v921_v16 }
  0xf9   :  { %v350_v31 = vmin.f32 %v930_v23, 20.0  ;;  %v358_v32 = vmin.f32 %v933_v24, 20.0  ;;  %v946_v39 = vadd.f32 %v921_v16, %v216_v29  ;;  %v949_v40 = vadd.f32 %v921_v16, %v248_v30 }
  0xfa   :  { %v370_v33 = vmul.f32 1.442695, %v352_v27  ;;  %v386_v34 = vmul.f32 1.442695, %v360_v28  ;;  %v353_v41 = vmin.f32 %v940_v35, 20.0  ;;  %v361_v42 = vmin.f32 %v943_v36, 20.0 }
  0xfb   :  { %v366_v37 = vmul.f32 1.442695, %v350_v31  ;;  %v382_v38 = vmul.f32 1.442695, %v358_v32  ;;  %v351_v43 = vmin.f32 %v946_v39, 20.0  ;;  %v359_v48 = vmin.f32 %v949_v40, 20.0 }
  0xfc   :  { %786 = vpow2.f32 %v370_v33  ;;  %v372_v46 = vmul.f32 1.442695, %v353_v41  ;;  %v388_v47 = vmul.f32 1.442695, %v361_v42  ;;  %vm496_vm0 = vcmp.gt.f32.partialorder %v924_v19, 20.0 }
  0xfd   :  { %788 = vpow2.f32 %v386_v34  ;;  %v744_v44 = vpop.f32.mrb[4].mxu0  ;;  %v752_v45 = vpop.f32.mrb[4].mxu1  ;;  %v368_v50 = vmul.f32 1.442695, %v351_v43  ;;  %v384_v54 = vmul.f32 1.442695, %v359_v48 }
  0xfe   :  { %790 = vpow2.f32 %v366_v37  ;;  %v229_v49 = vpop.f32.mrb[5].mxu0  ;;  %v956_v51 = vadd.f32 %v744_v44, %v921_v16  ;;  %v261_v52 = vpop.f32.mrb[5].mxu1  ;;  %v959_v55 = vadd.f32 %v752_v45, %v921_v16  ;;  %vm504_vm1 = vcmp.gt.f32.partialorder %v927_v20, 20.0 }
  0xff   :  { %792 = vpow2.f32 %v382_v38  ;;  %v745_v53 = vpop.f32.mrb[6].mxu0  ;;  %v962_v56 = vadd.f32 %v921_v16, %v229_v49  ;;  %v753_v57 = vpop.f32.mrb[6].mxu1  ;;  %v971_v2 = vadd.f32 %v921_v16, %v261_v52  ;;  %vm497_vm2 = vcmp.gt.f32.partialorder %v940_v35, 20.0 }
 0x100   :  { %794 = vpow2.f32 %v372_v46  ;;  %v232_v58 = vpop.f32.mrb[7].mxu0  ;;  %v356_v59 = vmin.f32 %v956_v51, 20.0  ;;  %v264_v60 = vpop.f32.mrb[7].mxu1  ;;  %v364_v62 = vmin.f32 %v959_v55, 20.0  ;;  %v968_v0 = vadd.f32 %v745_v53, %v921_v16 }
 0x101   :  { %796 = vpow2.f32 %v388_v47  ;;  %v354_v63 = vmin.f32 %v962_v56, 20.0  ;;  %v362_v18 = vmin.f32 %v971_v2, 20.0  ;;  %v976_v38 = vadd.f32 %v753_v57, %v921_v16 }
 0x102   :  { %798 = vpow2.f32 %v368_v50  ;;  %v378_v61 = vmul.f32 1.442695, %v356_v59  ;;  %v357_v3 = vmin.f32 %v968_v0, 20.0  ;;  %v394_v6 = vmul.f32 1.442695, %v364_v62 }
 0x103   :  { %800 = vpow2.f32 %v384_v54  ;;  %v374_v9 = vmul.f32 1.442695, %v354_v63  ;;  %v390_v44 = vmul.f32 1.442695, %v362_v18  ;;  %v979_v49 = vadd.f32 %v921_v16, %v232_v58 }
 0x104   :  { %802 = vpow2.f32 %v378_v61  ;;  %v380_v10 = vmul.f32 1.442695, %v357_v3  ;;  %v365_v52 = vmin.f32 %v976_v38, 20.0  ;;  %v985_v57 = vadd.f32 %v921_v16, %v264_v60 }
 0x105   :  { %v355_v58 = vmin.f32 %v979_v49, 20.0  ;;  %vm505_vm3 = vcmp.gt.f32.partialorder %v943_v36, 20.0  ;;  %vm494_vm4 = vcmp.gt.f32.partialorder %v930_v23, 20.0  ;;  %vm502_vm5 = vcmp.gt.f32.partialorder %v933_v24, 20.0 }
 0x106   :  { %v787_v1 = vpop.eup %786  ;;  %804 = vpow2.f32 %v380_v10  ;;  %v396_v3 = vmul.f32 1.442695, %v365_v52  ;;  %v363_v60 = vmin.f32 %v985_v57, 20.0  ;;  %vm495_vm6 = vcmp.gt.f32.partialorder %v946_v39, 20.0 }
 0x107   :  { %v789_v4 = vpop.eup %788  ;;  %v400_v5 = vadd.f32 2.0, %v787_v1  ;;  %806 = vpow2.f32 %v394_v6  ;;  %vm503_vm7 = vcmp.gt.f32.partialorder %v949_v40, 20.0  ;;  %vm500_vm8 = vcmp.gt.f32.partialorder %v956_v51, 20.0 }
 0x108   :  { %v791_v7 = vpop.eup %790  ;;  %v408_v8 = vadd.f32 2.0, %v789_v4  ;;  %808 = vpow2.f32 %v374_v9  ;;  %vm501_vm9 = vcmp.gt.f32.partialorder %v968_v0, 20.0  ;;  %vm508_vm10 = vcmp.gt.f32.partialorder %v959_v55, 20.0 }
 0x109   :  { %v793_v11 = vpop.eup %792  ;;  %v416_v12 = vmul.f32 %v787_v1, %v400_v5  ;;  %v398_v13 = vadd.f32 2.0, %v791_v7  ;;  %vm509_vm11 = vcmp.gt.f32.partialorder %v976_v38, 20.0  ;;  %vm498_vm12 = vcmp.gt.f32.partialorder %v962_v56, 20.0 }
 0x10a   :  { %v795_v14 = vpop.eup %794  ;;  %v424_v15 = vmul.f32 %v789_v4, %v408_v8  ;;  %v406_v17 = vadd.f32 2.0, %v793_v11  ;;  %vm499_vm13 = vcmp.gt.f32.partialorder %v979_v49, 20.0  ;;  %vm506_vm14 = vcmp.gt.f32.partialorder %v971_v2, 20.0 }
 0x10b   :  { %v797_v21 = vpop.eup %796  ;;  %v448_v22 = vadd.f32 2.0, %v416_v12  ;;  %v414_v25 = vmul.f32 %v791_v7, %v398_v13  ;;  %v401_v26 = vadd.f32 2.0, %v795_v14  ;;  %v432_v5 = vmul.f32 %v416_v12, %v924_v19 }
 0x10c   :  { %v799_v27 = vpop.eup %798  ;;  %v456_v28 = vadd.f32 2.0, %v424_v15  ;;  %v422_v29 = vmul.f32 %v793_v11, %v406_v17  ;;  %v409_v30 = vadd.f32 2.0, %v797_v21  ;;  %v440_v7 = vmul.f32 %v424_v15, %v927_v20 }
 0x10d   :  { %v801_v31 = vpop.eup %800  ;;  %810 = vrcp.f32 %v448_v22  ;;  %v446_v32 = vadd.f32 2.0, %v414_v25  ;;  %v417_v33 = vmul.f32 %v795_v14, %v401_v26  ;;  %v399_v43 = vadd.f32 2.0, %v799_v27 }
 0x10e   :  { %812 = vrcp.f32 %v456_v28  ;;  %v454_v34 = vadd.f32 2.0, %v422_v29  ;;  %v425_v37 = vmul.f32 %v797_v21, %v409_v30  ;;  %v803_v41 = vpop.eup %802  ;;  %v407_v46 = vadd.f32 2.0, %v801_v31 }
 0x10f   :  { %814 = vrcp.f32 %v446_v32  ;;  %v449_v42 = vadd.f32 2.0, %v417_v33  ;;  %v415_v47 = vmul.f32 %v799_v27, %v399_v43  ;;  %v404_v48 = vadd.f32 2.0, %v803_v41 }
 0x110   :  { %816 = vrcp.f32 %v454_v34  ;;  %v457_v45 = vadd.f32 2.0, %v425_v37  ;;  %v423_v50 = vmul.f32 %v801_v31, %v407_v46  ;;  %v805_v59 = vpop.eup %804  ;;  %v430_v11 = vmul.f32 %v414_v25, %v930_v23 }
 0x111   :  { %818 = vrcp.f32 %v449_v42  ;;  %v447_v53 = vadd.f32 2.0, %v415_v47  ;;  %v982_v54 = vmul.f32 %v803_v41, %v404_v48  ;;  %v807_v62 = vpop.eup %806  ;;  %v405_v16 = vadd.f32 2.0, %v805_v59 }
 0x112   :  { %820 = vrcp.f32 %v457_v45  ;;  %v455_v61 = vadd.f32 2.0, %v423_v50  ;;  %v809_v1 = vpop.eup %808  ;;  %v412_v8 = vadd.f32 2.0, %v807_v62  ;;  %v376_v13 = vmul.f32 1.442695, %v355_v58 }
 0x113   :  { %822 = vpow2.f32 %v390_v44  ;;  %v452_v63 = vadd.f32 2.0, %v982_v54  ;;  %v433_v17 = vmul.f32 %v417_v33, %v940_v35  ;;  %v421_v18 = vmul.f32 %v805_v59, %v405_v16 }
 0x114   :  { %824 = vrcp.f32 %v447_v53  ;;  %v438_v15 = vmul.f32 %v422_v29, %v933_v24  ;;  %v441_v22 = vmul.f32 %v425_v37, %v943_v36  ;;  %v402_v26 = vadd.f32 2.0, %v809_v1 }
 0x115   :  { %826 = vrcp.f32 %v455_v61  ;;  %v392_v27 = vmul.f32 1.442695, %v363_v60  ;;  %v431_v31 = vmul.f32 %v415_v47, %v946_v39  ;;  %v1001_v25 = vmul.f32 %v807_v62, %v412_v8 }
 0x116   :  { %828 = vrcp.f32 %v452_v63  ;;  %v453_v32 = vadd.f32 2.0, %v421_v18  ;;  %v439_v42 = vmul.f32 %v423_v50, %v949_v40  ;;  %v418_v53 = vmul.f32 %v809_v1, %v402_v26 }
 0x117   :  { %v811_v4 = vpop.eup %810  ;;  %830 = vpow2.f32 %v396_v3  ;;  %v460_v58 = vadd.f32 2.0, %v1001_v25  ;;  %v437_v16 = vmul.f32 %v421_v18, %v968_v0  ;;  %v444_v26 = vmul.f32 %v1001_v25, %v959_v55 }
 0x118   :  { %v813_v6 = vpop.eup %812  ;;  %v480_v10 = vmul.f32 %v811_v4, %v432_v5  ;;  %832 = vpow2.f32 %v376_v13  ;;  %vm507_vm15 = vcmp.gt.f32.partialorder %v985_v57, 20.0 }
 0x119   :  { %v815_v9 = vpop.eup %814  ;;  %v488_v14 = vmul.f32 %v813_v6, %v440_v7  ;;  %834 = vrcp.f32 %v453_v32 }
 0x11a   :  { %v817_v12 = vpop.eup %816  ;;  %v512_v33 = vsel %vm496_vm0, %v924_v19, %v480_v10  ;;  %v478_v37 = vmul.f32 %v815_v9, %v430_v11  ;;  %836 = vpow2.f32 %v392_v27 }
 0x11b   :  { %v819_v21 = vpop.eup %818  ;;  %v520_v29 = vsel %vm504_vm1, %v927_v20, %v488_v14  ;;  %v486_v45 = vmul.f32 %v817_v12, %v438_v15  ;;  %838 = vrcp.f32 %v460_v58 }
 0x11c   :  { %v821_v28 = vpop.eup %820  ;;  %v481_v30 = vmul.f32 %v819_v21, %v433_v17 }
 0x11d   :  { %v823_v34 = vpop.eup %822  ;;  %v489_v41 = vmul.f32 %v821_v28, %v441_v22  ;;  %v518_v61 = vsel %vm502_vm5, %v933_v24, %v486_v45  ;;  %v450_v24 = vadd.f32 2.0, %v418_v53 }
 0x11e   :  { %v513_v43 = vsel %vm497_vm2, %v940_v35, %v481_v30  ;;  %v825_v44 = vpop.eup %824  ;;  %v410_v52 = vadd.f32 2.0, %v823_v34  ;;  %v510_v35 = vsel %vm494_vm4, %v930_v23, %v478_v37  ;;  %v434_v30 = vmul.f32 %v418_v53, %v962_v56 }
 0x11f   :  { %v667_v46 = vpack.c.bf16 %v513_v43, %v512_v33  ;;  %v521_v19 = vsel %vm505_vm3, %v943_v36, %v489_v41  ;;  %v827_v47 = vpop.eup %826  ;;  %v479_v50 = vmul.f32 %v825_v44, %v431_v31  ;;  %840 = vrcp.f32 %v450_v24 }
 0x120   :  { %v687_v48 = vpack.c.bf16 %v521_v19, %v520_v29  ;;  %v487_v20 = vmul.f32 %v827_v47, %v439_v42  ;;  %v829_v59 = vpop.eup %828  ;;  %v426_v23 = vmul.f32 %v823_v34, %v410_v52 }
 0x121   :  { %699 = vst [vmem:[%s1078_s3 + $0x8] sm:$0xff] %v667_v46   ;;  %v511_v36 = vsel %vm495_vm6, %v946_v39, %v479_v50  ;;  %v831_v3 = vpop.eup %830  ;;  %v436_v39 = vmul.f32 %v982_v54, %v956_v51 }
 0x122   :  { %703 = vst [vmem:[%s1078_s3 + $0x28] sm:$0xff] %v687_v48   ;;  %v662_v62 = vpack.c.bf16 %v511_v36, %v510_v35  ;;  %v519_v63 = vsel %vm503_vm7, %v949_v40, %v487_v20  ;;  %v413_v5 = vadd.f32 2.0, %v831_v3  ;;  %v833_v1 = vpop.eup %832  ;;  %v458_v7 = vadd.f32 2.0, %v426_v23 }
 0x123   :  { %v682_v4 = vpack.c.bf16 %v519_v63, %v518_v61  ;;  %v484_v40 = vmul.f32 %v829_v59, %v436_v39  ;;  %v835_v6 = vpop.eup %834  ;;  %v403_v8 = vadd.f32 2.0, %v833_v1  ;;  %v442_v33 = vmul.f32 %v426_v23, %v971_v2 }
 0x124   :  { %663 = vst [vmem:[%s1078_s3] sm:$0xff] %v662_v62   ;;  %v429_v60 = vmul.f32 %v831_v3, %v413_v5  ;;  %v837_v9 = vpop.eup %836  ;;  %v485_v10 = vmul.f32 %v835_v6, %v437_v16 }
 0x125   :  { %702 = vst [vmem:[%s1078_s3 + $0x20] sm:$0xff] %v682_v4   ;;  %v419_v11 = vmul.f32 %v833_v1, %v403_v8  ;;  %v411_v13 = vadd.f32 2.0, %v837_v9  ;;  %v516_v12 = vsel %vm500_vm8, %v956_v51, %v484_v40  ;;  %v839_v22 = vpop.eup %838 }
 0x126   :  { %v461_v54 = vadd.f32 2.0, %v429_v60  ;;  %v517_v14 = vsel %vm501_vm9, %v968_v0, %v485_v10  ;;  %v492_v51 = vmul.f32 %v839_v22, %v444_v26  ;;  %v445_v0 = vmul.f32 %v429_v60, %v976_v38 }
 0x127   :  { %v677_v17 = vpack.c.bf16 %v517_v14, %v516_v12  ;;  %v451_v18 = vadd.f32 2.0, %v419_v11  ;;  %v427_v21 = vmul.f32 %v837_v9, %v411_v13  ;;  %v435_v41 = vmul.f32 %v419_v11, %v979_v49 }
 0x128   :  { %842 = vrcp.f32 %v461_v54  ;;  %v524_v25 = vsel %vm508_vm10, %v959_v55, %v492_v51 }
 0x129   :  { %844 = vrcp.f32 %v458_v7  ;;  %701 = vst [vmem:[%s1078_s3 + $0x18] sm:$0xff] %v677_v17   ;;  %v459_v15 = vadd.f32 2.0, %v427_v21  ;;  %v841_v27 = vpop.eup %840  ;;  %v443_v45 = vmul.f32 %v427_v21, %v985_v57 }
 0x12a   :  { %846 = vrcp.f32 %v451_v18  ;;  %v482_v34 = vmul.f32 %v841_v27, %v434_v30 }
 0x12b   :  { %848 = vrcp.f32 %v459_v15 }
 0x12c   :  { %v514_v19 = vsel %vm498_vm12, %v962_v56, %v482_v34 }
 0x132   :  { %v843_v28 = vpop.eup %842 }
 0x133   :  { %v845_v31 = vpop.eup %844  ;;  %v493_v32 = vmul.f32 %v843_v28, %v445_v0 }
 0x134   :  { %v847_v42 = vpop.eup %846  ;;  %v490_v37 = vmul.f32 %v845_v31, %v442_v33 }
 0x135   :  { %v525_v29 = vsel %vm509_vm11, %v976_v38, %v493_v32  ;;  %v483_v44 = vmul.f32 %v847_v42, %v435_v41  ;;  %v849_v46 = vpop.eup %848 }
 0x136   :  { %v697_v43 = vpack.c.bf16 %v525_v29, %v524_v25  ;;  %v491_v47 = vmul.f32 %v849_v46, %v443_v45  ;;  %v522_v48 = vsel %vm506_vm14, %v971_v2, %v490_v37 }
 0x137   :  { %v515_v55 = vsel %vm499_vm13, %v979_v49, %v483_v44 }
 0x138   :  { %705 = vst [vmem:[%s1078_s3 + $0x38] sm:$0xff] %v697_v43   ;;  %v672_v38 = vpack.c.bf16 %v515_v55, %v514_v19  ;;  %v523_v50 = vsel %vm507_vm15, %v985_v57, %v491_v47 }
 0x139   :  { %v692_v56 = vpack.c.bf16 %v523_v50, %v522_v48 }
 0x13a   :  { %700 = vst [vmem:[%s1078_s3 + $0x10] sm:$0xff] %v672_v38  }
 0x13b   :  { %704 = vst [vmem:[%s1078_s3 + $0x30] sm:$0xff] %v692_v56  }

// kernel: cspdarknet_block_forward.8
= control target key start
LH: loop header
LB: loop body
LE: loop exit
PB: predicated region body
PF: predicated region fallthrough
CT: control target
= control target key end

     0   :  { %s1676_s12 = smov 0   ;;  %s1678_s13 = smov 0   ;;  %s1960_s0 = inlined_call_operand.vmem [shape: bf16[2,9,9,128], index: 0, kind: input, shape index: {}]   ;;  %s1961_s1 = inlined_call_operand.vmem [shape: bf16[4,128,128], index: 1, kind: input, shape index: {}]   ;;  %s1962_s2 = inlined_call_operand.vmem [shape: f32[1,128], index: 2, kind: input, shape index: {}]   ;;  %s1963_s3 = inlined_call_operand.vmem [shape: bf16[128,128], index: 3, kind: output, shape index: {}]  }
   0x1   :  { %s1680_s14 = smov 0  }
   0x2 LB: > { %s25_s15 = sadd.s32 1, %s1650_s13  ;;  %p1225_p0 = scmp.ge.s32.totalorder %s1654_s14, 1  ;;  %s1654_s14 = sphi %s1680_s14, %s13_s14   ;;  %s1650_s13 = sphi %s1678_s13, %s1967_s13   ;;  %s1646_s12 = sphi %s1676_s12, %s1966_s12  }
   0x3   : > { %p27_p1 = scmp.ge.s32.totalorder %s25_s15, 2  ;;  %p168_p2 = scmp.lt.s32.totalorder %s1654_s14, 3 }
   0x5   : > { %s1969_s15 = smov (%p27_p1, %s25_s15), 0  ;;  %p169_p3 = pnand %p1225_p0, %p168_p2 }
   0x6   : > { %v1560_v0 = vld [vmem:[%s1961_s1 + $0x80] sm:$0xff] (!%p169_p3)   ;;  %v1562_v2 = vld [vmem:[%s1961_s1 + $0x88] sm:$0xff] (!%p169_p3)   ;;  %p202_p4 = scmp.lt.s32.totalorder (!%p169_p3), %s1646_s12, 1  ;;  %v1564_v4 = vld [vmem:[%s1961_s1 + $0x90] sm:$0xff] (!%p169_p3)   ;;  %vm544_vm0 = vsmask.f32 (!%p169_p3), 3328 }
   0x7   : > { %172 = sbr.rel (%p169_p3) target bundleno = 337 (0x151), region = 32  ;;  %v1561_v1 = vld [vmem:[%s1961_s1 + $0x40] sm:$0xff] (!%p169_p3)   ;;  %1415 = vmatprep.subr.bf16.mxu1 (!%p169_p3), %v1560_v0  ;;  %v1563_v3 = vld [vmem:[%s1961_s1 + $0x48] sm:$0xff] (!%p169_p3)   ;;  %v1565_v5 = vld [vmem:[%s1961_s1 + $0x50] sm:$0xff] (!%p169_p3)   ;;  %vm545_vm1 = vsmask.f32 (!%p169_p3), 7440 }
   0x8   : > { %1463 = vmatprep.subr.bf16.mxu0 (!%p169_p3), %v1561_v1  ;;  %1416 = vmatpush3.bf16.msra.mxu1 (!%p169_p3), %v1560_v0  ;;  %v1566_v6 = vld [vmem:[%s1961_s1 + $0x98] sm:$0xff] (!%p169_p3)   ;;  %v1568_v8 = vld [vmem:[%s1961_s1 + $0xa0] sm:$0xff] (!%p169_p3)   ;;  %v1570_v10 = vld [vmem:[%s1961_s1 + $0xa8] sm:$0xff] (!%p169_p3)   ;;  %s1227_s19 = sshll.u32 (!%p169_p3), %s1646_s12, 3 }
   0x9   : > { %1464 = vmatpush3.bf16.msra.mxu0 (!%p169_p3), %v1561_v1  ;;  %1417 = vmatprep.subr.bf16.mxu1 (!%p169_p3), %v1562_v2  ;;  %v1567_v7 = vld [vmem:[%s1961_s1 + $0x58] sm:$0xff] (!%p169_p3)   ;;  %v1569_v9 = vld [vmem:[%s1961_s1 + $0x60] sm:$0xff] (!%p169_p3)   ;;  %v1571_v13 = vld [vmem:[%s1961_s1 + $0x68] sm:$0xff] (!%p169_p3)   ;;  %p215_p5 = scmp.lt.s32.totalorder (!%p169_p3), %s1227_s19, 15 }
   0xa   : > { %1465 = vmatprep.subr.bf16.mxu0 (!%p169_p3), %v1563_v3  ;;  %v1572_v20 = vld [vmem:[%s1961_s1 + $0xb0] sm:$0xff] (!%p169_p3)   ;;  %v1574_v34 = vld [vmem:[%s1961_s1 + $0xb8] sm:$0xff] (!%p169_p3)   ;;  %vm1775_vm2 = vmor (!%p169_p3), %vm544_vm0, %vm545_vm1 }
   0xb   : > { %v1573_v21 = vld [vmem:[%s1961_s1 + $0x70] sm:$0xff] (!%p169_p3)   ;;  %v1575_v35 = vld [vmem:[%s1961_s1 + $0x78] sm:$0xff] (!%p169_p3)   ;;  %v1579_v52 = vld [vmem:[%s1961_s1] sm:$0xff] (!%p169_p3)  }
   0xc   : > { %1418 = vmatpush3.bf16.msra.mxu1 (!%p169_p3), %v1562_v2  ;;  %v1580_v61 = vld [vmem:[%s1961_s1 + $0xc0] sm:$0xff] (!%p169_p3)  }
   0xd   : > { %1466 = vmatpush3.bf16.msra.mxu0 (!%p169_p3), %v1563_v3  ;;  %1419 = vmatprep.subr.bf16.mxu1 (!%p169_p3), %v1564_v4 }
   0xe   : > { %s203_s28 = scalar_select %p202_p4, %s1646_s12, 1  ;;  %1467 = vmatprep.subr.bf16.mxu0 %v1565_v5 }
   0xf   : > { %s1971_s19 = smov (!%p215_p5, %s1227_s19), 15 }
  0x10   : > { %1420 = vmatpush3.bf16.msra.mxu1 %v1564_v4  ;;  %s1535_s6 = smul.u32 72, %s203_s28  ;;  %s1228_s12 = sshll.u32 %s1971_s19, 2 }
  0x11   : > { %1468 = vmatpush3.bf16.msra.mxu0 %v1565_v5  ;;  %1421 = vmatprep.subr.bf16.mxu1 %v1566_v6  ;;  %v1582_v5 = vld [vmem:[%s1961_s1 + $0x8] sm:$0xff]   ;;  %s1929_s22 = scalar_lea.vmem %s1963_s3, %s1228_s12 }
  0x12   : > { %1469 = vmatprep.subr.bf16.mxu0 %v1567_v7  ;;  %s1731_s17 = scalar_lea.vmem %s1960_s0, %s1535_s6 }
  0x13   : > { %v1737_v11 = vld [vmem:[%s1731_s17 + $0x8] sm:$0xf]  ;;  %v1740_v12 = vld [vmem:[%s1731_s17 + $0x10] sm:$0xf]  ;;  %v526_v15 = vld [vmem:[%s1731_s17] sm:$0xf] }
  0x14   : > { %1422 = vmatpush3.bf16.msra.mxu1 %v1566_v6  ;;  %v1245_v14 = vcombine.low %v1737_v11, %v1740_v12  ;;  %v527_v16 = vld [vmem:[%s1731_s17 + $0x4] sm:$0x1]  ;;  %v528_v17 = vld [vmem:[%s1731_s17 + $0x8] sm:$0xf]  ;;  %v529_v18 = vld [vmem:[%s1731_s17 + $0xc] sm:$0x1] }
  0x15   : > { %1470 = vmatpush3.bf16.msra.mxu0 %v1567_v7  ;;  %1423 = vmatprep.subr.bf16.mxu1 %v1568_v8  ;;  %v530_v19 = vld [vmem:[%s1731_s17 + $0x10] sm:$0xf]  ;;  %v531_v22 = vld [vmem:[%s1731_s17 + $0x14] sm:$0x1]  ;;  %v548_v23 = vshrl.u32 %v526_v15, 16  ;;  %v551_v24 = vshll.u32 %v526_v15, 16 }
  0x16   : > { %1471 = vmatprep.subr.bf16.mxu0 %v1569_v9  ;;  %1431 = vmatprep.mubr.bf16.mxu1 %v1245_v14  ;;  %v557_v25 = vshll.u32 %v527_v16, 16  ;;  %v562_v26 = vshrl.u32 %v528_v17, 16  ;;  %v565_v27 = vshll.u32 %v528_v17, 16  ;;  %v571_v28 = vshll.u32 %v529_v18, 16  ;;  %v1766_v40 = vld [vmem:[%s1731_s17 + $0x18] sm:$0xf] }
  0x17   : > { %v576_v29 = vshrl.u32 %v530_v19, 16  ;;  %v579_v30 = vshll.u32 %v530_v19, 16  ;;  %v550_v31 = vrot.slane %v548_v23, 4  ;;  %v553_v32 = vrot.slane %v551_v24, 5  ;;  %v1769_v44 = vld [vmem:[%s1731_s17 + $0x20] sm:$0xf] }
  0x18   : > { %1424 = vmatpush3.bf16.msra.mxu1 %v1568_v8  ;;  %v564_v33 = vrot.slane %v562_v26, 4  ;;  %v559_v36 = vrot.slane %v557_v25, 5  ;;  %v567_v37 = vrot.slane %v565_v27, 5  ;;  %v573_v42 = vrot.slane %v571_v28, 5  ;;  %v532_v45 = vld [vmem:[%s1731_s17 + $0x18] sm:$0xf] }
  0x19   : > { %1472 = vmatpush3.bf16.msra.mxu0 %v1569_v9  ;;  %1425 = vmatprep.subr.bf16.mxu1 %v1570_v10  ;;  %v578_v38 = vrot.slane %v576_v29, 4  ;;  %v581_v39 = vrot.slane %v579_v30, 5  ;;  %v554_v41 = vor.u32 %v553_v32, %v550_v31  ;;  %v585_v43 = vshll.u32 %v531_v22, 16  ;;  %v533_v46 = vld [vmem:[%s1731_s17 + $0x1c] sm:$0x1]  ;;  %v1583_v8 = vld [vmem:[%s1961_s1 + $0xc8] sm:$0xff]  }
  0x1a   : > { %1473 = vmatprep.subr.bf16.mxu0 %v1571_v13  ;;  %v568_v48 = vor.u32 %v567_v37, %v564_v33  ;;  %v590_v50 = vshrl.u32 %v532_v45, 16  ;;  %v593_v51 = vshll.u32 %v532_v45, 16  ;;  %v599_v55 = vshll.u32 %v533_v46, 16  ;;  %v224_v9 = vld [vmem:[%s1731_s17] sm:$0xf]  ;;  %v1585_v14 = vld [vmem:[%s1961_s1 + $0xd0] sm:$0xff]  }
  0x1b   : > { %v582_v49 = vor.u32 %v581_v39, %v578_v38  ;;  %v555_v53 = vrot.slane %v554_v41, 4  ;;  %v587_v54 = vrot.slane %v585_v43, 5  ;;  %v1246_v0 = vcombine.low %v1766_v40, %v1769_v44  ;;  %v1821_v15 = vld [vmem:[%s1731_s17 + $0x30] sm:$0xf]  ;;  %v534_v16 = vld [vmem:[%s1731_s17 + $0x20] sm:$0xf] }
  0x1c   : > { %1426 = vmatpush3.bf16.msra.mxu1 %v1570_v10  ;;  %v569_v56 = vrot.slane %v568_v48, 4  ;;  %v592_v58 = vrot.slane %v590_v50, 4  ;;  %v595_v59 = vrot.slane %v593_v51, 5  ;;  %v601_v62 = vrot.slane %v599_v55, 5  ;;  %v1584_v10 = vld [vmem:[%s1961_s1 + $0x10] sm:$0xff]   ;;  %v1586_v18 = vld [vmem:[%s1961_s1 + $0x18] sm:$0xff]  }
  0x1d   : > { %1474 = vmatpush3.bf16.msra.mxu0 %v1571_v13  ;;  %1427 = vmatprep.subr.bf16.mxu1 %v1572_v20  ;;  %v583_v57 = vrot.slane %v582_v49, 4  ;;  %v560_v60 = vsel %vm1775_vm2, %v555_v53, %v559_v36  ;;  %v1815_v13 = vld [vmem:[%s1731_s17 + $0x28] sm:$0xf]  ;;  %v535_v17 = vld [vmem:[%s1731_s17 + $0x24] sm:$0x1]  ;;  %v604_v22 = vshrl.u32 %v534_v16, 16  ;;  %v1257_v32 = vcombine.low %v224_v9, %v1737_v11 }
  0x1e   : > { %1475 = vmatprep.subr.bf16.mxu0 %v1573_v21  ;;  %v1789_v63 = vsel %vm1775_vm2, %v569_v56, %v573_v42  ;;  %v596_v1 = vor.u32 %v595_v59, %v592_v58  ;;  %v1247_v19 = vcombine.low %v1815_v13, %v1821_v15  ;;  %v607_v23 = vshll.u32 %v534_v16, 16  ;;  %v1833_v28 = vld [vmem:[%s1731_s17 + $0x38] sm:$0xf]  ;;  %v232_v31 = vld [vmem:[%s1731_s17 + $0x40] sm:$0xf] }
  0x1f   : > { %v1285_v2 = vcombine.low %v560_v60, %v1789_v63  ;;  %v1796_v3 = vsel %vm1775_vm2, %v583_v57, %v587_v54  ;;  %v613_v24 = vshll.u32 %v535_v17, 16  ;;  %v606_v29 = vrot.slane %v604_v22, 4  ;;  %v1587_v33 = vld [vmem:[%s1961_s1 + $0xd8] sm:$0xff]   ;;  %v1588_v36 = vld [vmem:[%s1961_s1 + $0x20] sm:$0xff]   ;;  %v538_v42 = vld [vmem:[%s1731_s17 + $0x30] sm:$0xf] }
  0x20   : > { %1428 = vmatpush3.bf16.msra.mxu1 %v1572_v20  ;;  %v597_v4 = vrot.slane %v596_v1, 4  ;;  %v536_v20 = vld [vmem:[%s1731_s17 + $0x28] sm:$0xf]  ;;  %v609_v30 = vrot.slane %v607_v23, 5  ;;  %v1248_v41 = vcombine.low %v1833_v28, %v232_v31  ;;  %v539_v43 = vld [vmem:[%s1731_s17 + $0x34] sm:$0x1]  ;;  %v1259_v31 = vcombine.low %v1769_v44, %v1815_v13 }
  0x21   : > { %1476 = vmatpush3.bf16.msra.mxu0 %v1573_v21  ;;  %1429 = vmatprep.subr.bf16.mxu1 %v1574_v34  ;;  %v537_v21 = vld [vmem:[%s1731_s17 + $0x2c] sm:$0x1]  ;;  %v618_v25 = vshrl.u32 %v536_v20, 16  ;;  %v621_v26 = vshll.u32 %v536_v20, 16  ;;  %v615_v38 = vrot.slane %v613_v24, 5  ;;  %v632_v48 = vshrl.u32 %v538_v42, 16 }
  0x22   : > { %1477 = vmatprep.subr.bf16.mxu0 %v1575_v35  ;;  %1479 = vmatprep.mubr.bf16.mxu0 %v1285_v2  ;;  %v1803_v6 = vsel %vm1775_vm2, %v597_v4, %v601_v62  ;;  %v627_v27 = vshll.u32 %v537_v21, 16  ;;  %v610_v37 = vor.u32 %v609_v30, %v606_v29  ;;  %v540_v45 = vld [vmem:[%s1731_s17 + $0x38] sm:$0xf]  ;;  %v541_v46 = vld [vmem:[%s1731_s17 + $0x3c] sm:$0x1]  ;;  %v635_v49 = vshll.u32 %v538_v42, 16 }
  0x23   : > { %v1286_v7 = vcombine.low %v1796_v3, %v1803_v6  ;;  %v641_v51 = vshll.u32 %v539_v43, 16  ;;  %v649_v53 = vshll.u32 %v540_v45, 16  ;;  %v634_v55 = vrot.slane %v632_v48, 4  ;;  %v1590_v2 = vld [vmem:[%s1961_s1 + $0x28] sm:$0xff]   ;;  %v542_v16 = vld [vmem:[%s1731_s17 + $0x40] sm:$0xf] }
  0x24   : > { %1430 = vmatpush3.bf16.msra.mxu1 %v1574_v34  ;;  %v620_v34 = vrot.slane %v618_v25, 4  ;;  %v629_v39 = vrot.slane %v627_v27, 5  ;;  %v611_v50 = vrot.slane %v610_v37, 4  ;;  %v637_v56 = vrot.slane %v635_v49, 5  ;;  %v1594_v17 = vld [vmem:[%s1961_s1 + $0x30] sm:$0xff]   ;;  %v1596_v24 = vld [vmem:[%s1961_s1 + $0x38] sm:$0xff]  }
  0x25   : > { %1478 = vmatpush3.bf16.msra.mxu0 %v1575_v35  ;;  %1439 = vmatprep.subr.bf16.mxu1 %v1579_v52  ;;  %v623_v35 = vrot.slane %v621_v26, 5  ;;  %v655_v57 = vshll.u32 %v541_v46, 16  ;;  %v651_v60 = vrot.slane %v649_v53, 5  ;;  %v643_v1 = vrot.slane %v641_v51, 5  ;;  %v1595_v23 = vld [vmem:[%s1961_s1 + $0xf0] sm:$0xff]   ;;  %v1597_v25 = vld [vmem:[%s1961_s1 + $0xf8] sm:$0xff]  }
  0x26   : > { %1487 = vmatprep.subr.bf16.mxu0 %v1580_v61  ;;  %v616_v58 = vsel %vm1775_vm2, %v611_v50, %v615_v38  ;;  %v814_v21 = vshrl.u32 %v542_v16, 16  ;;  %v817_v22 = vshll.u32 %v542_v16, 16  ;;  %v543_v26 = vld [vmem:[%s1731_s17 + $0x44] sm:$0x1]  ;;  %v1258_v27 = vcombine.low %v1740_v12, %v1766_v40  ;;  %v1325_v38 = vld [vmem:[%s1962_s2] ss:$0 sm:$0xff] }
  0x27   : > { %1432 = vmatmul.mubr.bf16.vlgmr.msra.gmra.mrb[0].mxu1 %v1246_v0  ;;  %v624_v11 = vor.u32 %v623_v35, %v620_v34  ;;  %v638_v0 = vor.u32 %v637_v56, %v634_v55  ;;  %v823_v30 = vshll.u32 %v543_v26, 16  ;;  %v1260_v12 = vcombine.low %v1821_v15, %v1833_v28 }
  0x28   : > { %1440 = vmatpush3.bf16.msra.mxu1 %v1579_v52  ;;  %1480 = vmatmul.mubr.bf16.vlgmr.msra.gmra.mrb[0].mxu0 %v1286_v7  ;;  %v646_v52 = vshrl.u32 %v540_v45, 16  ;;  %v657_v7 = vrot.slane %v655_v57, 5 }
  0x29   : > { %1441 = vmatprep.subr.bf16.mxu1 %v1582_v5  ;;  %1488 = vmatpush3.bf16.msra.mxu0 %v1580_v61  ;;  %v625_v54 = vrot.slane %v624_v11, 4  ;;  %v1589_v61 = vld [vmem:[%s1961_s1 + $0xe0] sm:$0xff]   ;;  %v825_v35 = vrot.slane %v823_v30, 5 }
  0x2a   : > { %1489 = vmatprep.subr.bf16.mxu0 %v1583_v8  ;;  %1435 = vmatprep.mubr.bf16.mxu1 %v1247_v19  ;;  %v648_v59 = vrot.slane %v646_v52, 4  ;;  %v1313_v19 = vcombine.low %v1789_v63, %v1796_v3  ;;  %v816_v63 = vrot.slane %v814_v21, 4  ;;  %v819_v3 = vrot.slane %v817_v22, 5 }
  0x2b   : > { %v630_v62 = vsel %vm1775_vm2, %v625_v54, %v629_v39 }
  0x2c   : > { %1442 = vmatpush3.bf16.msra.mxu1 %v1582_v5  ;;  %v1287_v4 = vcombine.low %v616_v58, %v630_v62  ;;  %v652_v5 = vor.u32 %v651_v60, %v648_v59  ;;  %v820_v29 = vor.u32 %v819_v3, %v816_v63 }
  0x2d   : > { %1443 = vmatprep.subr.bf16.mxu1 %v1584_v10  ;;  %1490 = vmatpush3.bf16.msra.mxu0 %v1583_v8  ;;  %v639_v8 = vrot.slane %v638_v0, 4 }
  0x2e   : > { %1491 = vmatprep.subr.bf16.mxu0 %v1585_v14  ;;  %1483 = vmatprep.mubr.bf16.mxu0 %v1287_v4  ;;  %v653_v9 = vrot.slane %v652_v5, 4  ;;  %v821_v34 = vrot.slane %v820_v29, 4 }
  0x2f   : > { %1436 = vmatmul.mubr.bf16.gmra.mrb[4].mxu1 %v1248_v41 }
  0x30   : > { %1444 = vmatpush3.bf16.msra.mxu1 %v1584_v10  ;;  %1455 = vmatprep.mubr.bf16.mxu1 %v1257_v32  ;;  %v1591_v10 = vld [vmem:[%s1961_s1 + $0xe8] sm:$0xff]   ;;  %v1314_v32 = vcombine.low %v1803_v6, %v616_v58  ;;  %v826_v40 = vsel %vm1775_vm2, %v821_v34, %v825_v35 }
  0x31   : > { %1445 = vmatprep.subr.bf16.mxu1 %v1586_v18  ;;  %1492 = vmatpush3.bf16.msra.mxu0 %v1585_v14  ;;  %v644_v14 = vsel %vm1775_vm2, %v639_v8, %v643_v1 }
  0x32   : > { %1493 = vmatprep.subr.bf16.mxu0 %v1587_v33 }
  0x34   : > { %1446 = vmatpush3.bf16.msra.mxu1 %v1586_v18  ;;  %v658_v18 = vsel %vm1775_vm2, %v653_v9, %v657_v7 }
  0x35   : > { %1447 = vmatprep.subr.bf16.mxu1 %v1588_v36  ;;  %1494 = vmatpush3.bf16.msra.mxu0 %v1587_v33  ;;  %v1288_v20 = vcombine.low %v644_v14, %v658_v18  ;;  %v1315_v33 = vcombine.low %v630_v62, %v644_v14 }
  0x36   : > { %1495 = vmatprep.subr.bf16.mxu0 %v1589_v61 }
  0x37   : > { %1484 = vmatmul.mubr.bf16.gmra.mrb[4].mxu0 %v1288_v20 }
  0x38   : > { %1448 = vmatpush3.bf16.msra.mxu1 %v1588_v36  ;;  %1503 = vmatprep.mubr.bf16.mxu0 %v1313_v19  ;;  %v1316_v36 = vcombine.low %v658_v18, %v826_v40 }
  0x39   : > { %1449 = vmatprep.subr.bf16.mxu1 %v1590_v2  ;;  %1496 = vmatpush3.bf16.msra.mxu0 %v1589_v61 }
  0x3a   : > { %1497 = vmatprep.subr.bf16.mxu0 %v1591_v10 }
  0x3c   : > { %1450 = vmatpush3.bf16.msra.mxu1 %v1590_v2 }
  0x3d   : > { %1451 = vmatprep.subr.bf16.mxu1 %v1594_v17  ;;  %1498 = vmatpush3.bf16.msra.mxu0 %v1591_v10 }
  0x3e   : > { %1499 = vmatprep.subr.bf16.mxu0 %v1595_v23 }
  0x40   : > { %1452 = vmatpush3.bf16.msra.mxu1 %v1594_v17 }
  0x41   : > { %1453 = vmatprep.subr.bf16.mxu1 %v1596_v24  ;;  %1500 = vmatpush3.bf16.msra.mxu0 %v1595_v23 }
  0x42   : > { %1501 = vmatprep.subr.bf16.mxu0 %v1597_v25 }
  0x44   : > { %1454 = vmatpush3.bf16.msra.mxu1 %v1596_v24 }
  0x45   : > { %1502 = vmatpush3.bf16.msra.mxu0 %v1597_v25 }
  0x47   : > { %1456 = vmatmul.mubr.bf16.vlgmr.msra.gmra.mrb[0].mxu1 %v1258_v27 }
  0x48   : > { %1459 = vmatprep.mubr.bf16.mxu1 %v1259_v31  ;;  %1504 = vmatmul.mubr.bf16.vlgmr.msra.gmra.mrb[0].mxu0 %v1314_v32 }
  0x49   : > { %1507 = vmatprep.mubr.bf16.mxu0 %v1315_v33 }
  0x4f   : > { %1460 = vmatmul.mubr.bf16.gmra.mrb[4].mxu1 %v1260_v12 }
  0x50   : > { %1508 = vmatmul.mubr.bf16.gmra.mrb[4].mxu0 %v1316_v36 }
 0x11a   : > { %v1457_v44 = vpop.f32.mrb[0].mxu1 }
 0x11b   : > { %v495_v13 = vpop.f32.mrb[1].mxu1  ;;  %v1505_v37 = vpop.f32.mrb[0].mxu0 }
 0x11c   : > { %v1458_v6 = vpop.f32.mrb[2].mxu1  ;;  %v1511_v41 = vadd.f32 %v1505_v37, %v1457_v44  ;;  %v935_v42 = vpop.f32.mrb[1].mxu0 }
 0x11d   : > { %v498_v39 = vpop.f32.mrb[3].mxu1  ;;  %v1512_v43 = vadd.f32 %v935_v42, %v495_v13  ;;  %v1506_v11 = vpop.f32.mrb[2].mxu0 }
 0x11e   : > { %v1893_v15 = vadd.f32 %v1511_v41, %v1325_v38  ;;  %v1513_v47 = vadd.f32 %v1506_v11, %v1458_v6  ;;  %v938_v28 = vpop.f32.mrb[3].mxu0 }
 0x11f   : > { %v1895_v45 = vadd.f32 %v1512_v43, %v1325_v38  ;;  %v1514_v46 = vadd.f32 %v938_v28, %v498_v39 }
 0x120   : > { %v991_v48 = vmin.f32 %v1893_v15, 20.0  ;;  %v1898_v49 = vadd.f32 %v1513_v47, %v1325_v38  ;;  %vm1063_vm3 = vcmp.gt.f32.partialorder %v1893_v15, 20.0 }
 0x121   : > { %v989_v51 = vmin.f32 %v1895_v45, 20.0  ;;  %v1901_v52 = vadd.f32 %v1514_v46, %v1325_v38  ;;  %vm1061_vm5 = vcmp.gt.f32.partialorder %v1895_v45, 20.0 }
 0x122   : > { %v1461_v50 = vpop.f32.mrb[4].mxu1  ;;  %v1001_v54 = vmul.f32 1.442695, %v991_v48  ;;  %v992_v55 = vmin.f32 %v1898_v49, 20.0  ;;  %vm1064_vm4 = vcmp.gt.f32.partialorder %v1898_v49, 20.0 }
 0x123   : > { %v511_v53 = vpop.f32.mrb[5].mxu1  ;;  %v997_v57 = vmul.f32 1.442695, %v989_v51  ;;  %v990_v58 = vmin.f32 %v1901_v52, 20.0  ;;  %v1509_v59 = vpop.f32.mrb[4].mxu0  ;;  %vm1062_vm6 = vcmp.gt.f32.partialorder %v1901_v52, 20.0 }
 0x124   : > { %v1462_v56 = vpop.f32.mrb[6].mxu1  ;;  %1600 = vpow2.f32 %v1001_v54  ;;  %v1003_v61 = vmul.f32 1.442695, %v992_v55  ;;  %v1515_v62 = vadd.f32 %v1509_v59, %v1461_v50  ;;  %v951_v0 = vpop.f32.mrb[5].mxu0 }
 0x125   : > { %v514_v60 = vpop.f32.mrb[7].mxu1  ;;  %1602 = vpow2.f32 %v997_v57  ;;  %v999_v1 = vmul.f32 1.442695, %v990_v58  ;;  %v1516_v2 = vadd.f32 %v951_v0, %v511_v53  ;;  %v1510_v4 = vpop.f32.mrb[6].mxu0 }
 0x126   : > { %1604 = vpow2.f32 %v1003_v61  ;;  %v1905_v5 = vadd.f32 %v1515_v62, %v1325_v38  ;;  %v1517_v7 = vadd.f32 %v1510_v4, %v1462_v56  ;;  %v954_v8 = vpop.f32.mrb[7].mxu0 }
 0x127   : > { %1606 = vpow2.f32 %v999_v1  ;;  %v1907_v9 = vadd.f32 %v1516_v2, %v1325_v38  ;;  %v1518_v10 = vadd.f32 %v954_v8, %v514_v60 }
 0x128   : > { %v995_v14 = vmin.f32 %v1905_v5, 20.0  ;;  %v1910_v16 = vadd.f32 %v1517_v7, %v1325_v38  ;;  %vm1067_vm7 = vcmp.gt.f32.partialorder %v1905_v5, 20.0 }
 0x129   : > { %v993_v17 = vmin.f32 %v1907_v9, 20.0  ;;  %v1913_v18 = vadd.f32 %v1518_v10, %v1325_v38  ;;  %vm1065_vm9 = vcmp.gt.f32.partialorder %v1907_v9, 20.0 }
 0x12a   : > { %v1009_v19 = vmul.f32 1.442695, %v995_v14  ;;  %v996_v20 = vmin.f32 %v1910_v16, 20.0  ;;  %vm1068_vm8 = vcmp.gt.f32.partialorder %v1910_v16, 20.0 }
 0x12b   : > { %v1005_v21 = vmul.f32 1.442695, %v993_v17  ;;  %v994_v22 = vmin.f32 %v1913_v18, 20.0  ;;  %vm1066_vm10 = vcmp.gt.f32.partialorder %v1913_v18, 20.0 }
 0x12c   : > { %1608 = vpow2.f32 %v1009_v19  ;;  %v1011_v23 = vmul.f32 1.442695, %v996_v20 }
 0x12d   : > { %1610 = vpow2.f32 %v1005_v21  ;;  %v1007_v24 = vmul.f32 1.442695, %v994_v22 }
 0x12e   : > { %v1601_v63 = vpop.eup %1600  ;;  %1612 = vpow2.f32 %v1011_v23 }
 0x12f   : > { %v1603_v3 = vpop.eup %1602  ;;  %v1015_v25 = vadd.f32 2.0, %v1601_v63  ;;  %1614 = vpow2.f32 %v1007_v24 }
 0x130   : > { %v1605_v26 = vpop.eup %1604  ;;  %v1013_v27 = vadd.f32 2.0, %v1603_v3 }
 0x131   : > { %v1607_v29 = vpop.eup %1606  ;;  %v1023_v30 = vmul.f32 %v1601_v63, %v1015_v25  ;;  %v1016_v31 = vadd.f32 2.0, %v1605_v26 }
 0x132   : > { %v1021_v32 = vmul.f32 %v1603_v3, %v1013_v27  ;;  %v1014_v33 = vadd.f32 2.0, %v1607_v29 }
 0x133   : > { %v1039_v34 = vadd.f32 2.0, %v1023_v30  ;;  %v1024_v35 = vmul.f32 %v1605_v26, %v1016_v31  ;;  %v1031_v53 = vmul.f32 %v1023_v30, %v1893_v15 }
 0x134   : > { %v1037_v12 = vadd.f32 2.0, %v1021_v32  ;;  %v1022_v40 = vmul.f32 %v1607_v29, %v1014_v33  ;;  %v1029_v56 = vmul.f32 %v1021_v32, %v1895_v45 }
 0x135   : > { %1616 = vrcp.f32 %v1039_v34  ;;  %v1040_v36 = vadd.f32 2.0, %v1024_v35  ;;  %v1032_v59 = vmul.f32 %v1024_v35, %v1898_v49 }
 0x136   : > { %v1609_v44 = vpop.eup %1608  ;;  %1618 = vrcp.f32 %v1037_v12  ;;  %v1038_v13 = vadd.f32 2.0, %v1022_v40  ;;  %v1030_v62 = vmul.f32 %v1022_v40, %v1901_v52 }
 0x137   : > { %v1611_v6 = vpop.eup %1610  ;;  %1620 = vrcp.f32 %v1040_v36  ;;  %v1019_v37 = vadd.f32 2.0, %v1609_v44 }
 0x138   : > { %v1613_v38 = vpop.eup %1612  ;;  %1622 = vrcp.f32 %v1038_v13  ;;  %v1017_v39 = vadd.f32 2.0, %v1611_v6 }
 0x139   : > { %v1615_v41 = vpop.eup %1614  ;;  %v1027_v42 = vmul.f32 %v1609_v44, %v1019_v37  ;;  %v1020_v43 = vadd.f32 2.0, %v1613_v38 }
 0x13a   : > { %v1025_v11 = vmul.f32 %v1611_v6, %v1017_v39  ;;  %v1018_v47 = vadd.f32 2.0, %v1615_v41 }
 0x13b   : > { %v1043_v28 = vadd.f32 2.0, %v1027_v42  ;;  %v1028_v46 = vmul.f32 %v1613_v38, %v1020_v43 }
 0x13c   : > { %v1041_v48 = vadd.f32 2.0, %v1025_v11  ;;  %v1026_v50 = vmul.f32 %v1615_v41, %v1018_v47  ;;  %v1033_v20 = vmul.f32 %v1025_v11, %v1907_v9 }
 0x13d   : > { %1624 = vrcp.f32 %v1043_v28  ;;  %v1044_v51 = vadd.f32 2.0, %v1028_v46  ;;  %v1036_v23 = vmul.f32 %v1028_v46, %v1910_v16 }
 0x13e   : > { %1626 = vrcp.f32 %v1041_v48  ;;  %v1042_v54 = vadd.f32 2.0, %v1026_v50 }
 0x13f   : > { %v1617_v55 = vpop.eup %1616  ;;  %1628 = vrcp.f32 %v1044_v51 }
 0x140   : > { %v1619_v57 = vpop.eup %1618  ;;  %v1055_v58 = vmul.f32 %v1617_v55, %v1031_v53  ;;  %1630 = vrcp.f32 %v1042_v54 }
 0x141   : > { %v1621_v60 = vpop.eup %1620  ;;  %v1053_v61 = vmul.f32 %v1619_v57, %v1029_v56 }
 0x142   : > { %v1623_v0 = vpop.eup %1622  ;;  %v1056_v1 = vmul.f32 %v1621_v60, %v1032_v59  ;;  %v1071_v4 = vsel %vm1063_vm3, %v1893_v15, %v1055_v58  ;;  %v1035_v15 = vmul.f32 %v1027_v42, %v1905_v5 }
 0x143   : > { %v1054_v2 = vmul.f32 %v1623_v0, %v1030_v62  ;;  %v1069_v8 = vsel %vm1061_vm5, %v1895_v45, %v1053_v61  ;;  %v1034_v45 = vmul.f32 %v1026_v50, %v1913_v18 }
 0x144   : > { %v1072_v7 = vsel %vm1064_vm4, %v1898_v49, %v1056_v1 }
 0x145   : > { %v1352_v10 = vpack.c.bf16 %v1072_v7, %v1071_v4  ;;  %v1070_v14 = vsel %vm1062_vm6, %v1901_v52, %v1054_v2 }
 0x146   : > { %v1347_v17 = vpack.c.bf16 %v1070_v14, %v1069_v8 }
 0x147   : > { %v1625_v19 = vpop.eup %1624  ;;  %1364 = vst [vmem:[%s1929_s22 + $0x8] sm:$0xff] %v1352_v10  }
 0x148   : > { %v1627_v21 = vpop.eup %1626  ;;  %1348 = vst [vmem:[%s1929_s22] sm:$0xff] %v1347_v17   ;;  %v1059_v22 = vmul.f32 %v1625_v19, %v1035_v15 }
 0x149   : > { %v1629_v49 = vpop.eup %1628  ;;  %v1057_v24 = vmul.f32 %v1627_v21, %v1033_v20 }
 0x14a   : > { %v1631_v63 = vpop.eup %1630  ;;  %v1060_v52 = vmul.f32 %v1629_v49, %v1036_v23  ;;  %v1075_v25 = vsel %vm1067_vm7, %v1905_v5, %v1059_v22 }
 0x14b   : > { %v1058_v3 = vmul.f32 %v1631_v63, %v1034_v45  ;;  %v1073_v27 = vsel %vm1065_vm9, %v1907_v9, %v1057_v24 }
 0x14c   : > { %v1076_v26 = vsel %vm1068_vm8, %v1910_v16, %v1060_v52 }
 0x14d   : > { %v1362_v29 = vpack.c.bf16 %v1076_v26, %v1075_v25  ;;  %v1074_v30 = vsel %vm1066_vm10, %v1913_v18, %v1058_v3 }
 0x14e   : > { %v1357_v31 = vpack.c.bf16 %v1074_v30, %v1073_v27 }
 0x14f   : > { %1366 = vst [vmem:[%s1929_s22 + $0x18] sm:$0xff] %v1362_v29  }
 0x150   : > { %1365 = vst [vmem:[%s1929_s22 + $0x10] sm:$0xff] %v1357_v31  }
 0x151 PF: > { %s13_s14 = sadd.s32 1, %s1654_s14   ;;  %s1966_s12 = smov %s1650_s13 }
 0x152   : > { %p10_p6 = scmp.ge.s32.totalorder %s13_s14, 4   ;;  %s1967_s13 = smov %s1969_s15 }
 0x154   :  { %12 = sbr.rel (!%p10_p6) target bundleno = 2 (0x2), region = 71 }

// kernel: cspdarknet_block_forward.12
= control target key start
LH: loop header
LB: loop body
LE: loop exit
PB: predicated region body
PF: predicated region fallthrough
CT: control target
= control target key end

     0   :  { %s3034_s15 = smov 0   ;;  %s3036_s16 = smov 0   ;;  %s3622_s0 = inlined_call_operand.vmem [shape: bf16[2,10,10,128], index: 0, kind: input, shape index: {}]   ;;  %s3623_s1 = inlined_call_operand.vmem [shape: bf16[9,128,128], index: 1, kind: input, shape index: {}]   ;;  %s3624_s2 = inlined_call_operand.vmem [shape: f32[1,128], index: 2, kind: input, shape index: {}]   ;;  %s3625_s3 = inlined_call_operand.vmem [shape: bf16[128,128], index: 3, kind: input, shape index: {}]   ;;  %s3626_s4 = inlined_call_operand.vmem [shape: bf16[128,128], index: 4, kind: output, shape index: {}]  }
   0x1   :  { %s3038_s17 = smov 0  }
   0x2 LB: > { %s26_s18 = sadd.s32 1, %s3003_s16  ;;  %p2139_p0 = scmp.ge.s32.totalorder %s3007_s17, 1  ;;  %s3007_s17 = sphi %s3038_s17, %s14_s17   ;;  %s3003_s16 = sphi %s3036_s16, %s3632_s16   ;;  %s2999_s15 = sphi %s3034_s15, %s3631_s15  }
   0x3   : > { %p28_p1 = scmp.ge.s32.totalorder %s26_s18, 2  ;;  %p209_p2 = scmp.lt.s32.totalorder %s3007_s17, 3 }
   0x5   : > { %s3634_s18 = smov (%p28_p1, %s26_s18), 0  ;;  %p210_p3 = pnand %p2139_p0, %p209_p2 }
   0x6   : > { %v2872_v0 = vld [vmem:[%s3623_s1 + $0xc0] sm:$0xff] (!%p210_p3)   ;;  %v2874_v2 = vld [vmem:[%s3623_s1 + $0xc8] sm:$0xff] (!%p210_p3)   ;;  %p253_p4 = scmp.lt.s32.totalorder (!%p210_p3), %s2999_s15, 1  ;;  %v2876_v4 = vld [vmem:[%s3623_s1 + $0xd0] sm:$0xff] (!%p210_p3)   ;;  %vm749_vm0 = vsmask.f32 (!%p210_p3), 3328 }
   0x7   : > { %213 = sbr.rel (%p210_p3) target bundleno = 431 (0x1af), region = 36  ;;  %v2873_v1 = vld [vmem:[%s3623_s1 + $0x100] sm:$0xff] (!%p210_p3)   ;;  %2551 = vmatprep.subr.bf16.mxu1 (!%p210_p3), %v2872_v0  ;;  %v2875_v3 = vld [vmem:[%s3623_s1 + $0x108] sm:$0xff] (!%p210_p3)   ;;  %v2877_v5 = vld [vmem:[%s3623_s1 + $0x110] sm:$0xff] (!%p210_p3)   ;;  %vm750_vm1 = vsmask.f32 (!%p210_p3), 7440 }
   0x8   : > { %2647 = vmatprep.subr.bf16.mxu0 (!%p210_p3), %v2873_v1  ;;  %2552 = vmatpush3.bf16.msra.mxu1 (!%p210_p3), %v2872_v0  ;;  %v2878_v6 = vld [vmem:[%s3623_s1 + $0xd8] sm:$0xff] (!%p210_p3)   ;;  %v2880_v8 = vld [vmem:[%s3623_s1 + $0xe0] sm:$0xff] (!%p210_p3)   ;;  %v2882_v10 = vld [vmem:[%s3623_s1 + $0xe8] sm:$0xff] (!%p210_p3)   ;;  %vm1360_vm3 = vcmask (!%p210_p3), 1042432   ;;  %vm1361_vm4 = vcmask (!%p210_p3), 1046532   ;;  %s2141_s19 = sshll.u32 (!%p210_p3), %s2999_s15, 3 }
   0x9   : > { %2648 = vmatpush3.bf16.msra.mxu0 (!%p210_p3), %v2873_v1  ;;  %2553 = vmatprep.subr.bf16.mxu1 (!%p210_p3), %v2874_v2  ;;  %v2879_v7 = vld [vmem:[%s3623_s1 + $0x118] sm:$0xff] (!%p210_p3)   ;;  %v2881_v9 = vld [vmem:[%s3623_s1 + $0x120] sm:$0xff] (!%p210_p3)   ;;  %v2883_v13 = vld [vmem:[%s3623_s1 + $0x128] sm:$0xff] (!%p210_p3)   ;;  %p266_p5 = scmp.lt.s32.totalorder (!%p210_p3), %s2141_s19, 15 }
   0xa   : > { %2649 = vmatprep.subr.bf16.mxu0 (!%p210_p3), %v2875_v3  ;;  %v2884_v15 = vld [vmem:[%s3623_s1 + $0xf0] sm:$0xff] (!%p210_p3)   ;;  %v2886_v34 = vld [vmem:[%s3623_s1 + $0xf8] sm:$0xff] (!%p210_p3)   ;;  %v2891_v44 = vld [vmem:[%s3623_s1] sm:$0xff] (!%p210_p3)  }
   0xb   : > { %v2885_v17 = vld [vmem:[%s3623_s1 + $0x130] sm:$0xff] (!%p210_p3)   ;;  %v2887_v38 = vld [vmem:[%s3623_s1 + $0x138] sm:$0xff] (!%p210_p3)   ;;  %vm3144_vm2 = vmor (!%p210_p3), %vm749_vm0, %vm750_vm1 }
   0xc   : > { %2554 = vmatpush3.bf16.msra.mxu1 (!%p210_p3), %v2874_v2  ;;  %v2892_v59 = vld [vmem:[%s3623_s1 + $0x1c0] sm:$0xff] (!%p210_p3)   ;;  %vm3307_vm5 = vmor (!%p210_p3), %vm1360_vm3, %vm1361_vm4 }
   0xd   : > { %2650 = vmatpush3.bf16.msra.mxu0 (!%p210_p3), %v2875_v3  ;;  %2555 = vmatprep.subr.bf16.mxu1 (!%p210_p3), %v2876_v4 }
   0xe   : > { %s254_s5 = scalar_select %p253_p4, %s2999_s15, 1  ;;  %2651 = vmatprep.subr.bf16.mxu0 %v2877_v5 }
   0xf   : > { %s3636_s19 = smov (!%p266_p5, %s2141_s19), 15 }
  0x10   : > { %2556 = vmatpush3.bf16.msra.mxu1 %v2876_v4  ;;  %s2847_s10 = smul.u32 80, %s254_s5  ;;  %s2142_s15 = sshll.u32 %s3636_s19, 2 }
  0x11   : > { %2652 = vmatpush3.bf16.msra.mxu0 %v2877_v5  ;;  %2557 = vmatprep.subr.bf16.mxu1 %v2878_v6  ;;  %s3572_s23 = scalar_lea.vmem %s3625_s3, %s2142_s15  ;;  %s3595_s25 = scalar_lea.vmem %s3626_s4, %s2142_s15 }
  0x12   : > { %2653 = vmatprep.subr.bf16.mxu0 %v2879_v7  ;;  %s3089_s21 = scalar_lea.vmem %s3622_s0, %s2847_s10 }
  0x13   : > { %v3095_v11 = vld [vmem:[%s3089_s21 + $0x8] sm:$0xf]  ;;  %v3098_v12 = vld [vmem:[%s3089_s21 + $0x10] sm:$0xf]  ;;  %v729_v16 = vld [vmem:[%s3089_s21] sm:$0xf] }
  0x14   : > { %2558 = vmatpush3.bf16.msra.mxu1 %v2878_v6  ;;  %v2161_v14 = vcombine.low %v3095_v11, %v3098_v12  ;;  %v731_v18 = vld [vmem:[%s3089_s21 + $0x8] sm:$0xf]  ;;  %v3114_v19 = vld [vmem:[%s3089_s21 + $0xc] sm:$0x1]  ;;  %v3117_v20 = vld [vmem:[%s3089_s21 + $0x4] sm:$0x1] }
  0x15   : > { %2654 = vmatpush3.bf16.msra.mxu0 %v2879_v7  ;;  %2559 = vmatprep.subr.bf16.mxu1 %v2880_v8  ;;  %v733_v21 = vld [vmem:[%s3089_s21 + $0x10] sm:$0xf]  ;;  %v3121_v22 = vld [vmem:[%s3089_s21 + $0x14] sm:$0x1]  ;;  %v753_v23 = vshrl.u32 %v729_v16, 16  ;;  %v756_v24 = vshll.u32 %v729_v16, 16 }
  0x16   : > { %2655 = vmatprep.subr.bf16.mxu0 %v2881_v9  ;;  %2567 = vmatprep.mubr.bf16.mxu1 %v2161_v14  ;;  %v735_v25 = vld [vmem:[%s3089_s21 + $0x18] sm:$0xf]  ;;  %v762_v26 = vshll.u32 %v3117_v20, 16  ;;  %v767_v27 = vshrl.u32 %v731_v18, 16  ;;  %v770_v28 = vshll.u32 %v731_v18, 16  ;;  %v776_v29 = vshll.u32 %v3114_v19, 16 }
  0x17   : > { %v755_v30 = vrot.slane %v753_v23, 4  ;;  %v758_v31 = vrot.slane %v756_v24, 5  ;;  %v781_v32 = vshrl.u32 %v733_v21, 16  ;;  %v784_v33 = vshll.u32 %v733_v21, 16  ;;  %v3133_v39 = vld [vmem:[%s3089_s21 + $0x18] sm:$0xf] }
  0x18   : > { %2560 = vmatpush3.bf16.msra.mxu1 %v2880_v8  ;;  %v764_v35 = vrot.slane %v762_v26, 5  ;;  %v769_v36 = vrot.slane %v767_v27, 4  ;;  %v772_v37 = vrot.slane %v770_v28, 5  ;;  %v790_v43 = vshll.u32 %v3121_v22, 16  ;;  %v3140_v45 = vld [vmem:[%s3089_s21 + $0x1c] sm:$0x1] }
  0x19   : > { %2656 = vmatpush3.bf16.msra.mxu0 %v2881_v9  ;;  %2561 = vmatprep.subr.bf16.mxu1 %v2882_v10  ;;  %v759_v40 = vor.u32 %v758_v31, %v755_v30  ;;  %v783_v41 = vrot.slane %v781_v32, 4  ;;  %v786_v42 = vrot.slane %v784_v33, 5  ;;  %v778_v47 = vrot.slane %v776_v29, 5  ;;  %v3149_v54 = vld [vmem:[%s3089_s21 + $0x20] sm:$0xf]  ;;  %v2894_v9 = vld [vmem:[%s3623_s1 + $0x8] sm:$0xff]  }
  0x1a   : > { %2657 = vmatprep.subr.bf16.mxu0 %v2883_v13  ;;  %v773_v46 = vor.u32 %v772_v37, %v769_v36  ;;  %v795_v48 = vshrl.u32 %v735_v25, 16  ;;  %v798_v49 = vshll.u32 %v735_v25, 16  ;;  %v792_v53 = vrot.slane %v790_v43, 5  ;;  %v737_v55 = vld [vmem:[%s3089_s21 + $0x20] sm:$0xf]  ;;  %v2896_v18 = vld [vmem:[%s3623_s1 + $0x10] sm:$0xff]  }
  0x1b   : > { %v760_v51 = vrot.slane %v759_v40, 4  ;;  %v787_v52 = vor.u32 %v786_v42, %v783_v41  ;;  %v804_v62 = vshll.u32 %v3140_v45, 16  ;;  %v3159_v63 = vld [vmem:[%s3089_s21 + $0x24] sm:$0x1]  ;;  %v2162_v2 = vcombine.low %v3133_v39, %v3149_v54  ;;  %v2895_v24 = vld [vmem:[%s3623_s1 + $0x1c8] sm:$0xff]   ;;  %v2898_v28 = vld [vmem:[%s3623_s1 + $0x18] sm:$0xff]  }
  0x1c   : > { %2562 = vmatpush3.bf16.msra.mxu1 %v2882_v10  ;;  %v774_v56 = vrot.slane %v773_v46, 4  ;;  %v797_v57 = vrot.slane %v795_v48, 4  ;;  %v800_v58 = vrot.slane %v798_v49, 5  ;;  %v809_v5 = vshrl.u32 %v737_v55, 16  ;;  %v3187_v25 = vld [vmem:[%s3089_s21 + $0x28] sm:$0xf] }
  0x1d   : > { %2658 = vmatpush3.bf16.msra.mxu0 %v2883_v13  ;;  %2563 = vmatprep.subr.bf16.mxu1 %v2884_v15  ;;  %v765_v60 = vsel %vm3144_vm2, %v760_v51, %v764_v35  ;;  %v788_v61 = vrot.slane %v787_v52, 4  ;;  %v812_v7 = vshll.u32 %v737_v55, 16  ;;  %v818_v8 = vshll.u32 %v3159_v63, 16  ;;  %v3190_v26 = vld [vmem:[%s3089_s21 + $0x30] sm:$0xf]  ;;  %v2900_v42 = vld [vmem:[%s3623_s1 + $0x20] sm:$0xff]  }
  0x1e   : > { %2659 = vmatprep.subr.bf16.mxu0 %v2885_v17  ;;  %v779_v0 = vsel %vm3144_vm2, %v774_v56, %v778_v47  ;;  %v801_v1 = vor.u32 %v800_v58, %v797_v57  ;;  %v806_v10 = vrot.slane %v804_v62, 5  ;;  %v811_v13 = vrot.slane %v809_v5, 4  ;;  %v739_v30 = vld [vmem:[%s3089_s21 + $0x28] sm:$0xf]  ;;  %v284_v31 = vld [vmem:[%s3089_s21] sm:$0xf] }
  0x1f   : > { %v3167_v3 = vsel %vm3144_vm2, %v788_v61, %v792_v53  ;;  %v3169_v4 = vcombine.low %v765_v60, %v779_v0  ;;  %v2163_v29 = vcombine.low %v3187_v25, %v3190_v26  ;;  %v3206_v33 = vld [vmem:[%s3089_s21 + $0x2c] sm:$0x1]  ;;  %v3210_v35 = vld [vmem:[%s3089_s21 + $0x34] sm:$0x1]  ;;  %v823_v36 = vshrl.u32 %v739_v30, 16 }
  0x20   : > { %2564 = vmatpush3.bf16.msra.mxu1 %v2884_v15  ;;  %v2254_v6 = vcombine.low %v779_v0, %v3167_v3  ;;  %v802_v14 = vrot.slane %v801_v1, 4  ;;  %v814_v15 = vrot.slane %v812_v7, 5  ;;  %v826_v37 = vshll.u32 %v739_v30, 16  ;;  %v2897_v41 = vld [vmem:[%s3623_s1 + $0x1d0] sm:$0xff]   ;;  %v3221_v51 = vld [vmem:[%s3089_s21 + $0x38] sm:$0xf] }
  0x21   : > { %2660 = vmatpush3.bf16.msra.mxu0 %v2885_v17  ;;  %2565 = vmatprep.subr.bf16.mxu1 %v2886_v34  ;;  %v820_v17 = vrot.slane %v818_v8, 5  ;;  %v825_v46 = vrot.slane %v823_v36, 4  ;;  %v3224_v55 = vld [vmem:[%s3089_s21 + $0x40] sm:$0xf]  ;;  %v743_v56 = vld [vmem:[%s3089_s21 + $0x38] sm:$0xf]  ;;  %v2173_v57 = vcombine.low %v284_v31, %v3095_v11 }
  0x22   : > { %2661 = vmatprep.subr.bf16.mxu0 %v2887_v38  ;;  %2663 = vmatprep.mubr.bf16.mxu0 %v2254_v6  ;;  %v815_v16 = vor.u32 %v814_v15, %v811_v13  ;;  %v3181_v21 = vsel %vm3144_vm2, %v802_v14, %v806_v10  ;;  %v828_v47 = vrot.slane %v826_v37, 5  ;;  %v3231_v60 = vld [vmem:[%s3089_s21 + $0x3c] sm:$0x1]  ;;  %v745_v61 = vld [vmem:[%s3089_s21 + $0x40] sm:$0xf]  ;;  %v2902_v0 = vld [vmem:[%s3623_s1 + $0x28] sm:$0xff]  }
  0x23   : > { %v3235_v62 = vld [vmem:[%s3089_s21 + $0x44] sm:$0x1]  ;;  %v854_v5 = vshll.u32 %v743_v56, 16  ;;  %v860_v6 = vshll.u32 %v3231_v60, 16  ;;  %v1019_v7 = vshrl.u32 %v745_v61, 16  ;;  %v1022_v8 = vshll.u32 %v745_v61, 16 }
  0x24   : > { %2566 = vmatpush3.bf16.msra.mxu1 %v2886_v34  ;;  %v816_v23 = vrot.slane %v815_v16, 4  ;;  %v741_v34 = vld [vmem:[%s3089_s21 + $0x30] sm:$0xf]  ;;  %v829_v58 = vor.u32 %v828_v47, %v825_v46  ;;  %v2899_v10 = vld [vmem:[%s3623_s1 + $0x1d8] sm:$0xff]   ;;  %v2910_v46 = vld [vmem:[%s3623_s1 + $0x180] sm:$0xff]  }
  0x25   : > { %2662 = vmatpush3.bf16.msra.mxu0 %v2887_v38  ;;  %2575 = vmatprep.subr.bf16.mxu1 %v2891_v44  ;;  %v832_v38 = vshll.u32 %v3206_v33, 16  ;;  %v837_v40 = vshrl.u32 %v741_v34, 16  ;;  %v840_v43 = vshll.u32 %v741_v34, 16  ;;  %v856_v15 = vrot.slane %v854_v5, 5  ;;  %v2901_v34 = vld [vmem:[%s3623_s1 + $0x1e0] sm:$0xff]  }
  0x26   : > { %2671 = vmatprep.subr.bf16.mxu0 %v2892_v59  ;;  %v3194_v27 = vsel %vm3144_vm2, %v816_v23, %v820_v17  ;;  %v830_v11 = vrot.slane %v829_v58, 4  ;;  %v862_v17 = vrot.slane %v860_v6, 5  ;;  %v1024_v23 = vrot.slane %v1022_v8, 5  ;;  %v1336_v47 = vld [vmem:[%s3089_s21 + $0x10] sm:$0xe] }
  0x27   : > { %2568 = vmatmul.mubr.bf16.vlgmr.msra.gmra.mrb[0].mxu1 %v2162_v2  ;;  %v2255_v32 = vcombine.low %v3181_v21, %v3194_v27  ;;  %v834_v48 = vrot.slane %v832_v38, 5  ;;  %v839_v49 = vrot.slane %v837_v40, 4  ;;  %v842_v52 = vrot.slane %v840_v43, 5  ;;  %v2903_v43 = vld [vmem:[%s3623_s1 + $0x1e8] sm:$0xff]   ;;  %v1334_v5 = vld [vmem:[%s3089_s21] sm:$0xe] }
  0x28   : > { %2576 = vmatpush3.bf16.msra.mxu1 %v2891_v44  ;;  %2571 = vmatprep.mubr.bf16.mxu1 %v2163_v29  ;;  %v846_v44 = vshll.u32 %v3210_v35, 16  ;;  %v851_v2 = vshrl.u32 %v743_v56, 16  ;;  %v2905_v29 = vld [vmem:[%s3623_s1 + $0x30] sm:$0xff]   ;;  %v1373_v58 = vrot.slane %v3121_v22, 5  ;;  %v2911_v22 = vld [vmem:[%s3623_s1 + $0x80] sm:$0xff]   ;;  %v3324_v6 = vcombine.low %v3190_v26, %v3221_v51 }
  0x29   : > { %2577 = vmatprep.subr.bf16.mxu1 %v2894_v9  ;;  %2664 = vmatmul.mubr.bf16.vlgmr.msra.gmra.mrb[0].mxu0 %v2255_v32  ;;  %v843_v1 = vor.u32 %v842_v52, %v839_v49  ;;  %v3247_v16 = vsel %vm3144_vm2, %v830_v11, %v834_v48  ;;  %v2909_v48 = vld [vmem:[%s3623_s1 + $0x1f8] sm:$0xff]   ;;  %v3296_v49 = vcombine.low %v3149_v54, %v3187_v25  ;;  %v2912_v52 = vld [vmem:[%s3623_s1 + $0x188] sm:$0xff]   ;;  %v2293_v25 = vrot.slane %v1336_v47, 9 }
  0x2a   : > { %2672 = vmatpush3.bf16.msra.mxu0 %v2892_v59  ;;  %v848_v53 = vrot.slane %v846_v44, 5  ;;  %v2164_v59 = vcombine.low %v3221_v51, %v3224_v55  ;;  %v853_v14 = vrot.slane %v851_v2, 4  ;;  %v1335_v11 = vld [vmem:[%s3089_s21 + $0x8] sm:$0xe] }
  0x2b   : > { %2673 = vmatprep.subr.bf16.mxu0 %v2895_v24  ;;  %v844_v13 = vrot.slane %v843_v1, 4  ;;  %v1377_v1 = vrot.slane %v3140_v45, 5  ;;  %v3330_v8 = vsel %vm3307_vm5, %v2293_v25, %v1373_v58  ;;  %v3334_v45 = vcombine.low %v3194_v27, %v3247_v16  ;;  %v1343_v47 = vld [vmem:[%s3089_s21 + $0x48] sm:$0xe]  ;;  %v2927_v58 = vld [vmem:[%s3623_s1 + $0xb8] sm:$0xff]  }
  0x2c   : > { %2578 = vmatpush3.bf16.msra.mxu1 %v2894_v9  ;;  %v1028_v9 = vshll.u32 %v3235_v62, 16  ;;  %v1365_v27 = vrot.slane %v3117_v20, 5  ;;  %v2918_v20 = vld [vmem:[%s3623_s1 + $0x1a0] sm:$0xff]   ;;  %v2930_v25 = vld [vmem:[%s3623_s1 + $0x48] sm:$0xff]  }
  0x2d   : > { %2579 = vmatprep.subr.bf16.mxu1 %v2896_v18  ;;  %v2938_v54 = vld [vmem:[%s3623_s1 + $0x68] sm:$0xff]  }
  0x2e   : > { %2674 = vmatpush3.bf16.msra.mxu0 %v2895_v24  ;;  %v3251_v24 = vsel %vm3144_vm2, %v844_v13, %v848_v53  ;;  %v1030_v32 = vrot.slane %v1028_v9, 5  ;;  %v747_v53 = vld [vmem:[%s3089_s21 + $0x48] sm:$0xf]  ;;  %v2916_v9 = vld [vmem:[%s3623_s1 + $0x198] sm:$0xff]  }
  0x2f   : > { %2675 = vmatprep.subr.bf16.mxu0 %v2897_v41  ;;  %2572 = vmatmul.mubr.bf16.gmra.mrb[4].mxu1 %v2164_v59  ;;  %v2256_v30 = vcombine.low %v3247_v16, %v3251_v24  ;;  %v1183_v56 = vshll.u32 %v747_v53, 16  ;;  %v2913_v13 = vld [vmem:[%s3623_s1 + $0x88] sm:$0xff]   ;;  %v2291_v16 = vrot.slane %v1334_v5, 9  ;;  %v2934_v5 = vld [vmem:[%s3623_s1 + $0x58] sm:$0xff]  }
  0x30   : > { %2580 = vmatpush3.bf16.msra.mxu1 %v2896_v18  ;;  %v1021_v18 = vrot.slane %v1019_v7, 4  ;;  %2591 = vmatprep.mubr.bf16.mxu1 %v2173_v57  ;;  %v1369_v57 = vrot.slane %v3114_v19, 5  ;;  %v2914_v19 = vld [vmem:[%s3623_s1 + $0x190] sm:$0xff]   ;;  %v1337_v7 = vld [vmem:[%s3089_s21 + $0x18] sm:$0xe] }
  0x31   : > { %2581 = vmatprep.subr.bf16.mxu1 %v2898_v28  ;;  %2667 = vmatprep.mubr.bf16.mxu0 %v2256_v30  ;;  %v1185_v61 = vrot.slane %v1183_v56, 5  ;;  %v2920_v30 = vld [vmem:[%s3623_s1 + $0x1a8] sm:$0xff]  }
  0x32   : > { %2676 = vmatpush3.bf16.msra.mxu0 %v2897_v41  ;;  %v1025_v31 = vor.u32 %v1024_v23, %v1021_v18  ;;  %v2908_v41 = vld [vmem:[%s3623_s1 + $0x38] sm:$0xff]  }
  0x33   : > { %2677 = vmatprep.subr.bf16.mxu0 %v2899_v10 }
  0x34   : > { %2582 = vmatpush3.bf16.msra.mxu1 %v2898_v28  ;;  %v857_v28 = vor.u32 %v856_v15, %v853_v14  ;;  %v1026_v37 = vrot.slane %v1025_v31, 4  ;;  %v1381_v31 = vrot.slane %v3159_v63, 5 }
  0x35   : > { %2583 = vmatprep.subr.bf16.mxu1 %v2900_v42 }
  0x36   : > { %v858_v36 = vrot.slane %v857_v28, 4  ;;  %2678 = vmatpush3.bf16.msra.mxu0 %v2899_v10  ;;  %v3267_v40 = vsel %vm3144_vm2, %v1026_v37, %v1030_v32  ;;  %v2294_v10 = vrot.slane %v1337_v7, 9  ;;  %v1366_v28 = vsel %vm3307_vm5, %v2291_v16, %v1365_v27  ;;  %v2917_v32 = vld [vmem:[%s3623_s1 + $0x98] sm:$0xff]  }
  0x37   : > { %2679 = vmatprep.subr.bf16.mxu0 %v2901_v34  ;;  %v2935_v27 = vld [vmem:[%s3623_s1 + $0x158] sm:$0xff]  }
  0x38   : > { %2584 = vmatpush3.bf16.msra.mxu1 %v2900_v42  ;;  %v3263_v38 = vsel %vm3144_vm2, %v858_v36, %v862_v17  ;;  %v3274_v42 = vcombine.low %v3167_v3, %v3181_v21  ;;  %v2906_v3 = vld [vmem:[%s3623_s1 + $0x1f0] sm:$0xff]   ;;  %v2174_v21 = vcombine.low %v3098_v12, %v3133_v39  ;;  %v3303_v12 = vld [vmem:[%s3089_s21 + $0x4c] sm:$0x1]  ;;  %v1180_v39 = vshrl.u32 %v747_v53, 16  ;;  %v1338_v36 = vld [vmem:[%s3089_s21 + $0x20] sm:$0xe] }
  0x39   : > { %2585 = vmatprep.subr.bf16.mxu1 %v2902_v0  ;;  %v2257_v44 = vcombine.low %v3263_v38, %v3267_v40  ;;  %v3344_v14 = vcombine.low %v3251_v24, %v3263_v38  ;;  %v3349_v15 = vsel %vm3307_vm5, %v2294_v10, %v1377_v1  ;;  %v2292_v17 = vrot.slane %v1335_v11, 9  ;;  %v2915_v24 = vld [vmem:[%s3623_s1 + $0x90] sm:$0xff]   ;;  %v2929_v1 = vld [vmem:[%s3623_s1 + $0x140] sm:$0xff]   ;;  %v2931_v10 = vld [vmem:[%s3623_s1 + $0x148] sm:$0xff]  }
  0x3a   : > { %2680 = vmatpush3.bf16.msra.mxu0 %v2901_v34  ;;  %v1182_v59 = vrot.slane %v1180_v39, 4  ;;  %v3354_v18 = vcombine.low %v3330_v8, %v3349_v15  ;;  %v2295_v37 = vrot.slane %v1338_v36, 9  ;;  %v2923_v38 = vld [vmem:[%s3623_s1 + $0x1b0] sm:$0xff]   ;;  %v1389_v11 = vrot.slane %v3210_v35, 5  ;;  %v2936_v35 = vld [vmem:[%s3623_s1 + $0x60] sm:$0xff]  }
  0x3b   : > { %2668 = vmatmul.mubr.bf16.gmra.mrb[4].mxu0 %v2257_v44  ;;  %2681 = vmatprep.subr.bf16.mxu0 %v2903_v43  ;;  %v2926_v44 = vld [vmem:[%s3623_s1 + $0x1b8] sm:$0xff]   ;;  %v2924_v39 = vld [vmem:[%s3623_s1 + $0xb0] sm:$0xff]  }
  0x3c   : > { %2586 = vmatpush3.bf16.msra.mxu1 %v2902_v0  ;;  %2687 = vmatprep.mubr.bf16.mxu0 %v3274_v42  ;;  %v1189_v0 = vshll.u32 %v3303_v12, 16  ;;  %v1186_v2 = vor.u32 %v1185_v61, %v1182_v59  ;;  %v3387_v63 = vsel %vm3307_vm5, %v2295_v37, %v1381_v31  ;;  %v1385_v61 = vrot.slane %v3206_v33, 5 }
  0x3d   : > { %2587 = vmatprep.subr.bf16.mxu1 %v2905_v29 }
  0x3e   : > { %2682 = vmatpush3.bf16.msra.mxu0 %v2903_v43  ;;  %v1187_v26 = vrot.slane %v1186_v2, 4  ;;  %v1191_v51 = vrot.slane %v1189_v0, 5  ;;  %v1553_v43 = vrot.slane %v3235_v62, 5  ;;  %v2928_v62 = vld [vmem:[%s3623_s1 + $0x40] sm:$0xff]   ;;  %v2932_v0 = vld [vmem:[%s3623_s1 + $0x50] sm:$0xff]  }
  0x3f   : > { %2683 = vmatprep.subr.bf16.mxu0 %v2906_v3 }
  0x40   : > { %2588 = vmatpush3.bf16.msra.mxu1 %v2905_v29  ;;  %v1192_v23 = vsel %vm3144_vm2, %v1187_v26, %v1191_v51  ;;  %v3370_v29 = vsel %vm3307_vm5, %v2292_v17, %v1369_v57  ;;  %v1339_v57 = vld [vmem:[%s3089_s21 + $0x28] sm:$0xe]  ;;  %v2933_v51 = vld [vmem:[%s3623_s1 + $0x150] sm:$0xff]   ;;  %v2937_v17 = vld [vmem:[%s3623_s1 + $0x160] sm:$0xff]  }
  0x41   : > { %2589 = vmatprep.subr.bf16.mxu1 %v2908_v41  ;;  %v2282_v50 = vcombine.low %v3267_v40, %v1192_v23  ;;  %v2315_v34 = vcombine.low %v1366_v28, %v3370_v29  ;;  %v2919_v40 = vld [vmem:[%s3623_s1 + $0xa0] sm:$0xff]   ;;  %v2296_v59 = vrot.slane %v1339_v57, 9  ;;  %v2344_v16 = vcombine.low %v3370_v29, %v3330_v8  ;;  %v2943_v8 = vld [vmem:[%s3623_s1 + $0x78] sm:$0xff]   ;;  %v2946_v28 = vld [vmem:[%s3623_s1 + $0x208] sm:$0xff]  }
  0x42   : > { %2684 = vmatpush3.bf16.msra.mxu0 %v2906_v3  ;;  %v2921_v3 = vld [vmem:[%s3623_s1 + $0xa8] sm:$0xff]   ;;  %v2945_v23 = vld [vmem:[%s3623_s1 + $0x200] sm:$0xff]   ;;  %v2944_v29 = vld [vmem:[%s3623_s1 + $0x178] sm:$0xff]  }
  0x43   : > { %2685 = vmatprep.subr.bf16.mxu0 %v2909_v48  ;;  %v3441_v33 = vsel %vm3307_vm5, %v2296_v59, %v1385_v61 }
  0x44   : > { %2590 = vmatpush3.bf16.msra.mxu1 %v2908_v41  ;;  %v2345_v41 = vcombine.low %v3349_v15, %v3387_v63  ;;  %v2951_v15 = vld [vmem:[%s3623_s1 + $0x230] sm:$0xff]  }
  0x45   : > { %2599 = vmatprep.subr.bf16.mxu1 %v2910_v46 }
  0x46   : > { %2686 = vmatpush3.bf16.msra.mxu0 %v2909_v48 }
  0x47   : > { %2592 = vmatmul.mubr.bf16.vlgmr.msra.gmra.mrb[0].mxu1 %v2174_v21  ;;  %2695 = vmatprep.subr.bf16.mxu0 %v2911_v22 }
  0x48   : > { %2600 = vmatpush3.bf16.msra.mxu1 %v2910_v46  ;;  %2595 = vmatprep.mubr.bf16.mxu1 %v3296_v49  ;;  %v1706_v46 = vrot.slane %v3303_v12, 5 }
  0x49   : > { %2601 = vmatprep.subr.bf16.mxu1 %v2912_v52  ;;  %2688 = vmatmul.mubr.bf16.vlgmr.msra.gmra.mrb[0].mxu0 %v3334_v45 }
  0x4a   : > { %2696 = vmatpush3.bf16.msra.mxu0 %v2911_v22  ;;  %2691 = vmatprep.mubr.bf16.mxu0 %v3344_v14  ;;  %v1340_v22 = vld [vmem:[%s3089_s21 + $0x30] sm:$0xe] }
  0x4b   : > { %2697 = vmatprep.subr.bf16.mxu0 %v2913_v13 }
  0x4c   : > { %2602 = vmatpush3.bf16.msra.mxu1 %v2912_v52  ;;  %v2356_v52 = vrot.slane %v1343_v47, 9 }
  0x4d   : > { %2603 = vmatprep.subr.bf16.mxu1 %v2914_v19 }
  0x4e   : > { %2698 = vmatpush3.bf16.msra.mxu0 %v2913_v13  ;;  %v3413_v12 = vsel %vm3307_vm5, %v2356_v52, %v1706_v46 }
  0x4f   : > { %2596 = vmatmul.mubr.bf16.gmra.mrb[4].mxu1 %v3324_v6  ;;  %2699 = vmatprep.subr.bf16.mxu0 %v2915_v24 }
  0x50   : > { %2604 = vmatpush3.bf16.msra.mxu1 %v2914_v19  ;;  %2615 = vmatprep.mubr.bf16.mxu1 %v2174_v21  ;;  %v1342_v21 = vld [vmem:[%s3089_s21 + $0x40] sm:$0xe]  ;;  %v293_v19 = vld [vmem:[%s3089_s21 + $0x48] sm:$0xf] }
  0x51   : > { %2605 = vmatprep.subr.bf16.mxu1 %v2916_v9  ;;  %2692 = vmatmul.mubr.bf16.gmra.mrb[4].mxu0 %v2282_v50  ;;  %v2327_v48 = vrot.slane %v1342_v21, 9  ;;  %v2201_v2 = vcombine.low %v3224_v55, %v293_v19  ;;  %v3454_v55 = vcombine.low %v3387_v63, %v3441_v33  ;;  %v2947_v50 = vld [vmem:[%s3623_s1 + $0x210] sm:$0xff]  }
  0x52   : > { %2700 = vmatpush3.bf16.msra.mxu0 %v2915_v24  ;;  %2711 = vmatprep.mubr.bf16.mxu0 %v2315_v34  ;;  %v2942_v24 = vld [vmem:[%s3623_s1 + $0x170] sm:$0xff]  }
  0x53   : > { %2701 = vmatprep.subr.bf16.mxu0 %v2917_v32  ;;  %v3409_v53 = vsel %vm3307_vm5, %v2327_v48, %v1553_v43 }
  0x54   : > { %2606 = vmatpush3.bf16.msra.mxu1 %v2916_v9  ;;  %v2373_v56 = vcombine.low %v3409_v53, %v3413_v12  ;;  %v1393_v9 = vrot.slane %v3231_v60, 5 }
  0x55   : > { %2607 = vmatprep.subr.bf16.mxu1 %v2918_v20 }
  0x56   : > { %2702 = vmatpush3.bf16.msra.mxu0 %v2917_v32  ;;  %v2952_v32 = vld [vmem:[%s3623_s1 + $0x238] sm:$0xff]  }
  0x57   : > { %2703 = vmatprep.subr.bf16.mxu0 %v2919_v40 }
  0x58   : > { %2608 = vmatpush3.bf16.msra.mxu1 %v2918_v20  ;;  %v2939_v20 = vld [vmem:[%s3623_s1 + $0x168] sm:$0xff]  }
  0x59   : > { %2609 = vmatprep.subr.bf16.mxu1 %v2920_v30 }
  0x5a   : > { %2704 = vmatpush3.bf16.msra.mxu0 %v2919_v40 }
  0x5b   : > { %2705 = vmatprep.subr.bf16.mxu0 %v2921_v3 }
  0x5c   : > { %2610 = vmatpush3.bf16.msra.mxu1 %v2920_v30 }
  0x5d   : > { %2611 = vmatprep.subr.bf16.mxu1 %v2923_v38 }
  0x5e   : > { %2706 = vmatpush3.bf16.msra.mxu0 %v2921_v3 }
  0x5f   : > { %2707 = vmatprep.subr.bf16.mxu0 %v2924_v39 }
  0x60   : > { %2612 = vmatpush3.bf16.msra.mxu1 %v2923_v38 }
  0x61   : > { %2613 = vmatprep.subr.bf16.mxu1 %v2926_v44 }
  0x62   : > { %2708 = vmatpush3.bf16.msra.mxu0 %v2924_v39 }
  0x63   : > { %2709 = vmatprep.subr.bf16.mxu0 %v2927_v58 }
  0x64   : > { %2614 = vmatpush3.bf16.msra.mxu1 %v2926_v44 }
  0x65   : > { %2623 = vmatprep.subr.bf16.mxu1 %v2928_v62 }
  0x66   : > { %2710 = vmatpush3.bf16.msra.mxu0 %v2927_v58 }
  0x67   : > { %2616 = vmatmul.mubr.bf16.vlgmr.msra.gmra.mrb[0].mxu1 %v3296_v49  ;;  %v1341_v49 = vld [vmem:[%s3089_s21 + $0x38] sm:$0xe]  ;;  %2719 = vmatprep.subr.bf16.mxu0 %v2929_v1 }
  0x68   : > { %2624 = vmatpush3.bf16.msra.mxu1 %v2928_v62  ;;  %2619 = vmatprep.mubr.bf16.mxu1 %v3324_v6  ;;  %v2297_v6 = vrot.slane %v1340_v22, 9  ;;  %v2298_v7 = vrot.slane %v1341_v49, 9  ;;  %v2382_v62 = vld [vmem:[%s3624_s2] ss:$0 sm:$0xff] }
  0x69   : > { %2625 = vmatprep.subr.bf16.mxu1 %v2930_v25  ;;  %2712 = vmatmul.mubr.bf16.vlgmr.msra.gmra.mrb[0].mxu0 %v3354_v18 }
  0x6a   : > { %2720 = vmatpush3.bf16.msra.mxu0 %v2929_v1  ;;  %v1390_v60 = vsel %vm3307_vm5, %v2297_v6, %v1389_v11  ;;  %v3464_v26 = vsel %vm3307_vm5, %v2298_v7, %v1393_v9  ;;  %2715 = vmatprep.mubr.bf16.mxu0 %v3454_v55 }
  0x6b   : > { %2721 = vmatprep.subr.bf16.mxu0 %v2931_v10  ;;  %v2318_v13 = vcombine.low %v1390_v60, %v3464_v26  ;;  %v2346_v30 = vcombine.low %v3441_v33, %v1390_v60  ;;  %v2347_v31 = vcombine.low %v3464_v26, %v3409_v53 }
  0x6c   : > { %2626 = vmatpush3.bf16.msra.mxu1 %v2930_v25 }
  0x6d   : > { %2627 = vmatprep.subr.bf16.mxu1 %v2932_v0 }
  0x6e   : > { %2722 = vmatpush3.bf16.msra.mxu0 %v2931_v10 }
  0x6f   : > { %2620 = vmatmul.mubr.bf16.gmra.mrb[4].mxu1 %v2201_v2  ;;  %2723 = vmatprep.subr.bf16.mxu0 %v2933_v51 }
  0x70   : > { %2628 = vmatpush3.bf16.msra.mxu1 %v2932_v0  ;;  %2639 = vmatprep.mubr.bf16.mxu1 %v3169_v4  ;;  %v2941_v4 = vld [vmem:[%s3623_s1 + $0x70] sm:$0xff]  }
  0x71   : > { %2629 = vmatprep.subr.bf16.mxu1 %v2934_v5  ;;  %2716 = vmatmul.mubr.bf16.gmra.mrb[4].mxu0 %v2318_v13 }
  0x72   : > { %2724 = vmatpush3.bf16.msra.mxu0 %v2933_v51  ;;  %2735 = vmatprep.mubr.bf16.mxu0 %v2344_v16 }
  0x73   : > { %2725 = vmatprep.subr.bf16.mxu0 %v2935_v27 }
  0x74   : > { %2630 = vmatpush3.bf16.msra.mxu1 %v2934_v5 }
  0x75   : > { %2631 = vmatprep.subr.bf16.mxu1 %v2936_v35 }
  0x76   : > { %2726 = vmatpush3.bf16.msra.mxu0 %v2935_v27 }
  0x77   : > { %2727 = vmatprep.subr.bf16.mxu0 %v2937_v17 }
  0x78   : > { %2632 = vmatpush3.bf16.msra.mxu1 %v2936_v35 }
  0x79   : > { %2633 = vmatprep.subr.bf16.mxu1 %v2938_v54 }
  0x7a   : > { %2728 = vmatpush3.bf16.msra.mxu0 %v2937_v17 }
  0x7b   : > { %2729 = vmatprep.subr.bf16.mxu0 %v2939_v20 }
  0x7c   : > { %2634 = vmatpush3.bf16.msra.mxu1 %v2938_v54 }
  0x7d   : > { %2635 = vmatprep.subr.bf16.mxu1 %v2941_v4 }
  0x7e   : > { %2730 = vmatpush3.bf16.msra.mxu0 %v2939_v20 }
  0x7f   : > { %2731 = vmatprep.subr.bf16.mxu0 %v2942_v24 }
  0x80   : > { %2636 = vmatpush3.bf16.msra.mxu1 %v2941_v4 }
  0x81   : > { %2637 = vmatprep.subr.bf16.mxu1 %v2943_v8 }
  0x82   : > { %2732 = vmatpush3.bf16.msra.mxu0 %v2942_v24 }
  0x83   : > { %2733 = vmatprep.subr.bf16.mxu0 %v2944_v29 }
  0x84   : > { %2638 = vmatpush3.bf16.msra.mxu1 %v2943_v8 }
  0x85   : > { %2767 = vmatprep.subr.bf16.mxu1 %v2945_v23 }
  0x86   : > { %2734 = vmatpush3.bf16.msra.mxu0 %v2944_v29 }
  0x87   : > { %2640 = vmatmul.mubr.bf16.vlgmr.msra.gmra.mrb[0].mxu1 %v3274_v42  ;;  %2743 = vmatprep.subr.bf16.mxu0 %v2945_v23  ;;  %v2948_v42 = vld [vmem:[%s3623_s1 + $0x218] sm:$0xff]  }
  0x88   : > { %2775 = vmatpush3.bf16.msra.mxu1 %v2945_v23  ;;  %2643 = vmatprep.mubr.bf16.mxu1 %v3334_v45  ;;  %v2949_v45 = vld [vmem:[%s3623_s1 + $0x220] sm:$0xff]  }
  0x89   : > { %2768 = vmatprep.subr.bf16.mxu1 %v2946_v28  ;;  %2736 = vmatmul.mubr.bf16.vlgmr.msra.gmra.mrb[0].mxu0 %v2345_v41 }
  0x8a   : > { %2744 = vmatpush3.bf16.msra.mxu0 %v2945_v23  ;;  %2739 = vmatprep.mubr.bf16.mxu0 %v2346_v30 }
  0x8b   : > { %2745 = vmatprep.subr.bf16.mxu0 %v2946_v28 }
  0x8c   : > { %2776 = vmatpush3.bf16.msra.mxu1 %v2946_v28 }
  0x8d   : > { %2769 = vmatprep.subr.bf16.mxu1 %v2947_v50 }
  0x8e   : > { %2746 = vmatpush3.bf16.msra.mxu0 %v2946_v28 }
  0x8f   : > { %2644 = vmatmul.mubr.bf16.gmra.mrb[4].mxu1 %v3344_v14  ;;  %v2950_v14 = vld [vmem:[%s3623_s1 + $0x228] sm:$0xff]   ;;  %2747 = vmatprep.subr.bf16.mxu0 %v2947_v50 }
  0x90   : > { %2777 = vmatpush3.bf16.msra.mxu1 %v2947_v50  ;;  %2763 = vmatprep.mubr.bf16.mxu1 %v2318_v13 }
  0x91   : > { %2770 = vmatprep.subr.bf16.mxu1 %v2948_v42  ;;  %2740 = vmatmul.mubr.bf16.gmra.mrb[4].mxu0 %v2347_v31 }
  0x92   : > { %2748 = vmatpush3.bf16.msra.mxu0 %v2947_v50  ;;  %2759 = vmatprep.mubr.bf16.mxu0 %v3354_v18 }
  0x93   : > { %2749 = vmatprep.subr.bf16.mxu0 %v2948_v42 }
  0x94   : > { %2778 = vmatpush3.bf16.msra.mxu1 %v2948_v42 }
  0x95   : > { %2771 = vmatprep.subr.bf16.mxu1 %v2949_v45 }
  0x96   : > { %2750 = vmatpush3.bf16.msra.mxu0 %v2948_v42 }
  0x97   : > { %2751 = vmatprep.subr.bf16.mxu0 %v2949_v45 }
  0x98   : > { %2779 = vmatpush3.bf16.msra.mxu1 %v2949_v45 }
  0x99   : > { %2772 = vmatprep.subr.bf16.mxu1 %v2950_v14 }
  0x9a   : > { %2752 = vmatpush3.bf16.msra.mxu0 %v2949_v45 }
  0x9b   : > { %2753 = vmatprep.subr.bf16.mxu0 %v2950_v14 }
  0x9c   : > { %2780 = vmatpush3.bf16.msra.mxu1 %v2950_v14 }
  0x9d   : > { %2773 = vmatprep.subr.bf16.mxu1 %v2951_v15 }
  0x9e   : > { %2754 = vmatpush3.bf16.msra.mxu0 %v2950_v14 }
  0x9f   : > { %2755 = vmatprep.subr.bf16.mxu0 %v2951_v15 }
  0xa0   : > { %2781 = vmatpush3.bf16.msra.mxu1 %v2951_v15 }
  0xa1   : > { %2774 = vmatprep.subr.bf16.mxu1 %v2952_v32 }
  0xa2   : > { %2756 = vmatpush3.bf16.msra.mxu0 %v2951_v15 }
  0xa3   : > { %2757 = vmatprep.subr.bf16.mxu0 %v2952_v32 }
  0xa4   : > { %2782 = vmatpush3.bf16.msra.mxu1 %v2952_v32 }
  0xa6   : > { %2758 = vmatpush3.bf16.msra.mxu0 %v2952_v32 }
  0xa7   : > { %2764 = vmatmul.mubr.bf16.vlgmr.msra.gmra.mrb[8].mxu1 %v2373_v56 }
  0xa9   : > { %2760 = vmatmul.mubr.bf16.vlgmr.msra.gmra.mrb[0].mxu0 %v3454_v55 }
 0x15a   : > { %v2641_v18 = vpop.f32.mrb[0].mxu1 }
 0x15b   : > { %v979_v34 = vpop.f32.mrb[1].mxu1 }
 0x15c   : > { %v2642_v36 = vpop.f32.mrb[2].mxu1 }
 0x15d   : > { %v982_v37 = vpop.f32.mrb[3].mxu1 }
 0x162   : > { %v2645_v38 = vpop.f32.mrb[4].mxu1 }
 0x163   : > { %v995_v63 = vpop.f32.mrb[5].mxu1 }
 0x164   : > { %v2646_v40 = vpop.f32.mrb[6].mxu1  ;;  %v2741_v43 = vpop.f32.mrb[4].mxu0 }
 0x165   : > { %v998_v41 = vpop.f32.mrb[7].mxu1  ;;  %v2787_v44 = vadd.f32 %v2741_v43, %v2645_v38  ;;  %v1679_v46 = vpop.f32.mrb[5].mxu0 }
 0x166   : > { %v2789_v3 = vadd.f32 %v1679_v46, %v995_v63  ;;  %v2742_v21 = vpop.f32.mrb[6].mxu0 }
 0x167   : > { %v2791_v47 = vadd.f32 %v2742_v21, %v2646_v40  ;;  %v1682_v48 = vpop.f32.mrb[7].mxu0 }
 0x168   : > { %v2793_v52 = vadd.f32 %v1682_v48, %v998_v41 }
 0x17a   : > { %v2765_v53 = vpop.f32.mrb[8].mxu1 }
 0x17b   : > { %v2788_v12 = vadd.f32 %v2787_v44, %v2765_v53  ;;  %v1826_v39 = vpop.f32.mrb[9].mxu1  ;;  %v2439_v53 = vld [vmem:[%s3572_s23 + $0x18] sm:$0xff]  }
 0x17c   : > { %v2790_v56 = vadd.f32 %v2789_v3, %v1826_v39  ;;  %v2766_v57 = vpop.f32.mrb[10].mxu1  ;;  %v2761_v11 = vpop.f32.mrb[0].mxu0 }
 0x17d   : > { %v3539_v25 = vadd.f32 %v2788_v12, %v2382_v62  ;;  %v2792_v58 = vadd.f32 %v2791_v47, %v2766_v57  ;;  %v1829_v59 = vpop.f32.mrb[11].mxu1  ;;  %v2783_v9 = vadd.f32 %v2761_v11, %v2641_v18  ;;  %v1810_v10 = vpop.f32.mrb[1].mxu0  ;;  %v2438_v57 = vld [vmem:[%s3572_s23 + $0x10] sm:$0xff]  }
 0x17e   : > { %v3541_v61 = vadd.f32 %v2790_v56, %v2382_v62  ;;  %v2794_v19 = vadd.f32 %v2793_v52, %v1829_v59  ;;  %v2784_v35 = vadd.f32 %v1810_v10, %v979_v34  ;;  %v2762_v60 = vpop.f32.mrb[2].mxu0 }
 0x17f   : > { %v1870_v0 = vmin.f32 %v3539_v25, 20.0  ;;  %v3544_v1 = vadd.f32 %v2792_v58, %v2382_v62  ;;  %v3551_v26 = vadd.f32 %v2783_v9, %v2382_v62  ;;  %v2785_v51 = vadd.f32 %v2762_v60, %v2642_v36  ;;  %v1813_v13 = vpop.f32.mrb[3].mxu0 }
 0x180   : > { %v1868_v22 = vmin.f32 %v3541_v61, 20.0  ;;  %v3547_v49 = vadd.f32 %v2794_v19, %v2382_v62  ;;  %v3553_v54 = vadd.f32 %v2784_v35, %v2382_v62  ;;  %v2786_v27 = vadd.f32 %v1813_v13, %v982_v37 }
 0x181   : > { %v1884_v33 = vmul.f32 1.442695, %v1870_v0  ;;  %v1871_v2 = vmin.f32 %v3544_v1, 20.0  ;;  %v1866_v16 = vmin.f32 %v3551_v26, 20.0  ;;  %v3556_v4 = vadd.f32 %v2785_v51, %v2382_v62 }
 0x182   : > { %v1880_v5 = vmul.f32 1.442695, %v1868_v22  ;;  %v1869_v6 = vmin.f32 %v3547_v49, 20.0  ;;  %v1864_v17 = vmin.f32 %v3553_v54, 20.0  ;;  %v3560_v8 = vadd.f32 %v2786_v27, %v2382_v62 }
 0x183   : > { %2953 = vpow2.f32 %v1884_v33  ;;  %v1886_v7 = vmul.f32 1.442695, %v1871_v2  ;;  %v1876_v20 = vmul.f32 1.442695, %v1866_v16  ;;  %v1867_v23 = vmin.f32 %v3556_v4, 20.0 }
 0x184   : > { %2955 = vpow2.f32 %v1880_v5  ;;  %v1882_v55 = vmul.f32 1.442695, %v1869_v6  ;;  %v1872_v24 = vmul.f32 1.442695, %v1864_v17  ;;  %v1865_v28 = vmin.f32 %v3560_v8, 20.0 }
 0x185   : > { %2957 = vpow2.f32 %v1886_v7  ;;  %v1878_v29 = vmul.f32 1.442695, %v1867_v23  ;;  %v2415_v22 = vunpack.c.l.bf16 %v2439_v53  ;;  %v2411_v6 = vunpack.c.l.bf16 %v2438_v57 }
 0x186   : > { %2959 = vpow2.f32 %v1882_v55  ;;  %v1874_v30 = vmul.f32 1.442695, %v1865_v28  ;;  %v2416_v55 = vunpack.c.h.bf16 %v2439_v53  ;;  %vm1942_vm6 = vcmp.gt.f32.partialorder %v3539_v25, 20.0 }
 0x187   : > { %2961 = vpow2.f32 %v1876_v20  ;;  %vm1940_vm7 = vcmp.gt.f32.partialorder %v3541_v61, 20.0  ;;  %v2412_v17 = vunpack.c.h.bf16 %v2438_v57  ;;  %vm1943_vm8 = vcmp.gt.f32.partialorder %v3544_v1, 20.0 }
 0x188   : > { %2963 = vpow2.f32 %v1872_v24  ;;  %vm1941_vm9 = vcmp.gt.f32.partialorder %v3547_v49, 20.0  ;;  %vm1938_vm10 = vcmp.gt.f32.partialorder %v3551_v26, 20.0  ;;  %vm1936_vm11 = vcmp.gt.f32.partialorder %v3553_v54, 20.0 }
 0x189   : > { %2965 = vpow2.f32 %v1878_v29  ;;  %vm1939_vm12 = vcmp.gt.f32.partialorder %v3556_v4, 20.0  ;;  %vm1937_vm13 = vcmp.gt.f32.partialorder %v3560_v8, 20.0 }
 0x18a   : > { %2967 = vpow2.f32 %v1874_v30  ;;  %v2437_v30 = vld [vmem:[%s3572_s23 + $0x8] sm:$0xff]  }
 0x18d   : > { %v2954_v50 = vpop.eup %2953 }
 0x18e   : > { %v2956_v42 = vpop.eup %2955  ;;  %v1894_v45 = vadd.f32 2.0, %v2954_v50 }
 0x18f   : > { %v2958_v31 = vpop.eup %2957  ;;  %v1892_v14 = vadd.f32 2.0, %v2956_v42 }
 0x190   : > { %v2960_v15 = vpop.eup %2959  ;;  %v1902_v32 = vmul.f32 %v2954_v50, %v1894_v45  ;;  %v1895_v18 = vadd.f32 2.0, %v2958_v31 }
 0x191   : > { %v1900_v34 = vmul.f32 %v2956_v42, %v1892_v14  ;;  %v1893_v36 = vadd.f32 2.0, %v2960_v15  ;;  %v2962_v44 = vpop.eup %2961  ;;  %v2402_v42 = vld [vmem:[%s3572_s23] sm:$0xff]  }
 0x192   : > { %v1918_v37 = vadd.f32 2.0, %v1902_v32  ;;  %v1903_v38 = vmul.f32 %v2958_v31, %v1895_v18  ;;  %v2964_v46 = vpop.eup %2963  ;;  %v1890_v3 = vadd.f32 2.0, %v2962_v44  ;;  %v1910_v0 = vmul.f32 %v1902_v32, %v3539_v25 }
 0x193   : > { %v1916_v63 = vadd.f32 2.0, %v1900_v34  ;;  %v1901_v40 = vmul.f32 %v2960_v15, %v1893_v36  ;;  %v2966_v21 = vpop.eup %2965  ;;  %v1888_v47 = vadd.f32 2.0, %v2964_v46  ;;  %v1908_v5 = vmul.f32 %v1900_v34, %v3541_v61 }
 0x194   : > { %2969 = vrcp.f32 %v1918_v37  ;;  %v1919_v41 = vadd.f32 2.0, %v1903_v38  ;;  %v2968_v48 = vpop.eup %2967  ;;  %v1898_v52 = vmul.f32 %v2962_v44, %v1890_v3  ;;  %v1891_v62 = vadd.f32 2.0, %v2966_v21 }
 0x195   : > { %2971 = vrcp.f32 %v1916_v63  ;;  %v1917_v43 = vadd.f32 2.0, %v1901_v40  ;;  %v1896_v12 = vmul.f32 %v2964_v46, %v1888_v47  ;;  %v1889_v39 = vadd.f32 2.0, %v2968_v48 }
 0x196   : > { %2973 = vrcp.f32 %v1919_v41  ;;  %v1914_v56 = vadd.f32 2.0, %v1898_v52  ;;  %v1899_v58 = vmul.f32 %v2966_v21, %v1891_v62  ;;  %v1911_v10 = vmul.f32 %v1903_v38, %v3544_v1 }
 0x197   : > { %2975 = vrcp.f32 %v1917_v43  ;;  %v1912_v59 = vadd.f32 2.0, %v1896_v12  ;;  %v1897_v19 = vmul.f32 %v2968_v48, %v1889_v39  ;;  %v1909_v51 = vmul.f32 %v1901_v40, %v3547_v49 }
 0x198   : > { %2977 = vrcp.f32 %v1914_v56  ;;  %v1915_v33 = vadd.f32 2.0, %v1899_v58  ;;  %v1906_v45 = vmul.f32 %v1898_v52, %v3551_v26  ;;  %v1904_v14 = vmul.f32 %v1896_v12, %v3553_v54 }
 0x199   : > { %2979 = vrcp.f32 %v1912_v59  ;;  %v1913_v11 = vadd.f32 2.0, %v1897_v19  ;;  %v2407_v18 = vunpack.c.l.bf16 %v2437_v30  ;;  %v2403_v34 = vunpack.c.l.bf16 %v2402_v42 }
 0x19a   : > { %2981 = vrcp.f32 %v1915_v33  ;;  %v1907_v36 = vmul.f32 %v1899_v58, %v3556_v4  ;;  %v2408_v63 = vunpack.c.h.bf16 %v2437_v30  ;;  %v1905_v40 = vmul.f32 %v1897_v19, %v3560_v8 }
 0x19b   : > { %2983 = vrcp.f32 %v1913_v11  ;;  %v2404_v46 = vunpack.c.h.bf16 %v2402_v42 }
 0x19e   : > { %v2970_v2 = vpop.eup %2969 }
 0x19f   : > { %v2972_v7 = vpop.eup %2971  ;;  %v1934_v9 = vmul.f32 %v2970_v2, %v1910_v0 }
 0x1a0   : > { %v2974_v35 = vpop.eup %2973  ;;  %v1932_v60 = vmul.f32 %v2972_v7, %v1908_v5 }
 0x1a1   : > { %v2976_v13 = vpop.eup %2975  ;;  %v1950_v27 = vsel %vm1942_vm6, %v3539_v25, %v1934_v9  ;;  %v1935_v16 = vmul.f32 %v2974_v35, %v1911_v10 }
 0x1a2   : > { %v1948_v20 = vsel %vm1940_vm7, %v3541_v61, %v1932_v60  ;;  %v1933_v23 = vmul.f32 %v2976_v13, %v1909_v51  ;;  %v1974_v28 = vadd.f32 %v2415_v22, %v1950_v27  ;;  %v2978_v31 = vpop.eup %2977 }
 0x1a3   : > { %v1951_v24 = vsel %vm1943_vm8, %v3544_v1, %v1935_v16  ;;  %v1972_v25 = vadd.f32 %v2411_v6, %v1948_v20  ;;  %v1930_v32 = vmul.f32 %v2978_v31, %v1906_v45 }
 0x1a4   : > { %v1975_v29 = vadd.f32 %v2416_v55, %v1951_v24  ;;  %v1949_v50 = vsel %vm1941_vm9, %v3547_v49, %v1933_v23  ;;  %v2980_v49 = vpop.eup %2979 }
 0x1a5   : > { %v1973_v61 = vadd.f32 %v2412_v17, %v1949_v50  ;;  %v2982_v37 = vpop.eup %2981  ;;  %v1928_v38 = vmul.f32 %v2980_v49, %v1904_v14  ;;  %v1946_v43 = vsel %vm1938_vm10, %v3551_v26, %v1930_v32 }
 0x1a6   : > { %v2435_v1 = vpack.c.bf16 %v1975_v29, %v1974_v28  ;;  %v2984_v41 = vpop.eup %2983  ;;  %v1931_v44 = vmul.f32 %v2982_v37, %v1907_v36  ;;  %v1970_v48 = vadd.f32 %v2407_v18, %v1946_v43 }
 0x1a7   : > { %v2430_v15 = vpack.c.bf16 %v1973_v61, %v1972_v25  ;;  %v1944_v3 = vsel %vm1936_vm11, %v3553_v54, %v1928_v38  ;;  %v1929_v21 = vmul.f32 %v2984_v41, %v1905_v40 }
 0x1a8   : > { %2442 = vst [vmem:[%s3595_s25 + $0x18] sm:$0xff] %v2435_v1   ;;  %v1947_v47 = vsel %vm1939_vm12, %v3556_v4, %v1931_v44  ;;  %v1968_v26 = vadd.f32 %v2403_v34, %v1944_v3 }
 0x1a9   : > { %2441 = vst [vmem:[%s3595_s25 + $0x10] sm:$0xff] %v2430_v15   ;;  %v1971_v52 = vadd.f32 %v2408_v63, %v1947_v47  ;;  %v1945_v62 = vsel %vm1937_vm13, %v3560_v8, %v1929_v21 }
 0x1aa   : > { %v1969_v53 = vadd.f32 %v2404_v46, %v1945_v62 }
 0x1ab   : > { %v2425_v12 = vpack.c.bf16 %v1971_v52, %v1970_v48 }
 0x1ac   : > { %v2420_v39 = vpack.c.bf16 %v1969_v53, %v1968_v26 }
 0x1ad   : > { %2440 = vst [vmem:[%s3595_s25 + $0x8] sm:$0xff] %v2425_v12  }
 0x1ae   : > { %2421 = vst [vmem:[%s3595_s25] sm:$0xff] %v2420_v39  }
 0x1af PF: > { %s14_s17 = sadd.s32 1, %s3007_s17   ;;  %s3631_s15 = smov %s3003_s16 }
 0x1b0   : > { %p11_p6 = scmp.ge.s32.totalorder %s14_s17, 4   ;;  %s3632_s16 = smov %s3634_s18 }
 0x1b2   :  { %13 = sbr.rel (!%p11_p6) target bundleno = 2 (0x2), region = 83 }

// kernel: cspdarknet_block_forward.14
= control target key start
LH: loop header
LB: loop body
LE: loop exit
PB: predicated region body
PF: predicated region fallthrough
CT: control target
= control target key end

     0   :  { %s2909_s12 = smov 0   ;;  %s2911_s13 = smov 0   ;;  %s3481_s0 = inlined_call_operand.vmem [shape: bf16[2,10,10,128], index: 0, kind: input, shape index: {}]   ;;  %s3482_s1 = inlined_call_operand.vmem [shape: bf16[9,128,128], index: 1, kind: input, shape index: {}]   ;;  %s3483_s2 = inlined_call_operand.vmem [shape: f32[1,128], index: 2, kind: input, shape index: {}]   ;;  %s3484_s3 = inlined_call_operand.vmem [shape: bf16[128,128], index: 3, kind: output, shape index: {}]  }
   0x1   :  { %s2913_s14 = smov 0  }
   0x2 LB: > { %s25_s15 = sadd.s32 1, %s2883_s13  ;;  %p2040_p0 = scmp.ge.s32.totalorder %s2887_s14, 1  ;;  %s2887_s14 = sphi %s2913_s14, %s13_s14   ;;  %s2883_s13 = sphi %s2911_s13, %s3490_s13   ;;  %s2879_s12 = sphi %s2909_s12, %s3489_s12  }
   0x3   : > { %p27_p1 = scmp.ge.s32.totalorder %s25_s15, 2  ;;  %p168_p2 = scmp.lt.s32.totalorder %s2887_s14, 3 }
   0x5   : > { %s3492_s15 = smov (%p27_p1, %s25_s15), 0  ;;  %p169_p3 = pnand %p2040_p0, %p168_p2 }
   0x6   : > { %v2752_v0 = vld [vmem:[%s3482_s1 + $0xc0] sm:$0xff] (!%p169_p3)   ;;  %v2754_v2 = vld [vmem:[%s3482_s1 + $0xc8] sm:$0xff] (!%p169_p3)   ;;  %p202_p4 = scmp.lt.s32.totalorder (!%p169_p3), %s2879_s12, 1  ;;  %v2756_v4 = vld [vmem:[%s3482_s1 + $0xd0] sm:$0xff] (!%p169_p3)   ;;  %vm689_vm0 = vsmask.f32 (!%p169_p3), 3328 }
   0x7   : > { %172 = sbr.rel (%p169_p3) target bundleno = 428 (0x1ac), region = 32  ;;  %v2753_v1 = vld [vmem:[%s3482_s1 + $0x100] sm:$0xff] (!%p169_p3)   ;;  %2431 = vmatprep.subr.bf16.mxu1 (!%p169_p3), %v2752_v0  ;;  %v2755_v3 = vld [vmem:[%s3482_s1 + $0x108] sm:$0xff] (!%p169_p3)   ;;  %v2757_v5 = vld [vmem:[%s3482_s1 + $0x110] sm:$0xff] (!%p169_p3)   ;;  %vm690_vm1 = vsmask.f32 (!%p169_p3), 7440 }
   0x8   : > { %2527 = vmatprep.subr.bf16.mxu0 (!%p169_p3), %v2753_v1  ;;  %2432 = vmatpush3.bf16.msra.mxu1 (!%p169_p3), %v2752_v0  ;;  %v2758_v6 = vld [vmem:[%s3482_s1 + $0xd8] sm:$0xff] (!%p169_p3)   ;;  %v2760_v8 = vld [vmem:[%s3482_s1 + $0xe0] sm:$0xff] (!%p169_p3)   ;;  %v2762_v10 = vld [vmem:[%s3482_s1 + $0xe8] sm:$0xff] (!%p169_p3)   ;;  %vm1300_vm3 = vcmask (!%p169_p3), 1042432   ;;  %vm1301_vm4 = vcmask (!%p169_p3), 1046532   ;;  %s2042_s5 = sshll.u32 (!%p169_p3), %s2879_s12, 3 }
   0x9   : > { %2528 = vmatpush3.bf16.msra.mxu0 (!%p169_p3), %v2753_v1  ;;  %2433 = vmatprep.subr.bf16.mxu1 (!%p169_p3), %v2754_v2  ;;  %v2759_v7 = vld [vmem:[%s3482_s1 + $0x118] sm:$0xff] (!%p169_p3)   ;;  %v2761_v9 = vld [vmem:[%s3482_s1 + $0x120] sm:$0xff] (!%p169_p3)   ;;  %v2763_v13 = vld [vmem:[%s3482_s1 + $0x128] sm:$0xff] (!%p169_p3)   ;;  %p215_p5 = scmp.lt.s32.totalorder (!%p169_p3), %s2042_s5, 15 }
   0xa   : > { %2529 = vmatprep.subr.bf16.mxu0 (!%p169_p3), %v2755_v3  ;;  %v2764_v15 = vld [vmem:[%s3482_s1 + $0xf0] sm:$0xff] (!%p169_p3)   ;;  %v2766_v34 = vld [vmem:[%s3482_s1 + $0xf8] sm:$0xff] (!%p169_p3)   ;;  %v2771_v44 = vld [vmem:[%s3482_s1] sm:$0xff] (!%p169_p3)  }
   0xb   : > { %v2765_v17 = vld [vmem:[%s3482_s1 + $0x130] sm:$0xff] (!%p169_p3)   ;;  %v2767_v38 = vld [vmem:[%s3482_s1 + $0x138] sm:$0xff] (!%p169_p3)   ;;  %vm3019_vm2 = vmor (!%p169_p3), %vm689_vm0, %vm690_vm1 }
   0xc   : > { %2434 = vmatpush3.bf16.msra.mxu1 (!%p169_p3), %v2754_v2  ;;  %v2772_v59 = vld [vmem:[%s3482_s1 + $0x1c0] sm:$0xff] (!%p169_p3)   ;;  %vm3182_vm5 = vmor (!%p169_p3), %vm1300_vm3, %vm1301_vm4 }
   0xd   : > { %2530 = vmatpush3.bf16.msra.mxu0 (!%p169_p3), %v2755_v3  ;;  %2435 = vmatprep.subr.bf16.mxu1 (!%p169_p3), %v2756_v4 }
   0xe   : > { %s203_s28 = scalar_select %p202_p4, %s2879_s12, 1  ;;  %2531 = vmatprep.subr.bf16.mxu0 %v2757_v5 }
   0xf   : > { %s3494_s5 = smov (!%p215_p5, %s2042_s5), 15 }
  0x10   : > { %2436 = vmatpush3.bf16.msra.mxu1 %v2756_v4  ;;  %s2727_s6 = smul.u32 80, %s203_s28  ;;  %s2043_s12 = sshll.u32 %s3494_s5, 2 }
  0x11   : > { %2532 = vmatpush3.bf16.msra.mxu0 %v2757_v5  ;;  %2437 = vmatprep.subr.bf16.mxu1 %v2758_v6  ;;  %s3450_s8 = scalar_lea.vmem %s3484_s3, %s2043_s12 }
  0x12   : > { %2533 = vmatprep.subr.bf16.mxu0 %v2759_v7  ;;  %s2964_s17 = scalar_lea.vmem %s3481_s0, %s2727_s6 }
  0x13   : > { %v2970_v11 = vld [vmem:[%s2964_s17 + $0x8] sm:$0xf]  ;;  %v2973_v12 = vld [vmem:[%s2964_s17 + $0x10] sm:$0xf]  ;;  %v669_v16 = vld [vmem:[%s2964_s17] sm:$0xf] }
  0x14   : > { %2438 = vmatpush3.bf16.msra.mxu1 %v2758_v6  ;;  %v2060_v14 = vcombine.low %v2970_v11, %v2973_v12  ;;  %v671_v18 = vld [vmem:[%s2964_s17 + $0x8] sm:$0xf]  ;;  %v2989_v19 = vld [vmem:[%s2964_s17 + $0xc] sm:$0x1]  ;;  %v2992_v20 = vld [vmem:[%s2964_s17 + $0x4] sm:$0x1] }
  0x15   : > { %2534 = vmatpush3.bf16.msra.mxu0 %v2759_v7  ;;  %2439 = vmatprep.subr.bf16.mxu1 %v2760_v8  ;;  %v673_v21 = vld [vmem:[%s2964_s17 + $0x10] sm:$0xf]  ;;  %v2996_v22 = vld [vmem:[%s2964_s17 + $0x14] sm:$0x1]  ;;  %v693_v23 = vshrl.u32 %v669_v16, 16  ;;  %v696_v24 = vshll.u32 %v669_v16, 16 }
  0x16   : > { %2535 = vmatprep.subr.bf16.mxu0 %v2761_v9  ;;  %2447 = vmatprep.mubr.bf16.mxu1 %v2060_v14  ;;  %v675_v25 = vld [vmem:[%s2964_s17 + $0x18] sm:$0xf]  ;;  %v702_v26 = vshll.u32 %v2992_v20, 16  ;;  %v707_v27 = vshrl.u32 %v671_v18, 16  ;;  %v710_v28 = vshll.u32 %v671_v18, 16  ;;  %v716_v29 = vshll.u32 %v2989_v19, 16 }
  0x17   : > { %v695_v30 = vrot.slane %v693_v23, 4  ;;  %v698_v31 = vrot.slane %v696_v24, 5  ;;  %v721_v32 = vshrl.u32 %v673_v21, 16  ;;  %v724_v33 = vshll.u32 %v673_v21, 16  ;;  %v3008_v39 = vld [vmem:[%s2964_s17 + $0x18] sm:$0xf] }
  0x18   : > { %2440 = vmatpush3.bf16.msra.mxu1 %v2760_v8  ;;  %v704_v35 = vrot.slane %v702_v26, 5  ;;  %v709_v36 = vrot.slane %v707_v27, 4  ;;  %v712_v37 = vrot.slane %v710_v28, 5  ;;  %v730_v43 = vshll.u32 %v2996_v22, 16  ;;  %v3015_v45 = vld [vmem:[%s2964_s17 + $0x1c] sm:$0x1] }
  0x19   : > { %2536 = vmatpush3.bf16.msra.mxu0 %v2761_v9  ;;  %2441 = vmatprep.subr.bf16.mxu1 %v2762_v10  ;;  %v699_v40 = vor.u32 %v698_v31, %v695_v30  ;;  %v723_v41 = vrot.slane %v721_v32, 4  ;;  %v726_v42 = vrot.slane %v724_v33, 5  ;;  %v718_v47 = vrot.slane %v716_v29, 5  ;;  %v3024_v54 = vld [vmem:[%s2964_s17 + $0x20] sm:$0xf]  ;;  %v2774_v9 = vld [vmem:[%s3482_s1 + $0x8] sm:$0xff]  }
  0x1a   : > { %2537 = vmatprep.subr.bf16.mxu0 %v2763_v13  ;;  %v713_v46 = vor.u32 %v712_v37, %v709_v36  ;;  %v735_v48 = vshrl.u32 %v675_v25, 16  ;;  %v738_v49 = vshll.u32 %v675_v25, 16  ;;  %v732_v53 = vrot.slane %v730_v43, 5  ;;  %v677_v55 = vld [vmem:[%s2964_s17 + $0x20] sm:$0xf]  ;;  %v2776_v18 = vld [vmem:[%s3482_s1 + $0x10] sm:$0xff]  }
  0x1b   : > { %v700_v51 = vrot.slane %v699_v40, 4  ;;  %v727_v52 = vor.u32 %v726_v42, %v723_v41  ;;  %v744_v62 = vshll.u32 %v3015_v45, 16  ;;  %v3034_v63 = vld [vmem:[%s2964_s17 + $0x24] sm:$0x1]  ;;  %v2061_v2 = vcombine.low %v3008_v39, %v3024_v54  ;;  %v2775_v24 = vld [vmem:[%s3482_s1 + $0x1c8] sm:$0xff]   ;;  %v2778_v28 = vld [vmem:[%s3482_s1 + $0x18] sm:$0xff]  }
  0x1c   : > { %2442 = vmatpush3.bf16.msra.mxu1 %v2762_v10  ;;  %v714_v56 = vrot.slane %v713_v46, 4  ;;  %v737_v57 = vrot.slane %v735_v48, 4  ;;  %v740_v58 = vrot.slane %v738_v49, 5  ;;  %v749_v5 = vshrl.u32 %v677_v55, 16  ;;  %v3062_v25 = vld [vmem:[%s2964_s17 + $0x28] sm:$0xf] }
  0x1d   : > { %2538 = vmatpush3.bf16.msra.mxu0 %v2763_v13  ;;  %2443 = vmatprep.subr.bf16.mxu1 %v2764_v15  ;;  %v705_v60 = vsel %vm3019_vm2, %v700_v51, %v704_v35  ;;  %v728_v61 = vrot.slane %v727_v52, 4  ;;  %v752_v7 = vshll.u32 %v677_v55, 16  ;;  %v758_v8 = vshll.u32 %v3034_v63, 16  ;;  %v3065_v26 = vld [vmem:[%s2964_s17 + $0x30] sm:$0xf]  ;;  %v2780_v42 = vld [vmem:[%s3482_s1 + $0x20] sm:$0xff]  }
  0x1e   : > { %2539 = vmatprep.subr.bf16.mxu0 %v2765_v17  ;;  %v719_v0 = vsel %vm3019_vm2, %v714_v56, %v718_v47  ;;  %v741_v1 = vor.u32 %v740_v58, %v737_v57  ;;  %v746_v10 = vrot.slane %v744_v62, 5  ;;  %v751_v13 = vrot.slane %v749_v5, 4  ;;  %v679_v30 = vld [vmem:[%s2964_s17 + $0x28] sm:$0xf]  ;;  %v224_v31 = vld [vmem:[%s2964_s17] sm:$0xf] }
  0x1f   : > { %v3042_v3 = vsel %vm3019_vm2, %v728_v61, %v732_v53  ;;  %v3044_v4 = vcombine.low %v705_v60, %v719_v0  ;;  %v2062_v29 = vcombine.low %v3062_v25, %v3065_v26  ;;  %v3081_v33 = vld [vmem:[%s2964_s17 + $0x2c] sm:$0x1]  ;;  %v3085_v35 = vld [vmem:[%s2964_s17 + $0x34] sm:$0x1]  ;;  %v763_v36 = vshrl.u32 %v679_v30, 16 }
  0x20   : > { %2444 = vmatpush3.bf16.msra.mxu1 %v2764_v15  ;;  %v2153_v6 = vcombine.low %v719_v0, %v3042_v3  ;;  %v742_v14 = vrot.slane %v741_v1, 4  ;;  %v754_v15 = vrot.slane %v752_v7, 5  ;;  %v766_v37 = vshll.u32 %v679_v30, 16  ;;  %v2777_v41 = vld [vmem:[%s3482_s1 + $0x1d0] sm:$0xff]   ;;  %v3096_v51 = vld [vmem:[%s2964_s17 + $0x38] sm:$0xf] }
  0x21   : > { %2540 = vmatpush3.bf16.msra.mxu0 %v2765_v17  ;;  %2445 = vmatprep.subr.bf16.mxu1 %v2766_v34  ;;  %v760_v17 = vrot.slane %v758_v8, 5  ;;  %v765_v46 = vrot.slane %v763_v36, 4  ;;  %v3099_v55 = vld [vmem:[%s2964_s17 + $0x40] sm:$0xf]  ;;  %v683_v56 = vld [vmem:[%s2964_s17 + $0x38] sm:$0xf]  ;;  %v2072_v57 = vcombine.low %v224_v31, %v2970_v11 }
  0x22   : > { %2541 = vmatprep.subr.bf16.mxu0 %v2767_v38  ;;  %2543 = vmatprep.mubr.bf16.mxu0 %v2153_v6  ;;  %v755_v16 = vor.u32 %v754_v15, %v751_v13  ;;  %v3056_v21 = vsel %vm3019_vm2, %v742_v14, %v746_v10  ;;  %v768_v47 = vrot.slane %v766_v37, 5  ;;  %v3106_v60 = vld [vmem:[%s2964_s17 + $0x3c] sm:$0x1]  ;;  %v685_v61 = vld [vmem:[%s2964_s17 + $0x40] sm:$0xf]  ;;  %v2782_v0 = vld [vmem:[%s3482_s1 + $0x28] sm:$0xff]  }
  0x23   : > { %v3110_v62 = vld [vmem:[%s2964_s17 + $0x44] sm:$0x1]  ;;  %v794_v5 = vshll.u32 %v683_v56, 16  ;;  %v800_v6 = vshll.u32 %v3106_v60, 16  ;;  %v959_v7 = vshrl.u32 %v685_v61, 16  ;;  %v962_v8 = vshll.u32 %v685_v61, 16 }
  0x24   : > { %2446 = vmatpush3.bf16.msra.mxu1 %v2766_v34  ;;  %v756_v23 = vrot.slane %v755_v16, 4  ;;  %v681_v34 = vld [vmem:[%s2964_s17 + $0x30] sm:$0xf]  ;;  %v769_v58 = vor.u32 %v768_v47, %v765_v46  ;;  %v2779_v10 = vld [vmem:[%s3482_s1 + $0x1d8] sm:$0xff]   ;;  %v2790_v46 = vld [vmem:[%s3482_s1 + $0x180] sm:$0xff]  }
  0x25   : > { %2542 = vmatpush3.bf16.msra.mxu0 %v2767_v38  ;;  %2455 = vmatprep.subr.bf16.mxu1 %v2771_v44  ;;  %v772_v38 = vshll.u32 %v3081_v33, 16  ;;  %v777_v40 = vshrl.u32 %v681_v34, 16  ;;  %v780_v43 = vshll.u32 %v681_v34, 16  ;;  %v796_v15 = vrot.slane %v794_v5, 5  ;;  %v2781_v34 = vld [vmem:[%s3482_s1 + $0x1e0] sm:$0xff]  }
  0x26   : > { %2551 = vmatprep.subr.bf16.mxu0 %v2772_v59  ;;  %v3069_v27 = vsel %vm3019_vm2, %v756_v23, %v760_v17  ;;  %v770_v11 = vrot.slane %v769_v58, 4  ;;  %v802_v17 = vrot.slane %v800_v6, 5  ;;  %v964_v23 = vrot.slane %v962_v8, 5  ;;  %v1276_v47 = vld [vmem:[%s2964_s17 + $0x10] sm:$0xe] }
  0x27   : > { %2448 = vmatmul.mubr.bf16.vlgmr.msra.gmra.mrb[0].mxu1 %v2061_v2  ;;  %v2154_v32 = vcombine.low %v3056_v21, %v3069_v27  ;;  %v774_v48 = vrot.slane %v772_v38, 5  ;;  %v779_v49 = vrot.slane %v777_v40, 4  ;;  %v782_v52 = vrot.slane %v780_v43, 5  ;;  %v2783_v43 = vld [vmem:[%s3482_s1 + $0x1e8] sm:$0xff]   ;;  %v1274_v5 = vld [vmem:[%s2964_s17] sm:$0xe] }
  0x28   : > { %2456 = vmatpush3.bf16.msra.mxu1 %v2771_v44  ;;  %2451 = vmatprep.mubr.bf16.mxu1 %v2062_v29  ;;  %v786_v44 = vshll.u32 %v3085_v35, 16  ;;  %v791_v2 = vshrl.u32 %v683_v56, 16  ;;  %v2785_v29 = vld [vmem:[%s3482_s1 + $0x30] sm:$0xff]   ;;  %v1313_v58 = vrot.slane %v2996_v22, 5  ;;  %v2791_v22 = vld [vmem:[%s3482_s1 + $0x80] sm:$0xff]   ;;  %v3199_v6 = vcombine.low %v3065_v26, %v3096_v51 }
  0x29   : > { %2457 = vmatprep.subr.bf16.mxu1 %v2774_v9  ;;  %2544 = vmatmul.mubr.bf16.vlgmr.msra.gmra.mrb[0].mxu0 %v2154_v32  ;;  %v783_v1 = vor.u32 %v782_v52, %v779_v49  ;;  %v3122_v16 = vsel %vm3019_vm2, %v770_v11, %v774_v48  ;;  %v2789_v48 = vld [vmem:[%s3482_s1 + $0x1f8] sm:$0xff]   ;;  %v3171_v49 = vcombine.low %v3024_v54, %v3062_v25  ;;  %v2792_v52 = vld [vmem:[%s3482_s1 + $0x188] sm:$0xff]   ;;  %v2192_v25 = vrot.slane %v1276_v47, 9 }
  0x2a   : > { %2552 = vmatpush3.bf16.msra.mxu0 %v2772_v59  ;;  %v788_v53 = vrot.slane %v786_v44, 5  ;;  %v2063_v59 = vcombine.low %v3096_v51, %v3099_v55  ;;  %v793_v14 = vrot.slane %v791_v2, 4  ;;  %v1275_v11 = vld [vmem:[%s2964_s17 + $0x8] sm:$0xe] }
  0x2b   : > { %2553 = vmatprep.subr.bf16.mxu0 %v2775_v24  ;;  %v784_v13 = vrot.slane %v783_v1, 4  ;;  %v1317_v1 = vrot.slane %v3015_v45, 5  ;;  %v3205_v8 = vsel %vm3182_vm5, %v2192_v25, %v1313_v58  ;;  %v3209_v45 = vcombine.low %v3069_v27, %v3122_v16  ;;  %v1283_v47 = vld [vmem:[%s2964_s17 + $0x48] sm:$0xe]  ;;  %v2807_v58 = vld [vmem:[%s3482_s1 + $0xb8] sm:$0xff]  }
  0x2c   : > { %2458 = vmatpush3.bf16.msra.mxu1 %v2774_v9  ;;  %v968_v9 = vshll.u32 %v3110_v62, 16  ;;  %v1305_v27 = vrot.slane %v2992_v20, 5  ;;  %v2798_v20 = vld [vmem:[%s3482_s1 + $0x1a0] sm:$0xff]   ;;  %v2810_v25 = vld [vmem:[%s3482_s1 + $0x48] sm:$0xff]  }
  0x2d   : > { %2459 = vmatprep.subr.bf16.mxu1 %v2776_v18  ;;  %v2818_v54 = vld [vmem:[%s3482_s1 + $0x68] sm:$0xff]  }
  0x2e   : > { %2554 = vmatpush3.bf16.msra.mxu0 %v2775_v24  ;;  %v3126_v24 = vsel %vm3019_vm2, %v784_v13, %v788_v53  ;;  %v970_v32 = vrot.slane %v968_v9, 5  ;;  %v687_v53 = vld [vmem:[%s2964_s17 + $0x48] sm:$0xf]  ;;  %v2796_v9 = vld [vmem:[%s3482_s1 + $0x198] sm:$0xff]  }
  0x2f   : > { %2555 = vmatprep.subr.bf16.mxu0 %v2777_v41  ;;  %2452 = vmatmul.mubr.bf16.gmra.mrb[4].mxu1 %v2063_v59  ;;  %v2155_v30 = vcombine.low %v3122_v16, %v3126_v24  ;;  %v1123_v56 = vshll.u32 %v687_v53, 16  ;;  %v2793_v13 = vld [vmem:[%s3482_s1 + $0x88] sm:$0xff]   ;;  %v2190_v16 = vrot.slane %v1274_v5, 9  ;;  %v2814_v5 = vld [vmem:[%s3482_s1 + $0x58] sm:$0xff]  }
  0x30   : > { %2460 = vmatpush3.bf16.msra.mxu1 %v2776_v18  ;;  %v961_v18 = vrot.slane %v959_v7, 4  ;;  %2471 = vmatprep.mubr.bf16.mxu1 %v2072_v57  ;;  %v1309_v57 = vrot.slane %v2989_v19, 5  ;;  %v2794_v19 = vld [vmem:[%s3482_s1 + $0x190] sm:$0xff]   ;;  %v1277_v7 = vld [vmem:[%s2964_s17 + $0x18] sm:$0xe] }
  0x31   : > { %2461 = vmatprep.subr.bf16.mxu1 %v2778_v28  ;;  %2547 = vmatprep.mubr.bf16.mxu0 %v2155_v30  ;;  %v1125_v61 = vrot.slane %v1123_v56, 5  ;;  %v2800_v30 = vld [vmem:[%s3482_s1 + $0x1a8] sm:$0xff]  }
  0x32   : > { %2556 = vmatpush3.bf16.msra.mxu0 %v2777_v41  ;;  %v965_v31 = vor.u32 %v964_v23, %v961_v18  ;;  %v2788_v41 = vld [vmem:[%s3482_s1 + $0x38] sm:$0xff]  }
  0x33   : > { %2557 = vmatprep.subr.bf16.mxu0 %v2779_v10 }
  0x34   : > { %2462 = vmatpush3.bf16.msra.mxu1 %v2778_v28  ;;  %v797_v28 = vor.u32 %v796_v15, %v793_v14  ;;  %v966_v37 = vrot.slane %v965_v31, 4  ;;  %v1321_v31 = vrot.slane %v3034_v63, 5 }
  0x35   : > { %2463 = vmatprep.subr.bf16.mxu1 %v2780_v42 }
  0x36   : > { %v798_v36 = vrot.slane %v797_v28, 4  ;;  %2558 = vmatpush3.bf16.msra.mxu0 %v2779_v10  ;;  %v3142_v40 = vsel %vm3019_vm2, %v966_v37, %v970_v32  ;;  %v2193_v10 = vrot.slane %v1277_v7, 9  ;;  %v1306_v28 = vsel %vm3182_vm5, %v2190_v16, %v1305_v27  ;;  %v2797_v32 = vld [vmem:[%s3482_s1 + $0x98] sm:$0xff]  }
  0x37   : > { %2559 = vmatprep.subr.bf16.mxu0 %v2781_v34  ;;  %v2815_v27 = vld [vmem:[%s3482_s1 + $0x158] sm:$0xff]  }
  0x38   : > { %2464 = vmatpush3.bf16.msra.mxu1 %v2780_v42  ;;  %v3138_v38 = vsel %vm3019_vm2, %v798_v36, %v802_v17  ;;  %v3149_v42 = vcombine.low %v3042_v3, %v3056_v21  ;;  %v2786_v3 = vld [vmem:[%s3482_s1 + $0x1f0] sm:$0xff]   ;;  %v2073_v21 = vcombine.low %v2973_v12, %v3008_v39  ;;  %v3178_v12 = vld [vmem:[%s2964_s17 + $0x4c] sm:$0x1]  ;;  %v1120_v39 = vshrl.u32 %v687_v53, 16  ;;  %v1278_v36 = vld [vmem:[%s2964_s17 + $0x20] sm:$0xe] }
  0x39   : > { %2465 = vmatprep.subr.bf16.mxu1 %v2782_v0  ;;  %v2156_v44 = vcombine.low %v3138_v38, %v3142_v40  ;;  %v3219_v14 = vcombine.low %v3126_v24, %v3138_v38  ;;  %v3224_v15 = vsel %vm3182_vm5, %v2193_v10, %v1317_v1  ;;  %v2191_v17 = vrot.slane %v1275_v11, 9  ;;  %v2795_v24 = vld [vmem:[%s3482_s1 + $0x90] sm:$0xff]   ;;  %v2809_v1 = vld [vmem:[%s3482_s1 + $0x140] sm:$0xff]   ;;  %v2811_v10 = vld [vmem:[%s3482_s1 + $0x148] sm:$0xff]  }
  0x3a   : > { %2560 = vmatpush3.bf16.msra.mxu0 %v2781_v34  ;;  %v1122_v59 = vrot.slane %v1120_v39, 4  ;;  %v3229_v18 = vcombine.low %v3205_v8, %v3224_v15  ;;  %v2194_v37 = vrot.slane %v1278_v36, 9  ;;  %v2803_v38 = vld [vmem:[%s3482_s1 + $0x1b0] sm:$0xff]   ;;  %v1329_v11 = vrot.slane %v3085_v35, 5  ;;  %v2816_v35 = vld [vmem:[%s3482_s1 + $0x60] sm:$0xff]  }
  0x3b   : > { %2548 = vmatmul.mubr.bf16.gmra.mrb[4].mxu0 %v2156_v44  ;;  %2561 = vmatprep.subr.bf16.mxu0 %v2783_v43  ;;  %v2806_v44 = vld [vmem:[%s3482_s1 + $0x1b8] sm:$0xff]   ;;  %v2804_v39 = vld [vmem:[%s3482_s1 + $0xb0] sm:$0xff]  }
  0x3c   : > { %2466 = vmatpush3.bf16.msra.mxu1 %v2782_v0  ;;  %2567 = vmatprep.mubr.bf16.mxu0 %v3149_v42  ;;  %v1129_v0 = vshll.u32 %v3178_v12, 16  ;;  %v1126_v2 = vor.u32 %v1125_v61, %v1122_v59  ;;  %v3262_v63 = vsel %vm3182_vm5, %v2194_v37, %v1321_v31  ;;  %v1325_v61 = vrot.slane %v3081_v33, 5 }
  0x3d   : > { %2467 = vmatprep.subr.bf16.mxu1 %v2785_v29 }
  0x3e   : > { %2562 = vmatpush3.bf16.msra.mxu0 %v2783_v43  ;;  %v1127_v26 = vrot.slane %v1126_v2, 4  ;;  %v1131_v51 = vrot.slane %v1129_v0, 5  ;;  %v1493_v43 = vrot.slane %v3110_v62, 5  ;;  %v2808_v62 = vld [vmem:[%s3482_s1 + $0x40] sm:$0xff]   ;;  %v2812_v0 = vld [vmem:[%s3482_s1 + $0x50] sm:$0xff]  }
  0x3f   : > { %2563 = vmatprep.subr.bf16.mxu0 %v2786_v3 }
  0x40   : > { %2468 = vmatpush3.bf16.msra.mxu1 %v2785_v29  ;;  %v1132_v23 = vsel %vm3019_vm2, %v1127_v26, %v1131_v51  ;;  %v3245_v29 = vsel %vm3182_vm5, %v2191_v17, %v1309_v57  ;;  %v1279_v57 = vld [vmem:[%s2964_s17 + $0x28] sm:$0xe]  ;;  %v2813_v51 = vld [vmem:[%s3482_s1 + $0x150] sm:$0xff]   ;;  %v2817_v17 = vld [vmem:[%s3482_s1 + $0x160] sm:$0xff]  }
  0x41   : > { %2469 = vmatprep.subr.bf16.mxu1 %v2788_v41  ;;  %v2181_v50 = vcombine.low %v3142_v40, %v1132_v23  ;;  %v2214_v34 = vcombine.low %v1306_v28, %v3245_v29  ;;  %v2799_v40 = vld [vmem:[%s3482_s1 + $0xa0] sm:$0xff]   ;;  %v2195_v59 = vrot.slane %v1279_v57, 9  ;;  %v2243_v16 = vcombine.low %v3245_v29, %v3205_v8  ;;  %v2823_v8 = vld [vmem:[%s3482_s1 + $0x78] sm:$0xff]   ;;  %v2826_v28 = vld [vmem:[%s3482_s1 + $0x208] sm:$0xff]  }
  0x42   : > { %2564 = vmatpush3.bf16.msra.mxu0 %v2786_v3  ;;  %v2801_v3 = vld [vmem:[%s3482_s1 + $0xa8] sm:$0xff]   ;;  %v2825_v23 = vld [vmem:[%s3482_s1 + $0x200] sm:$0xff]   ;;  %v2824_v29 = vld [vmem:[%s3482_s1 + $0x178] sm:$0xff]  }
  0x43   : > { %2565 = vmatprep.subr.bf16.mxu0 %v2789_v48  ;;  %v3316_v33 = vsel %vm3182_vm5, %v2195_v59, %v1325_v61 }
  0x44   : > { %2470 = vmatpush3.bf16.msra.mxu1 %v2788_v41  ;;  %v2244_v41 = vcombine.low %v3224_v15, %v3262_v63  ;;  %v2831_v15 = vld [vmem:[%s3482_s1 + $0x230] sm:$0xff]  }
  0x45   : > { %2479 = vmatprep.subr.bf16.mxu1 %v2790_v46 }
  0x46   : > { %2566 = vmatpush3.bf16.msra.mxu0 %v2789_v48 }
  0x47   : > { %2472 = vmatmul.mubr.bf16.vlgmr.msra.gmra.mrb[0].mxu1 %v2073_v21  ;;  %2575 = vmatprep.subr.bf16.mxu0 %v2791_v22 }
  0x48   : > { %2480 = vmatpush3.bf16.msra.mxu1 %v2790_v46  ;;  %2475 = vmatprep.mubr.bf16.mxu1 %v3171_v49  ;;  %v1646_v46 = vrot.slane %v3178_v12, 5 }
  0x49   : > { %2481 = vmatprep.subr.bf16.mxu1 %v2792_v52  ;;  %2568 = vmatmul.mubr.bf16.vlgmr.msra.gmra.mrb[0].mxu0 %v3209_v45 }
  0x4a   : > { %2576 = vmatpush3.bf16.msra.mxu0 %v2791_v22  ;;  %2571 = vmatprep.mubr.bf16.mxu0 %v3219_v14  ;;  %v1280_v22 = vld [vmem:[%s2964_s17 + $0x30] sm:$0xe] }
  0x4b   : > { %2577 = vmatprep.subr.bf16.mxu0 %v2793_v13 }
  0x4c   : > { %2482 = vmatpush3.bf16.msra.mxu1 %v2792_v52  ;;  %v2255_v52 = vrot.slane %v1283_v47, 9 }
  0x4d   : > { %2483 = vmatprep.subr.bf16.mxu1 %v2794_v19 }
  0x4e   : > { %2578 = vmatpush3.bf16.msra.mxu0 %v2793_v13  ;;  %v3288_v12 = vsel %vm3182_vm5, %v2255_v52, %v1646_v46 }
  0x4f   : > { %2476 = vmatmul.mubr.bf16.gmra.mrb[4].mxu1 %v3199_v6  ;;  %2579 = vmatprep.subr.bf16.mxu0 %v2795_v24 }
  0x50   : > { %2484 = vmatpush3.bf16.msra.mxu1 %v2794_v19  ;;  %2495 = vmatprep.mubr.bf16.mxu1 %v2073_v21  ;;  %v1282_v21 = vld [vmem:[%s2964_s17 + $0x40] sm:$0xe]  ;;  %v233_v19 = vld [vmem:[%s2964_s17 + $0x48] sm:$0xf] }
  0x51   : > { %2485 = vmatprep.subr.bf16.mxu1 %v2796_v9  ;;  %2572 = vmatmul.mubr.bf16.gmra.mrb[4].mxu0 %v2181_v50  ;;  %v2226_v48 = vrot.slane %v1282_v21, 9  ;;  %v2100_v2 = vcombine.low %v3099_v55, %v233_v19  ;;  %v3329_v55 = vcombine.low %v3262_v63, %v3316_v33  ;;  %v2827_v50 = vld [vmem:[%s3482_s1 + $0x210] sm:$0xff]  }
  0x52   : > { %2580 = vmatpush3.bf16.msra.mxu0 %v2795_v24  ;;  %2591 = vmatprep.mubr.bf16.mxu0 %v2214_v34  ;;  %v2822_v24 = vld [vmem:[%s3482_s1 + $0x170] sm:$0xff]  }
  0x53   : > { %2581 = vmatprep.subr.bf16.mxu0 %v2797_v32  ;;  %v3284_v53 = vsel %vm3182_vm5, %v2226_v48, %v1493_v43 }
  0x54   : > { %2486 = vmatpush3.bf16.msra.mxu1 %v2796_v9  ;;  %v2272_v56 = vcombine.low %v3284_v53, %v3288_v12  ;;  %v1333_v9 = vrot.slane %v3106_v60, 5 }
  0x55   : > { %2487 = vmatprep.subr.bf16.mxu1 %v2798_v20 }
  0x56   : > { %2582 = vmatpush3.bf16.msra.mxu0 %v2797_v32  ;;  %v2832_v32 = vld [vmem:[%s3482_s1 + $0x238] sm:$0xff]  }
  0x57   : > { %2583 = vmatprep.subr.bf16.mxu0 %v2799_v40 }
  0x58   : > { %2488 = vmatpush3.bf16.msra.mxu1 %v2798_v20  ;;  %v2819_v20 = vld [vmem:[%s3482_s1 + $0x168] sm:$0xff]  }
  0x59   : > { %2489 = vmatprep.subr.bf16.mxu1 %v2800_v30 }
  0x5a   : > { %2584 = vmatpush3.bf16.msra.mxu0 %v2799_v40 }
  0x5b   : > { %2585 = vmatprep.subr.bf16.mxu0 %v2801_v3 }
  0x5c   : > { %2490 = vmatpush3.bf16.msra.mxu1 %v2800_v30 }
  0x5d   : > { %2491 = vmatprep.subr.bf16.mxu1 %v2803_v38 }
  0x5e   : > { %2586 = vmatpush3.bf16.msra.mxu0 %v2801_v3 }
  0x5f   : > { %2587 = vmatprep.subr.bf16.mxu0 %v2804_v39 }
  0x60   : > { %2492 = vmatpush3.bf16.msra.mxu1 %v2803_v38 }
  0x61   : > { %2493 = vmatprep.subr.bf16.mxu1 %v2806_v44 }
  0x62   : > { %2588 = vmatpush3.bf16.msra.mxu0 %v2804_v39 }
  0x63   : > { %2589 = vmatprep.subr.bf16.mxu0 %v2807_v58 }
  0x64   : > { %2494 = vmatpush3.bf16.msra.mxu1 %v2806_v44 }
  0x65   : > { %2503 = vmatprep.subr.bf16.mxu1 %v2808_v62 }
  0x66   : > { %2590 = vmatpush3.bf16.msra.mxu0 %v2807_v58 }
  0x67   : > { %2496 = vmatmul.mubr.bf16.vlgmr.msra.gmra.mrb[0].mxu1 %v3171_v49  ;;  %v1281_v49 = vld [vmem:[%s2964_s17 + $0x38] sm:$0xe]  ;;  %2599 = vmatprep.subr.bf16.mxu0 %v2809_v1 }
  0x68   : > { %2504 = vmatpush3.bf16.msra.mxu1 %v2808_v62  ;;  %2499 = vmatprep.mubr.bf16.mxu1 %v3199_v6  ;;  %v2196_v6 = vrot.slane %v1280_v22, 9  ;;  %v2197_v7 = vrot.slane %v1281_v49, 9  ;;  %v2281_v62 = vld [vmem:[%s3483_s2] ss:$0 sm:$0xff] }
  0x69   : > { %2505 = vmatprep.subr.bf16.mxu1 %v2810_v25  ;;  %2592 = vmatmul.mubr.bf16.vlgmr.msra.gmra.mrb[0].mxu0 %v3229_v18 }
  0x6a   : > { %2600 = vmatpush3.bf16.msra.mxu0 %v2809_v1  ;;  %v1330_v60 = vsel %vm3182_vm5, %v2196_v6, %v1329_v11  ;;  %v3339_v26 = vsel %vm3182_vm5, %v2197_v7, %v1333_v9  ;;  %2595 = vmatprep.mubr.bf16.mxu0 %v3329_v55 }
  0x6b   : > { %2601 = vmatprep.subr.bf16.mxu0 %v2811_v10  ;;  %v2217_v13 = vcombine.low %v1330_v60, %v3339_v26  ;;  %v2245_v30 = vcombine.low %v3316_v33, %v1330_v60  ;;  %v2246_v31 = vcombine.low %v3339_v26, %v3284_v53 }
  0x6c   : > { %2506 = vmatpush3.bf16.msra.mxu1 %v2810_v25 }
  0x6d   : > { %2507 = vmatprep.subr.bf16.mxu1 %v2812_v0 }
  0x6e   : > { %2602 = vmatpush3.bf16.msra.mxu0 %v2811_v10 }
  0x6f   : > { %2500 = vmatmul.mubr.bf16.gmra.mrb[4].mxu1 %v2100_v2  ;;  %2603 = vmatprep.subr.bf16.mxu0 %v2813_v51 }
  0x70   : > { %2508 = vmatpush3.bf16.msra.mxu1 %v2812_v0  ;;  %2519 = vmatprep.mubr.bf16.mxu1 %v3044_v4  ;;  %v2821_v4 = vld [vmem:[%s3482_s1 + $0x70] sm:$0xff]  }
  0x71   : > { %2509 = vmatprep.subr.bf16.mxu1 %v2814_v5  ;;  %2596 = vmatmul.mubr.bf16.gmra.mrb[4].mxu0 %v2217_v13 }
  0x72   : > { %2604 = vmatpush3.bf16.msra.mxu0 %v2813_v51  ;;  %2615 = vmatprep.mubr.bf16.mxu0 %v2243_v16 }
  0x73   : > { %2605 = vmatprep.subr.bf16.mxu0 %v2815_v27 }
  0x74   : > { %2510 = vmatpush3.bf16.msra.mxu1 %v2814_v5 }
  0x75   : > { %2511 = vmatprep.subr.bf16.mxu1 %v2816_v35 }
  0x76   : > { %2606 = vmatpush3.bf16.msra.mxu0 %v2815_v27 }
  0x77   : > { %2607 = vmatprep.subr.bf16.mxu0 %v2817_v17 }
  0x78   : > { %2512 = vmatpush3.bf16.msra.mxu1 %v2816_v35 }
  0x79   : > { %2513 = vmatprep.subr.bf16.mxu1 %v2818_v54 }
  0x7a   : > { %2608 = vmatpush3.bf16.msra.mxu0 %v2817_v17 }
  0x7b   : > { %2609 = vmatprep.subr.bf16.mxu0 %v2819_v20 }
  0x7c   : > { %2514 = vmatpush3.bf16.msra.mxu1 %v2818_v54 }
  0x7d   : > { %2515 = vmatprep.subr.bf16.mxu1 %v2821_v4 }
  0x7e   : > { %2610 = vmatpush3.bf16.msra.mxu0 %v2819_v20 }
  0x7f   : > { %2611 = vmatprep.subr.bf16.mxu0 %v2822_v24 }
  0x80   : > { %2516 = vmatpush3.bf16.msra.mxu1 %v2821_v4 }
  0x81   : > { %2517 = vmatprep.subr.bf16.mxu1 %v2823_v8 }
  0x82   : > { %2612 = vmatpush3.bf16.msra.mxu0 %v2822_v24 }
  0x83   : > { %2613 = vmatprep.subr.bf16.mxu0 %v2824_v29 }
  0x84   : > { %2518 = vmatpush3.bf16.msra.mxu1 %v2823_v8 }
  0x85   : > { %2647 = vmatprep.subr.bf16.mxu1 %v2825_v23 }
  0x86   : > { %2614 = vmatpush3.bf16.msra.mxu0 %v2824_v29 }
  0x87   : > { %2520 = vmatmul.mubr.bf16.vlgmr.msra.gmra.mrb[0].mxu1 %v3149_v42  ;;  %2623 = vmatprep.subr.bf16.mxu0 %v2825_v23  ;;  %v2828_v42 = vld [vmem:[%s3482_s1 + $0x218] sm:$0xff]  }
  0x88   : > { %2655 = vmatpush3.bf16.msra.mxu1 %v2825_v23  ;;  %2523 = vmatprep.mubr.bf16.mxu1 %v3209_v45  ;;  %v2829_v45 = vld [vmem:[%s3482_s1 + $0x220] sm:$0xff]  }
  0x89   : > { %2648 = vmatprep.subr.bf16.mxu1 %v2826_v28  ;;  %2616 = vmatmul.mubr.bf16.vlgmr.msra.gmra.mrb[0].mxu0 %v2244_v41 }
  0x8a   : > { %2624 = vmatpush3.bf16.msra.mxu0 %v2825_v23  ;;  %2619 = vmatprep.mubr.bf16.mxu0 %v2245_v30 }
  0x8b   : > { %2625 = vmatprep.subr.bf16.mxu0 %v2826_v28 }
  0x8c   : > { %2656 = vmatpush3.bf16.msra.mxu1 %v2826_v28 }
  0x8d   : > { %2649 = vmatprep.subr.bf16.mxu1 %v2827_v50 }
  0x8e   : > { %2626 = vmatpush3.bf16.msra.mxu0 %v2826_v28 }
  0x8f   : > { %2524 = vmatmul.mubr.bf16.gmra.mrb[4].mxu1 %v3219_v14  ;;  %v2830_v14 = vld [vmem:[%s3482_s1 + $0x228] sm:$0xff]   ;;  %2627 = vmatprep.subr.bf16.mxu0 %v2827_v50 }
  0x90   : > { %2657 = vmatpush3.bf16.msra.mxu1 %v2827_v50  ;;  %2643 = vmatprep.mubr.bf16.mxu1 %v2217_v13 }
  0x91   : > { %2650 = vmatprep.subr.bf16.mxu1 %v2828_v42  ;;  %2620 = vmatmul.mubr.bf16.gmra.mrb[4].mxu0 %v2246_v31 }
  0x92   : > { %2628 = vmatpush3.bf16.msra.mxu0 %v2827_v50  ;;  %2639 = vmatprep.mubr.bf16.mxu0 %v3229_v18 }
  0x93   : > { %2629 = vmatprep.subr.bf16.mxu0 %v2828_v42 }
  0x94   : > { %2658 = vmatpush3.bf16.msra.mxu1 %v2828_v42 }
  0x95   : > { %2651 = vmatprep.subr.bf16.mxu1 %v2829_v45 }
  0x96   : > { %2630 = vmatpush3.bf16.msra.mxu0 %v2828_v42 }
  0x97   : > { %2631 = vmatprep.subr.bf16.mxu0 %v2829_v45 }
  0x98   : > { %2659 = vmatpush3.bf16.msra.mxu1 %v2829_v45 }
  0x99   : > { %2652 = vmatprep.subr.bf16.mxu1 %v2830_v14 }
  0x9a   : > { %2632 = vmatpush3.bf16.msra.mxu0 %v2829_v45 }
  0x9b   : > { %2633 = vmatprep.subr.bf16.mxu0 %v2830_v14 }
  0x9c   : > { %2660 = vmatpush3.bf16.msra.mxu1 %v2830_v14 }
  0x9d   : > { %2653 = vmatprep.subr.bf16.mxu1 %v2831_v15 }
  0x9e   : > { %2634 = vmatpush3.bf16.msra.mxu0 %v2830_v14 }
  0x9f   : > { %2635 = vmatprep.subr.bf16.mxu0 %v2831_v15 }
  0xa0   : > { %2661 = vmatpush3.bf16.msra.mxu1 %v2831_v15 }
  0xa1   : > { %2654 = vmatprep.subr.bf16.mxu1 %v2832_v32 }
  0xa2   : > { %2636 = vmatpush3.bf16.msra.mxu0 %v2831_v15 }
  0xa3   : > { %2637 = vmatprep.subr.bf16.mxu0 %v2832_v32 }
  0xa4   : > { %2662 = vmatpush3.bf16.msra.mxu1 %v2832_v32 }
  0xa6   : > { %2638 = vmatpush3.bf16.msra.mxu0 %v2832_v32 }
  0xa7   : > { %2644 = vmatmul.mubr.bf16.vlgmr.msra.gmra.mrb[8].mxu1 %v2272_v56 }
  0xa9   : > { %2640 = vmatmul.mubr.bf16.vlgmr.msra.gmra.mrb[0].mxu0 %v3329_v55 }
 0x15a   : > { %v2521_v18 = vpop.f32.mrb[0].mxu1 }
 0x15b   : > { %v919_v34 = vpop.f32.mrb[1].mxu1 }
 0x15c   : > { %v2522_v36 = vpop.f32.mrb[2].mxu1 }
 0x15d   : > { %v922_v37 = vpop.f32.mrb[3].mxu1 }
 0x162   : > { %v2525_v38 = vpop.f32.mrb[4].mxu1 }
 0x163   : > { %v935_v63 = vpop.f32.mrb[5].mxu1 }
 0x164   : > { %v2526_v40 = vpop.f32.mrb[6].mxu1  ;;  %v2621_v43 = vpop.f32.mrb[4].mxu0 }
 0x165   : > { %v938_v41 = vpop.f32.mrb[7].mxu1  ;;  %v2667_v44 = vadd.f32 %v2621_v43, %v2525_v38  ;;  %v1619_v46 = vpop.f32.mrb[5].mxu0 }
 0x166   : > { %v2669_v3 = vadd.f32 %v1619_v46, %v935_v63  ;;  %v2622_v21 = vpop.f32.mrb[6].mxu0 }
 0x167   : > { %v2671_v47 = vadd.f32 %v2622_v21, %v2526_v40  ;;  %v1622_v48 = vpop.f32.mrb[7].mxu0 }
 0x168   : > { %v2673_v52 = vadd.f32 %v1622_v48, %v938_v41 }
 0x17a   : > { %v2645_v53 = vpop.f32.mrb[8].mxu1 }
 0x17b   : > { %v2668_v12 = vadd.f32 %v2667_v44, %v2645_v53  ;;  %v1766_v39 = vpop.f32.mrb[9].mxu1 }
 0x17c   : > { %v2670_v56 = vadd.f32 %v2669_v3, %v1766_v39  ;;  %v2646_v57 = vpop.f32.mrb[10].mxu1  ;;  %v2641_v11 = vpop.f32.mrb[0].mxu0 }
 0x17d   : > { %v3414_v25 = vadd.f32 %v2668_v12, %v2281_v62  ;;  %v2672_v58 = vadd.f32 %v2671_v47, %v2646_v57  ;;  %v1769_v59 = vpop.f32.mrb[11].mxu1  ;;  %v2663_v9 = vadd.f32 %v2641_v11, %v2521_v18  ;;  %v1750_v10 = vpop.f32.mrb[1].mxu0 }
 0x17e   : > { %v3416_v61 = vadd.f32 %v2670_v56, %v2281_v62  ;;  %v2674_v19 = vadd.f32 %v2673_v52, %v1769_v59  ;;  %v2664_v35 = vadd.f32 %v1750_v10, %v919_v34  ;;  %v2642_v60 = vpop.f32.mrb[2].mxu0 }
 0x17f   : > { %v1810_v0 = vmin.f32 %v3414_v25, 20.0  ;;  %v3419_v1 = vadd.f32 %v2672_v58, %v2281_v62  ;;  %v3426_v26 = vadd.f32 %v2663_v9, %v2281_v62  ;;  %v2665_v51 = vadd.f32 %v2642_v60, %v2522_v36  ;;  %v1753_v13 = vpop.f32.mrb[3].mxu0 }
 0x180   : > { %v1808_v22 = vmin.f32 %v3416_v61, 20.0  ;;  %v3422_v49 = vadd.f32 %v2674_v19, %v2281_v62  ;;  %v3428_v54 = vadd.f32 %v2664_v35, %v2281_v62  ;;  %v2666_v27 = vadd.f32 %v1753_v13, %v922_v37 }
 0x181   : > { %v1824_v33 = vmul.f32 1.442695, %v1810_v0  ;;  %v1811_v2 = vmin.f32 %v3419_v1, 20.0  ;;  %v1806_v16 = vmin.f32 %v3426_v26, 20.0  ;;  %v3431_v4 = vadd.f32 %v2665_v51, %v2281_v62 }
 0x182   : > { %v1820_v5 = vmul.f32 1.442695, %v1808_v22  ;;  %v1809_v6 = vmin.f32 %v3422_v49, 20.0  ;;  %v1804_v17 = vmin.f32 %v3428_v54, 20.0  ;;  %v3434_v8 = vadd.f32 %v2666_v27, %v2281_v62 }
 0x183   : > { %2833 = vpow2.f32 %v1824_v33  ;;  %v1826_v7 = vmul.f32 1.442695, %v1811_v2  ;;  %v1816_v20 = vmul.f32 1.442695, %v1806_v16  ;;  %v1807_v23 = vmin.f32 %v3431_v4, 20.0 }
 0x184   : > { %2835 = vpow2.f32 %v1820_v5  ;;  %v1822_v55 = vmul.f32 1.442695, %v1809_v6  ;;  %v1812_v24 = vmul.f32 1.442695, %v1804_v17  ;;  %v1805_v28 = vmin.f32 %v3434_v8, 20.0 }
 0x185   : > { %2837 = vpow2.f32 %v1826_v7  ;;  %v1818_v29 = vmul.f32 1.442695, %v1807_v23  ;;  %vm1882_vm6 = vcmp.gt.f32.partialorder %v3414_v25, 20.0  ;;  %vm1883_vm7 = vcmp.gt.f32.partialorder %v3419_v1, 20.0 }
 0x186   : > { %2839 = vpow2.f32 %v1822_v55  ;;  %v1814_v30 = vmul.f32 1.442695, %v1805_v28  ;;  %vm1880_vm8 = vcmp.gt.f32.partialorder %v3416_v61, 20.0  ;;  %vm1881_vm9 = vcmp.gt.f32.partialorder %v3422_v49, 20.0 }
 0x187   : > { %2841 = vpow2.f32 %v1816_v20  ;;  %vm1878_vm10 = vcmp.gt.f32.partialorder %v3426_v26, 20.0  ;;  %vm1879_vm11 = vcmp.gt.f32.partialorder %v3431_v4, 20.0  ;;  %vm1876_vm12 = vcmp.gt.f32.partialorder %v3428_v54, 20.0 }
 0x188   : > { %2843 = vpow2.f32 %v1812_v24  ;;  %vm1877_vm13 = vcmp.gt.f32.partialorder %v3434_v8, 20.0 }
 0x189   : > { %2845 = vpow2.f32 %v1818_v29 }
 0x18a   : > { %2847 = vpow2.f32 %v1814_v30 }
 0x18d   : > { %v2834_v50 = vpop.eup %2833 }
 0x18e   : > { %v2836_v42 = vpop.eup %2835  ;;  %v1834_v45 = vadd.f32 2.0, %v2834_v50 }
 0x18f   : > { %v2838_v31 = vpop.eup %2837  ;;  %v1832_v14 = vadd.f32 2.0, %v2836_v42 }
 0x190   : > { %v2840_v15 = vpop.eup %2839  ;;  %v1842_v32 = vmul.f32 %v2834_v50, %v1834_v45  ;;  %v1835_v18 = vadd.f32 2.0, %v2838_v31 }
 0x191   : > { %v1840_v34 = vmul.f32 %v2836_v42, %v1832_v14  ;;  %v1833_v36 = vadd.f32 2.0, %v2840_v15  ;;  %v2842_v44 = vpop.eup %2841 }
 0x192   : > { %v1858_v37 = vadd.f32 2.0, %v1842_v32  ;;  %v1843_v38 = vmul.f32 %v2838_v31, %v1835_v18  ;;  %v2844_v46 = vpop.eup %2843  ;;  %v1830_v3 = vadd.f32 2.0, %v2842_v44  ;;  %v1850_v59 = vmul.f32 %v1842_v32, %v3414_v25 }
 0x193   : > { %v1856_v63 = vadd.f32 2.0, %v1840_v34  ;;  %v1841_v40 = vmul.f32 %v2840_v15, %v1833_v36  ;;  %v2846_v21 = vpop.eup %2845  ;;  %v1828_v47 = vadd.f32 2.0, %v2844_v46  ;;  %v1848_v22 = vmul.f32 %v1840_v34, %v3416_v61 }
 0x194   : > { %2849 = vrcp.f32 %v1858_v37  ;;  %v1859_v41 = vadd.f32 2.0, %v1843_v38  ;;  %v2848_v48 = vpop.eup %2847  ;;  %v1838_v52 = vmul.f32 %v2842_v44, %v1830_v3  ;;  %v1831_v62 = vadd.f32 2.0, %v2846_v21 }
 0x195   : > { %2851 = vrcp.f32 %v1856_v63  ;;  %v1857_v43 = vadd.f32 2.0, %v1841_v40  ;;  %v1836_v53 = vmul.f32 %v2844_v46, %v1828_v47  ;;  %v1829_v12 = vadd.f32 2.0, %v2848_v48 }
 0x196   : > { %2853 = vrcp.f32 %v1859_v41  ;;  %v1854_v39 = vadd.f32 2.0, %v1838_v52  ;;  %v1839_v56 = vmul.f32 %v2846_v21, %v1831_v62  ;;  %v1851_v6 = vmul.f32 %v1843_v38, %v3419_v1 }
 0x197   : > { %2855 = vrcp.f32 %v1857_v43  ;;  %v1852_v57 = vadd.f32 2.0, %v1836_v53  ;;  %v1837_v58 = vmul.f32 %v2848_v48, %v1829_v12  ;;  %v1849_v9 = vmul.f32 %v1841_v40, %v3422_v49 }
 0x198   : > { %2857 = vrcp.f32 %v1854_v39  ;;  %v1855_v19 = vadd.f32 2.0, %v1839_v56  ;;  %v1844_v23 = vmul.f32 %v1836_v53, %v3428_v54  ;;  %v1847_v29 = vmul.f32 %v1839_v56, %v3431_v4 }
 0x199   : > { %2859 = vrcp.f32 %v1852_v57  ;;  %v1853_v33 = vadd.f32 2.0, %v1837_v58 }
 0x19a   : > { %2861 = vrcp.f32 %v1855_v19 }
 0x19b   : > { %2863 = vrcp.f32 %v1853_v33 }
 0x19e   : > { %v2850_v0 = vpop.eup %2849 }
 0x19f   : > { %v2852_v2 = vpop.eup %2851  ;;  %v1874_v5 = vmul.f32 %v2850_v0, %v1850_v59 }
 0x1a0   : > { %v2854_v11 = vpop.eup %2853  ;;  %v1872_v7 = vmul.f32 %v2852_v2, %v1848_v22 }
 0x1a1   : > { %v2856_v10 = vpop.eup %2855  ;;  %v1875_v55 = vmul.f32 %v2854_v11, %v1851_v6  ;;  %v1890_v60 = vsel %vm1882_vm6, %v3414_v25, %v1874_v5  ;;  %v1846_v25 = vmul.f32 %v1838_v52, %v3426_v26 }
 0x1a2   : > { %v1873_v35 = vmul.f32 %v2856_v10, %v1849_v9  ;;  %v1888_v13 = vsel %vm1880_vm8, %v3416_v61, %v1872_v7  ;;  %v2858_v20 = vpop.eup %2857  ;;  %v1845_v61 = vmul.f32 %v1837_v58, %v3434_v8 }
 0x1a3   : > { %v1891_v51 = vsel %vm1883_vm7, %v3419_v1, %v1875_v55  ;;  %v2860_v24 = vpop.eup %2859  ;;  %v1870_v28 = vmul.f32 %v2858_v20, %v1846_v25 }
 0x1a4   : > { %v2318_v27 = vpack.c.bf16 %v1891_v51, %v1890_v60  ;;  %v1889_v16 = vsel %vm1881_vm9, %v3422_v49, %v1873_v35  ;;  %v2862_v1 = vpop.eup %2861  ;;  %v1868_v50 = vmul.f32 %v2860_v24, %v1844_v23 }
 0x1a5   : > { %v2313_v17 = vpack.c.bf16 %v1889_v16, %v1888_v13  ;;  %v2864_v30 = vpop.eup %2863  ;;  %v1871_v49 = vmul.f32 %v2862_v1, %v1847_v29  ;;  %v1886_v45 = vsel %vm1878_vm10, %v3426_v26, %v1870_v28 }
 0x1a6   : > { %2322 = vst [vmem:[%s3450_s8 + $0x18] sm:$0xff] %v2318_v27   ;;  %v1869_v42 = vmul.f32 %v2864_v30, %v1845_v61  ;;  %v1884_v14 = vsel %vm1876_vm12, %v3428_v54, %v1868_v50 }
 0x1a7   : > { %2321 = vst [vmem:[%s3450_s8 + $0x10] sm:$0xff] %v2313_v17   ;;  %v1887_v31 = vsel %vm1879_vm11, %v3431_v4, %v1871_v49 }
 0x1a8   : > { %v2308_v15 = vpack.c.bf16 %v1887_v31, %v1886_v45  ;;  %v1885_v32 = vsel %vm1877_vm13, %v3434_v8, %v1869_v42 }
 0x1a9   : > { %v2303_v18 = vpack.c.bf16 %v1885_v32, %v1884_v14 }
 0x1aa   : > { %2320 = vst [vmem:[%s3450_s8 + $0x8] sm:$0xff] %v2308_v15  }
 0x1ab   : > { %2304 = vst [vmem:[%s3450_s8] sm:$0xff] %v2303_v18  }
 0x1ac PF: > { %s13_s14 = sadd.s32 1, %s2887_s14   ;;  %s3489_s12 = smov %s2883_s13 }
 0x1ad   : > { %p10_p6 = scmp.ge.s32.totalorder %s13_s14, 4   ;;  %s3490_s13 = smov %s3492_s15 }
 0x1af   :  { %12 = sbr.rel (!%p10_p6) target bundleno = 2 (0x2), region = 76 }

// kernel: cspdarknet_block_forward.15
= control target key start
LH: loop header
LB: loop body
LE: loop exit
PB: predicated region body
PF: predicated region fallthrough
CT: control target
= control target key end

     0   :  { %s2049_s1 = inlined_call_operand.vmem [shape: bf16[128,128], index: 1, kind: input, shape index: {}]   ;;  %s2050_s0 = inlined_call_operand.vmem [shape: bf16[128,128], index: 0, kind: input, shape index: {}]   ;;  %s2051_s5 = inlined_call_operand.vmem [shape: bf16[128,128], index: 5, kind: input, shape index: {}]   ;;  %s2052_s4 = inlined_call_operand.vmem [shape: bf16[128,128], index: 4, kind: input, shape index: {}]   ;;  %s2053_s3 = inlined_call_operand.vmem [shape: bf16[128,128], index: 3, kind: input, shape index: {}]   ;;  %s2054_s2 = inlined_call_operand.vmem [shape: f32[1,128], index: 2, kind: input, shape index: {}]   ;;  %s2055_s6 = inlined_call_operand.vmem [shape: f32[1,128], index: 6, kind: input, shape index: {}]   ;;  %s2056_s7 = inlined_call_operand.vmem [shape: bf16[128,128], index: 7, kind: output, shape index: {}]  }
   0x1   :  { %v1429_v0 = vld [vmem:[%s2049_s1] sm:$0xff]   ;;  %v1430_v1 = vld [vmem:[%s2049_s1 + $0x8] sm:$0xff]   ;;  %v1431_v2 = vld [vmem:[%s2049_s1 + $0x10] sm:$0xff]  }
   0x2   :  { %1301 = vmatprep.subr.bf16.mxu0 %v1429_v0  ;;  %v1432_v3 = vld [vmem:[%s2049_s1 + $0x18] sm:$0xff]   ;;  %v1437_v4 = vld [vmem:[%s2050_s0] sm:$0xff]   ;;  %v1434_v6 = vld [vmem:[%s2049_s1 + $0x28] sm:$0xff]  }
   0x3   :  { %1302 = vmatpush3.bf16.msra.mxu0 %v1429_v0  ;;  %1317 = vmatprep.mubr.bf16.mxu0 %v1437_v4  ;;  %v1433_v5 = vld [vmem:[%s2049_s1 + $0x20] sm:$0xff]   ;;  %v1446_v8 = vld [vmem:[%s2051_s5 + $0x8] sm:$0xff]   ;;  %v1435_v9 = vld [vmem:[%s2049_s1 + $0x30] sm:$0xff]  }
   0x4   :  { %1303 = vmatprep.subr.bf16.mxu0 %v1430_v1  ;;  %v1445_v7 = vld [vmem:[%s2051_s5] sm:$0xff]   ;;  %v1436_v10 = vld [vmem:[%s2049_s1 + $0x38] sm:$0xff]   ;;  %v1438_v11 = vld [vmem:[%s2050_s0 + $0x8] sm:$0xff]  }
   0x5   :  { %1333 = vmatprep.subr.bf16.mxu1 %v1445_v7  ;;  %v1439_v12 = vld [vmem:[%s2050_s0 + $0x10] sm:$0xff]   ;;  %v1440_v13 = vld [vmem:[%s2050_s0 + $0x18] sm:$0xff]   ;;  %v1441_v14 = vld [vmem:[%s2050_s0 + $0x20] sm:$0xff]  }
   0x6   :  { %1334 = vmatpush3.bf16.msra.mxu1 %v1445_v7  ;;  %v1442_v15 = vld [vmem:[%s2050_s0 + $0x28] sm:$0xff]   ;;  %v1443_v16 = vld [vmem:[%s2050_s0 + $0x30] sm:$0xff]   ;;  %v1444_v17 = vld [vmem:[%s2050_s0 + $0x38] sm:$0xff]  }
   0x7   :  { %1304 = vmatpush3.bf16.msra.mxu0 %v1430_v1  ;;  %1335 = vmatprep.subr.bf16.mxu1 %v1446_v8  ;;  %v1447_v18 = vld [vmem:[%s2051_s5 + $0x10] sm:$0xff]   ;;  %v1448_v19 = vld [vmem:[%s2051_s5 + $0x18] sm:$0xff]   ;;  %v1449_v20 = vld [vmem:[%s2051_s5 + $0x20] sm:$0xff]  }
   0x8   :  { %1305 = vmatprep.subr.bf16.mxu0 %v1431_v2  ;;  %v1450_v21 = vld [vmem:[%s2052_s4] sm:$0xff]   ;;  %v1451_v22 = vld [vmem:[%s2051_s5 + $0x28] sm:$0xff]   ;;  %v1453_v24 = vld [vmem:[%s2051_s5 + $0x30] sm:$0xff]  }
   0x9   :  { %v1452_v23 = vld [vmem:[%s2052_s4 + $0x8] sm:$0xff]   ;;  %v1454_v25 = vld [vmem:[%s2052_s4 + $0x10] sm:$0xff]   ;;  %v1455_v26 = vld [vmem:[%s2051_s5 + $0x38] sm:$0xff]  }
   0xa   :  { %1336 = vmatpush3.bf16.msra.mxu1 %v1446_v8  ;;  %v1456_v27 = vld [vmem:[%s2053_s3] sm:$0xff]   ;;  %v1457_v28 = vld [vmem:[%s2052_s4 + $0x18] sm:$0xff]   ;;  %v1458_v29 = vld [vmem:[%s2053_s3 + $0x8] sm:$0xff]  }
   0xb   :  { %1306 = vmatpush3.bf16.msra.mxu0 %v1431_v2  ;;  %1337 = vmatprep.subr.bf16.mxu1 %v1447_v18  ;;  %v1459_v30 = vld [vmem:[%s2052_s4 + $0x20] sm:$0xff]   ;;  %v1460_v31 = vld [vmem:[%s2053_s3 + $0x10] sm:$0xff]   ;;  %v1461_v32 = vld [vmem:[%s2052_s4 + $0x28] sm:$0xff]  }
   0xc   :  { %1307 = vmatprep.subr.bf16.mxu0 %v1432_v3  ;;  %1349 = vmatprep.mubr.bf16.mxu1 %v1456_v27  ;;  %v1462_v33 = vld [vmem:[%s2053_s3 + $0x18] sm:$0xff]   ;;  %v1463_v34 = vld [vmem:[%s2052_s4 + $0x30] sm:$0xff]   ;;  %v1465_v36 = vld [vmem:[%s2053_s3 + $0x20] sm:$0xff]  }
   0xd   :  { %v1464_v35 = vld [vmem:[%s2052_s4 + $0x38] sm:$0xff]   ;;  %v1466_v37 = vld [vmem:[%s2053_s3 + $0x28] sm:$0xff]   ;;  %v1467_v38 = vld [vmem:[%s2053_s3 + $0x30] sm:$0xff]  }
   0xe   :  { %1338 = vmatpush3.bf16.msra.mxu1 %v1447_v18  ;;  %v1468_v39 = vld [vmem:[%s2053_s3 + $0x38] sm:$0xff]   ;;  %v1760_v40 = vld [vmem:[%s2054_s2] ss:$0 sm:$0xff] }
   0xf   :  { %1308 = vmatpush3.bf16.msra.mxu0 %v1432_v3  ;;  %1339 = vmatprep.subr.bf16.mxu1 %v1448_v19 }
  0x10   :  { %1309 = vmatprep.subr.bf16.mxu0 %v1433_v5 }
  0x12   :  { %1340 = vmatpush3.bf16.msra.mxu1 %v1448_v19 }
  0x13   :  { %1310 = vmatpush3.bf16.msra.mxu0 %v1433_v5  ;;  %1341 = vmatprep.subr.bf16.mxu1 %v1449_v20 }
  0x14   :  { %1311 = vmatprep.subr.bf16.mxu0 %v1434_v6 }
  0x16   :  { %1342 = vmatpush3.bf16.msra.mxu1 %v1449_v20 }
  0x17   :  { %1312 = vmatpush3.bf16.msra.mxu0 %v1434_v6  ;;  %1343 = vmatprep.subr.bf16.mxu1 %v1451_v22 }
  0x18   :  { %1313 = vmatprep.subr.bf16.mxu0 %v1435_v9 }
  0x1a   :  { %1344 = vmatpush3.bf16.msra.mxu1 %v1451_v22 }
  0x1b   :  { %1314 = vmatpush3.bf16.msra.mxu0 %v1435_v9  ;;  %1345 = vmatprep.subr.bf16.mxu1 %v1453_v24 }
  0x1c   :  { %1315 = vmatprep.subr.bf16.mxu0 %v1436_v10 }
  0x1e   :  { %1346 = vmatpush3.bf16.msra.mxu1 %v1453_v24 }
  0x1f   :  { %1316 = vmatpush3.bf16.msra.mxu0 %v1436_v10  ;;  %1347 = vmatprep.subr.bf16.mxu1 %v1455_v26 }
  0x20   :  { %1365 = vmatprep.subr.bf16.mxu0 %v1450_v21 }
  0x22   :  { %1318 = vmatmul.mubr.bf16.vlgmr.msra.gmra.mrb[0].mxu0 %v1438_v11  ;;  %1348 = vmatpush3.bf16.msra.mxu1 %v1455_v26 }
  0x23   :  { %1321 = vmatprep.mubr.bf16.mxu0 %v1439_v12  ;;  %1366 = vmatpush3.bf16.msra.mxu0 %v1450_v21 }
  0x24   :  { %1367 = vmatprep.subr.bf16.mxu0 %v1452_v23  ;;  %1397 = vmatprep.subr.bf16.mxu1 %v1450_v21 }
  0x25   :  { %1350 = vmatmul.mubr.bf16.vlgmr.msra.gmra.mrb[0].mxu1 %v1458_v29 }
  0x26   :  { %1405 = vmatpush3.bf16.msra.mxu1 %v1450_v21  ;;  %1353 = vmatprep.mubr.bf16.mxu1 %v1460_v31 }
  0x27   :  { %1368 = vmatpush3.bf16.msra.mxu0 %v1452_v23  ;;  %1398 = vmatprep.subr.bf16.mxu1 %v1452_v23 }
  0x28   :  { %1369 = vmatprep.subr.bf16.mxu0 %v1454_v25 }
  0x2a   :  { %1322 = vmatmul.mubr.bf16.gmra.mrb[4].mxu0 %v1440_v13  ;;  %1406 = vmatpush3.bf16.msra.mxu1 %v1452_v23 }
  0x2b   :  { %1325 = vmatprep.mubr.bf16.mxu0 %v1441_v14  ;;  %1370 = vmatpush3.bf16.msra.mxu0 %v1454_v25 }
  0x2c   :  { %1371 = vmatprep.subr.bf16.mxu0 %v1457_v28  ;;  %1399 = vmatprep.subr.bf16.mxu1 %v1454_v25 }
  0x2d   :  { %1354 = vmatmul.mubr.bf16.gmra.mrb[4].mxu1 %v1462_v33 }
  0x2e   :  { %1407 = vmatpush3.bf16.msra.mxu1 %v1454_v25  ;;  %1357 = vmatprep.mubr.bf16.mxu1 %v1465_v36 }
  0x2f   :  { %1372 = vmatpush3.bf16.msra.mxu0 %v1457_v28  ;;  %1400 = vmatprep.subr.bf16.mxu1 %v1457_v28 }
  0x30   :  { %1373 = vmatprep.subr.bf16.mxu0 %v1459_v30 }
  0x32   :  { %1326 = vmatmul.mubr.bf16.gmra.mrb[8].mxu0 %v1442_v15  ;;  %1408 = vmatpush3.bf16.msra.mxu1 %v1457_v28 }
  0x33   :  { %1329 = vmatprep.mubr.bf16.mxu0 %v1443_v16  ;;  %1374 = vmatpush3.bf16.msra.mxu0 %v1459_v30 }
  0x34   :  { %1375 = vmatprep.subr.bf16.mxu0 %v1461_v32  ;;  %1401 = vmatprep.subr.bf16.mxu1 %v1459_v30 }
  0x35   :  { %1358 = vmatmul.mubr.bf16.gmra.mrb[8].mxu1 %v1466_v37 }
  0x36   :  { %1409 = vmatpush3.bf16.msra.mxu1 %v1459_v30  ;;  %1361 = vmatprep.mubr.bf16.mxu1 %v1467_v38 }
  0x37   :  { %1376 = vmatpush3.bf16.msra.mxu0 %v1461_v32  ;;  %1402 = vmatprep.subr.bf16.mxu1 %v1461_v32 }
  0x38   :  { %1377 = vmatprep.subr.bf16.mxu0 %v1463_v34 }
  0x3a   :  { %1330 = vmatmul.mubr.bf16.gmra.mrb[12].mxu0 %v1444_v17  ;;  %1410 = vmatpush3.bf16.msra.mxu1 %v1461_v32 }
  0x3b   :  { %1378 = vmatpush3.bf16.msra.mxu0 %v1463_v34  ;;  %1403 = vmatprep.subr.bf16.mxu1 %v1463_v34 }
  0x3c   :  { %1379 = vmatprep.subr.bf16.mxu0 %v1464_v35 }
  0x3d   :  { %1362 = vmatmul.mubr.bf16.gmra.mrb[12].mxu1 %v1468_v39 }
  0x3e   :  { %1411 = vmatpush3.bf16.msra.mxu1 %v1463_v34 }
  0x3f   :  { %1380 = vmatpush3.bf16.msra.mxu0 %v1464_v35  ;;  %1404 = vmatprep.subr.bf16.mxu1 %v1464_v35 }
  0x42   :  { %1412 = vmatpush3.bf16.msra.mxu1 %v1464_v35 }
  0xf5   :  { %v1319_v41 = vpop.f32.mrb[0].mxu0 }
  0xf6   :  { %v1763_v42 = vadd.f32 %v1319_v41, %v1760_v40  ;;  %v200_v43 = vpop.f32.mrb[1].mxu0 }
  0xf7   :  { %v1766_v44 = vadd.f32 %v1760_v40, %v200_v43  ;;  %v1320_v45 = vpop.f32.mrb[2].mxu0 }
  0xf8   :  { %v265_v46 = vmin.f32 %v1763_v42, 20.0  ;;  %v1770_v47 = vadd.f32 %v1320_v45, %v1760_v40  ;;  %v203_v48 = vpop.f32.mrb[3].mxu0  ;;  %vm409_vm0 = vcmp.gt.f32.partialorder %v1763_v42, 20.0 }
  0xf9   :  { %v263_v49 = vmin.f32 %v1766_v44, 20.0  ;;  %v1774_v50 = vadd.f32 %v1760_v40, %v203_v48  ;;  %vm407_vm1 = vcmp.gt.f32.partialorder %v1766_v44, 20.0 }
  0xfa   :  { %v283_v51 = vmul.f32 1.442695, %v265_v46  ;;  %v266_v52 = vmin.f32 %v1770_v47, 20.0  ;;  %vm410_vm2 = vcmp.gt.f32.partialorder %v1770_v47, 20.0 }
  0xfb   :  { %v279_v53 = vmul.f32 1.442695, %v263_v49  ;;  %v264_v54 = vmin.f32 %v1774_v50, 20.0  ;;  %vm408_vm3 = vcmp.gt.f32.partialorder %v1774_v50, 20.0 }
  0xfc   :  { %1469 = vpow2.f32 %v283_v51  ;;  %v285_v55 = vmul.f32 1.442695, %v266_v52 }
  0xfd   :  { %1471 = vpow2.f32 %v279_v53  ;;  %v281_v56 = vmul.f32 1.442695, %v264_v54  ;;  %v1323_v57 = vpop.f32.mrb[4].mxu0 }
  0xfe   :  { %1473 = vpow2.f32 %v285_v55  ;;  %v1779_v58 = vadd.f32 %v1323_v57, %v1760_v40  ;;  %v216_v59 = vpop.f32.mrb[5].mxu0 }
  0xff   :  { %1475 = vpow2.f32 %v281_v56  ;;  %v1782_v60 = vadd.f32 %v1760_v40, %v216_v59  ;;  %v1324_v61 = vpop.f32.mrb[6].mxu0 }
 0x100   :  { %v269_v62 = vmin.f32 %v1779_v58, 20.0  ;;  %v1786_v63 = vadd.f32 %v1324_v61, %v1760_v40  ;;  %v219_v0 = vpop.f32.mrb[7].mxu0  ;;  %vm413_vm4 = vcmp.gt.f32.partialorder %v1779_v58, 20.0 }
 0x101   :  { %v267_v1 = vmin.f32 %v1782_v60, 20.0  ;;  %v1790_v2 = vadd.f32 %v1760_v40, %v219_v0  ;;  %vm411_vm5 = vcmp.gt.f32.partialorder %v1782_v60, 20.0 }
 0x102   :  { %v291_v3 = vmul.f32 1.442695, %v269_v62  ;;  %v270_v4 = vmin.f32 %v1786_v63, 20.0  ;;  %vm414_vm7 = vcmp.gt.f32.partialorder %v1786_v63, 20.0 }
 0x103   :  { %v287_v5 = vmul.f32 1.442695, %v267_v1  ;;  %v268_v6 = vmin.f32 %v1790_v2, 20.0  ;;  %vm412_vm6 = vcmp.gt.f32.partialorder %v1790_v2, 20.0 }
 0x104   :  { %1477 = vpow2.f32 %v291_v3  ;;  %v293_v7 = vmul.f32 1.442695, %v270_v4 }
 0x105   :  { %1479 = vpow2.f32 %v287_v5  ;;  %v289_v8 = vmul.f32 1.442695, %v268_v6  ;;  %v1327_v9 = vpop.f32.mrb[8].mxu0 }
 0x106   :  { %v1470_v10 = vpop.eup %1469  ;;  %1481 = vpow2.f32 %v293_v7  ;;  %v1795_v11 = vadd.f32 %v1327_v9, %v1760_v40  ;;  %v232_v12 = vpop.f32.mrb[9].mxu0 }
 0x107   :  { %v1472_v13 = vpop.eup %1471  ;;  %v313_v14 = vadd.f32 2.0, %v1470_v10  ;;  %1483 = vpow2.f32 %v289_v8  ;;  %v1798_v15 = vadd.f32 %v1760_v40, %v232_v12  ;;  %v1328_v16 = vpop.f32.mrb[10].mxu0 }
 0x108   :  { %v1474_v17 = vpop.eup %1473  ;;  %v311_v18 = vadd.f32 2.0, %v1472_v13  ;;  %v273_v19 = vmin.f32 %v1795_v11, 20.0  ;;  %v1802_v20 = vadd.f32 %v1328_v16, %v1760_v40  ;;  %v235_v21 = vpop.f32.mrb[11].mxu0  ;;  %vm417_vm8 = vcmp.gt.f32.partialorder %v1795_v11, 20.0 }
 0x109   :  { %v1476_v22 = vpop.eup %1475  ;;  %v329_v23 = vmul.f32 %v1470_v10, %v313_v14  ;;  %v314_v24 = vadd.f32 2.0, %v1474_v17  ;;  %v271_v25 = vmin.f32 %v1798_v15, 20.0  ;;  %v1807_v32 = vadd.f32 %v1760_v40, %v235_v21 }
 0x10a   :  { %v327_v26 = vmul.f32 %v1472_v13, %v311_v18  ;;  %v312_v27 = vadd.f32 2.0, %v1476_v22  ;;  %v299_v28 = vmul.f32 1.442695, %v273_v19  ;;  %v274_v29 = vmin.f32 %v1802_v20, 20.0 }
 0x10b   :  { %v361_v30 = vadd.f32 2.0, %v329_v23  ;;  %v330_v31 = vmul.f32 %v1474_v17, %v314_v24  ;;  %v295_v36 = vmul.f32 1.442695, %v271_v25  ;;  %v272_v48 = vmin.f32 %v1807_v32, 20.0 }
 0x10c   :  { %v359_v33 = vadd.f32 2.0, %v327_v26  ;;  %v1809_v34 = vmul.f32 %v1476_v22, %v312_v27  ;;  %1485 = vpow2.f32 %v299_v28  ;;  %v301_v41 = vmul.f32 1.442695, %v274_v29 }
 0x10d   :  { %1487 = vrcp.f32 %v361_v30  ;;  %v362_v35 = vadd.f32 2.0, %v330_v31  ;;  %v1331_v37 = vpop.f32.mrb[12].mxu0  ;;  %v297_v62 = vmul.f32 1.442695, %v272_v48  ;;  %v345_v6 = vmul.f32 %v329_v23, %v1763_v42 }
 0x10e   :  { %v1478_v38 = vpop.eup %1477  ;;  %1489 = vrcp.f32 %v359_v33  ;;  %v360_v39 = vadd.f32 2.0, %v1809_v34  ;;  %v248_v43 = vpop.f32.mrb[13].mxu0  ;;  %v1814_v49 = vadd.f32 %v1331_v37, %v1760_v40  ;;  %v343_v14 = vmul.f32 %v327_v26, %v1766_v44 }
 0x10f   :  { %v1480_v45 = vpop.eup %1479  ;;  %1491 = vrcp.f32 %v362_v35  ;;  %v317_v46 = vadd.f32 2.0, %v1478_v38  ;;  %v1332_v51 = vpop.f32.mrb[14].mxu0  ;;  %v1817_v54 = vadd.f32 %v1760_v40, %v248_v43  ;;  %v346_v25 = vmul.f32 %v330_v31, %v1770_v47 }
 0x110   :  { %v1482_v52 = vpop.eup %1481  ;;  %1493 = vrcp.f32 %v360_v39  ;;  %v315_v53 = vadd.f32 2.0, %v1480_v45  ;;  %v1820_v55 = vadd.f32 %v1332_v51, %v1760_v40  ;;  %v251_v56 = vpop.f32.mrb[15].mxu0  ;;  %v277_v3 = vmin.f32 %v1814_v49, 20.0 }
 0x111   :  { %v1484_v57 = vpop.eup %1483  ;;  %v333_v59 = vmul.f32 %v1478_v38, %v317_v46  ;;  %v318_v61 = vadd.f32 2.0, %v1482_v52  ;;  %1495 = vpow2.f32 %v295_v36  ;;  %v275_v12 = vmin.f32 %v1817_v54, 20.0 }
 0x112   :  { %v331_v0 = vmul.f32 %v1480_v45, %v315_v53  ;;  %v316_v1 = vadd.f32 2.0, %v1484_v57  ;;  %1497 = vpow2.f32 %v301_v41  ;;  %v307_v10 = vmul.f32 1.442695, %v277_v3 }
 0x113   :  { %v365_v4 = vadd.f32 2.0, %v333_v59  ;;  %v334_v5 = vmul.f32 %v1482_v52, %v318_v61  ;;  %1499 = vpow2.f32 %v297_v62  ;;  %v278_v17 = vmin.f32 %v1820_v55, 20.0 }
 0x114   :  { %v363_v7 = vadd.f32 2.0, %v331_v0  ;;  %v332_v8 = vmul.f32 %v1484_v57, %v316_v1  ;;  %v303_v21 = vmul.f32 1.442695, %v275_v12  ;;  %v1830_v22 = vadd.f32 %v1760_v40, %v251_v56 }
 0x115   :  { %1501 = vrcp.f32 %v365_v4  ;;  %v366_v9 = vadd.f32 2.0, %v334_v5  ;;  %v309_v27 = vmul.f32 1.442695, %v278_v17  ;;  %v344_v40 = vmul.f32 %v1809_v34, %v1774_v50 }
 0x116   :  { %v1486_v13 = vpop.eup %1485  ;;  %1503 = vrcp.f32 %v363_v7  ;;  %v364_v16 = vadd.f32 2.0, %v332_v8  ;;  %v276_v26 = vmin.f32 %v1830_v22, 20.0  ;;  %v349_v34 = vmul.f32 %v333_v59, %v1779_v58 }
 0x117   :  { %v1488_v18 = vpop.eup %1487  ;;  %1505 = vrcp.f32 %v366_v9  ;;  %v321_v19 = vadd.f32 2.0, %v1486_v13  ;;  %v350_v3 = vmul.f32 %v334_v5, %v1786_v63  ;;  %vm418_vm9 = vcmp.gt.f32.partialorder %v1802_v20, 20.0 }
 0x118   :  { %v1490_v23 = vpop.eup %1489  ;;  %v393_v24 = vmul.f32 %v1488_v18, %v345_v6  ;;  %1507 = vrcp.f32 %v364_v16  ;;  %v305_v37 = vmul.f32 1.442695, %v276_v26  ;;  %vm415_vm10 = vcmp.gt.f32.partialorder %v1798_v15, 20.0 }
 0x119   :  { %v1492_v28 = vpop.eup %1491  ;;  %v1833_v29 = vmul.f32 %v1486_v13, %v321_v19  ;;  %1509 = vpow2.f32 %v307_v10  ;;  %v391_v30 = vmul.f32 %v1490_v23, %v343_v14  ;;  %vm416_vm11 = vcmp.gt.f32.partialorder %v1807_v32, 20.0 }
 0x11a   :  { %v1494_v33 = vpop.eup %1493  ;;  %v394_v35 = vmul.f32 %v1492_v28, %v346_v25  ;;  %1511 = vpow2.f32 %v303_v21  ;;  %v425_v39 = vsel %vm409_vm0, %v1763_v42, %v393_v24  ;;  %v347_v42 = vmul.f32 %v331_v0, %v1782_v60 }
 0x11b   :  { %v1496_v36 = vpop.eup %1495  ;;  %v369_v31 = vadd.f32 2.0, %v1833_v29  ;;  %1513 = vpow2.f32 %v309_v27  ;;  %v392_v45 = vmul.f32 %v1494_v33, %v344_v40  ;;  %v423_v52 = vsel %vm407_vm1, %v1766_v44, %v391_v30 }
 0x11c   :  { %v1498_v38 = vpop.eup %1497  ;;  %v426_v41 = vsel %vm410_vm2, %v1770_v47, %v394_v35  ;;  %v319_v43 = vadd.f32 2.0, %v1496_v36  ;;  %1515 = vpow2.f32 %v305_v37  ;;  %v348_v44 = vmul.f32 %v332_v8, %v1790_v2 }
 0x11d   :  { %v1500_v46 = vpop.eup %1499  ;;  %v440_v48 = vpack.c.bf16 %v426_v41, %v425_v39  ;;  %v322_v51 = vadd.f32 2.0, %v1498_v38  ;;  %v424_v57 = vsel %vm408_vm3, %v1774_v50, %v392_v45  ;;  %1517 = vrcp.f32 %v369_v31 }
 0x11e   :  { %v335_v53 = vmul.f32 %v1496_v36, %v319_v43  ;;  %v320_v56 = vadd.f32 2.0, %v1500_v46  ;;  %v439_v62 = vpack.c.bf16 %v424_v57, %v423_v52  ;;  %vm421_vm12 = vcmp.gt.f32.partialorder %v1814_v49, 20.0 }
 0x11f   :  { %v1502_v61 = vpop.eup %1501  ;;  %v338_v47 = vmul.f32 %v1498_v38, %v322_v51  ;;  %vm422_vm13 = vcmp.gt.f32.partialorder %v1820_v55, 20.0  ;;  %vm419_vm14 = vcmp.gt.f32.partialorder %v1817_v54, 20.0  ;;  %vm420_vm15 = vcmp.gt.f32.partialorder %v1830_v22, 20.0 }
 0x120   :  { %v1504_v1 = vpop.eup %1503  ;;  %v367_v59 = vadd.f32 2.0, %v335_v53  ;;  %v336_v4 = vmul.f32 %v1500_v46, %v320_v56  ;;  %v397_v6 = vmul.f32 %v1502_v61, %v349_v34  ;;  %1381 = vmatprep.mubr.bf16.mxu0 %v439_v62 }
 0x121   :  { %v1506_v7 = vpop.eup %1505  ;;  %v370_v9 = vadd.f32 2.0, %v338_v47  ;;  %v395_v10 = vmul.f32 %v1504_v1, %v347_v42  ;;  %1382 = vmatmul.mubr.bf16.vlgmr.msra.gmra.mrb[16].mxu0 %v440_v48  ;;  %v354_v39 = vmul.f32 %v338_v47, %v1802_v20 }
 0x122   :  { %v1508_v50 = vpop.eup %1507  ;;  %1519 = vrcp.f32 %v367_v59  ;;  %v368_v0 = vadd.f32 2.0, %v336_v4  ;;  %v398_v12 = vmul.f32 %v1506_v7, %v350_v3  ;;  %v429_v16 = vsel %vm413_vm4, %v1779_v58, %v397_v6 }
 0x123   :  { %v1510_v13 = vpop.eup %1509  ;;  %1521 = vrcp.f32 %v370_v9  ;;  %v396_v5 = vmul.f32 %v1508_v50, %v348_v44  ;;  %v427_v21 = vsel %vm411_vm5, %v1782_v60, %v395_v10  ;;  %v351_v60 = vmul.f32 %v335_v53, %v1798_v15 }
 0x124   :  { %v1512_v8 = vpop.eup %1511  ;;  %1523 = vrcp.f32 %v368_v0  ;;  %v325_v14 = vadd.f32 2.0, %v1510_v13  ;;  %v430_v17 = vsel %vm414_vm7, %v1786_v63, %v398_v12  ;;  %v353_v63 = vmul.f32 %v1833_v29, %v1795_v11  ;;  %v1351_v12 = vpop.f32.mrb[0].mxu1 }
 0x125   :  { %v1514_v18 = vpop.eup %1513  ;;  %v323_v19 = vadd.f32 2.0, %v1512_v8  ;;  %v428_v23 = vsel %vm412_vm6, %v1790_v2, %v396_v5  ;;  %v442_v24 = vpack.c.bf16 %v430_v17, %v429_v16  ;;  %v352_v43 = vmul.f32 %v336_v4, %v1807_v32 }
 0x126   :  { %v341_v25 = vmul.f32 %v1510_v13, %v325_v14  ;;  %v326_v27 = vadd.f32 2.0, %v1514_v18  ;;  %v441_v28 = vpack.c.bf16 %v428_v23, %v427_v21  ;;  %v1516_v30 = vpop.eup %1515  ;;  %v641_v13 = vpop.f32.mrb[1].mxu1 }
 0x127   :  { %v339_v26 = vmul.f32 %v1512_v8, %v323_v19  ;;  %v1518_v40 = vpop.eup %1517  ;;  %v324_v58 = vadd.f32 2.0, %v1516_v30  ;;  %v1352_v5 = vpop.f32.mrb[2].mxu1 }
 0x128   :  { %v373_v33 = vadd.f32 2.0, %v341_v25  ;;  %v342_v35 = vmul.f32 %v1514_v18, %v326_v27  ;;  %1385 = vmatprep.mubr.bf16.mxu0 %v441_v28  ;;  %v401_v38 = vmul.f32 %v1518_v40, %v353_v63  ;;  %v357_v42 = vmul.f32 %v341_v25, %v1814_v49  ;;  %v644_v8 = vpop.f32.mrb[3].mxu1  ;;  %v1889_v18 = vld [vmem:[%s2055_s6] ss:$0 sm:$0xff] }
 0x129   :  { %v371_v36 = vadd.f32 2.0, %v339_v26  ;;  %1386 = vmatmul.mubr.bf16.gmra.mrb[20].mxu0 %v442_v24  ;;  %v340_v2 = vmul.f32 %v1516_v30, %v324_v58  ;;  %v355_v3 = vmul.f32 %v339_v26, %v1817_v54 }
 0x12a   :  { %1525 = vrcp.f32 %v373_v33  ;;  %v374_v31 = vadd.f32 2.0, %v342_v35  ;;  %v433_v51 = vsel %vm417_vm8, %v1795_v11, %v401_v38  ;;  %v358_v1 = vmul.f32 %v342_v35, %v1820_v55 }
 0x12b   :  { %1527 = vrcp.f32 %v371_v36  ;;  %v372_v45 = vadd.f32 2.0, %v340_v2  ;;  %v356_v4 = vmul.f32 %v340_v2, %v1830_v22 }
 0x12c   :  { %v1520_v37 = vpop.eup %1519  ;;  %1529 = vrcp.f32 %v374_v31 }
 0x12d   :  { %v1522_v41 = vpop.eup %1521  ;;  %v399_v46 = vmul.f32 %v1520_v37, %v351_v60  ;;  %1531 = vrcp.f32 %v372_v45 }
 0x12e   :  { %v1524_v48 = vpop.eup %1523  ;;  %v402_v34 = vmul.f32 %v1522_v41, %v354_v39 }
 0x12f   :  { %v400_v29 = vmul.f32 %v1524_v48, %v352_v43  ;;  %v431_v56 = vsel %vm415_vm10, %v1798_v15, %v399_v46 }
 0x130   :  { %v434_v52 = vsel %vm418_vm9, %v1802_v20, %v402_v34 }
 0x131   :  { %v444_v53 = vpack.c.bf16 %v434_v52, %v433_v51  ;;  %v432_v57 = vsel %vm416_vm11, %v1807_v32, %v400_v29 }
 0x132   :  { %v443_v61 = vpack.c.bf16 %v432_v57, %v431_v56 }
 0x134   :  { %v1526_v47 = vpop.eup %1525  ;;  %1389 = vmatprep.mubr.bf16.mxu1 %v443_v61 }
 0x135   :  { %v1528_v62 = vpop.eup %1527  ;;  %1390 = vmatmul.mubr.bf16.vlgmr.msra.gmra.mrb[8].mxu1 %v444_v53  ;;  %v405_v11 = vmul.f32 %v1526_v47, %v357_v42 }
 0x136   :  { %v1530_v20 = vpop.eup %1529  ;;  %v403_v6 = vmul.f32 %v1528_v62, %v355_v3 }
 0x137   :  { %v406_v59 = vmul.f32 %v1530_v20, %v358_v1  ;;  %v1532_v15 = vpop.eup %1531  ;;  %v437_v32 = vsel %vm421_vm12, %v1814_v49, %v405_v11  ;;  %v1355_v49 = vpop.f32.mrb[4].mxu1 }
 0x138   :  { %v404_v44 = vmul.f32 %v1532_v15, %v356_v4  ;;  %v435_v10 = vsel %vm419_vm14, %v1817_v54, %v403_v6  ;;  %v657_v14 = vpop.f32.mrb[5].mxu1 }
 0x139   :  { %v438_v7 = vsel %vm422_vm13, %v1820_v55, %v406_v59  ;;  %v1356_v55 = vpop.f32.mrb[6].mxu1 }
 0x13a   :  { %v446_v9 = vpack.c.bf16 %v438_v7, %v437_v32  ;;  %v436_v50 = vsel %vm420_vm15, %v1830_v22, %v404_v44  ;;  %v660_v16 = vpop.f32.mrb[7].mxu1 }
 0x13b   :  { %v445_v0 = vpack.c.bf16 %v436_v50, %v435_v10 }
 0x13d   :  { %1393 = vmatprep.mubr.bf16.mxu1 %v445_v0 }
 0x13e   :  { %1394 = vmatmul.mubr.bf16.gmra.mrb[12].mxu1 %v446_v9 }
 0x1f4   :  { %v1383_v17 = vpop.f32.mrb[16].mxu0 }
 0x1f5   :  { %v795_v54 = vadd.f32 %v1383_v17, %v1351_v12  ;;  %v786_v19 = vpop.f32.mrb[17].mxu0 }
 0x1f6   :  { %v787_v22 = vadd.f32 %v786_v19, %v641_v13  ;;  %v1384_v21 = vpop.f32.mrb[18].mxu0 }
 0x1f7   :  { %v1892_v23 = vadd.f32 %v1889_v18, %v795_v54  ;;  %v798_v24 = vadd.f32 %v1384_v21, %v1352_v5  ;;  %v789_v25 = vpop.f32.mrb[19].mxu0 }
 0x1f8   :  { %v1895_v27 = vadd.f32 %v1889_v18, %v787_v22  ;;  %v790_v28 = vadd.f32 %v789_v25, %v644_v8 }
 0x1f9   :  { %v874_v26 = vmin.f32 %v1892_v23, 20.0  ;;  %v1899_v30 = vadd.f32 %v1889_v18, %v798_v24  ;;  %vm1018_vm0 = vcmp.gt.f32.partialorder %v1892_v23, 20.0 }
 0x1fa   :  { %v872_v33 = vmin.f32 %v1895_v27, 20.0  ;;  %v1903_v35 = vadd.f32 %v1889_v18, %v790_v28  ;;  %vm1016_vm1 = vcmp.gt.f32.partialorder %v1895_v27, 20.0 }
 0x1fb   :  { %v892_v40 = vmul.f32 1.442695, %v874_v26  ;;  %v875_v36 = vmin.f32 %v1899_v30, 20.0  ;;  %vm1019_vm2 = vcmp.gt.f32.partialorder %v1899_v30, 20.0 }
 0x1fc   :  { %v888_v58 = vmul.f32 1.442695, %v872_v33  ;;  %v873_v63 = vmin.f32 %v1903_v35, 20.0  ;;  %v1387_v31 = vpop.f32.mrb[20].mxu0  ;;  %vm1017_vm3 = vcmp.gt.f32.partialorder %v1903_v35, 20.0 }
 0x1fd   :  { %1533 = vpow2.f32 %v892_v40  ;;  %v894_v60 = vmul.f32 1.442695, %v875_v36  ;;  %v811_v2 = vadd.f32 %v1387_v31, %v1355_v49  ;;  %v802_v37 = vpop.f32.mrb[21].mxu0 }
 0x1fe   :  { %1535 = vpow2.f32 %v888_v58  ;;  %v890_v38 = vmul.f32 1.442695, %v873_v63  ;;  %v803_v39 = vadd.f32 %v802_v37, %v657_v14  ;;  %v1388_v41 = vpop.f32.mrb[22].mxu0 }
 0x1ff   :  { %1537 = vpow2.f32 %v894_v60  ;;  %v1908_v43 = vadd.f32 %v1889_v18, %v811_v2  ;;  %v814_v45 = vadd.f32 %v1388_v41, %v1356_v55  ;;  %v805_v46 = vpop.f32.mrb[23].mxu0 }
 0x200   :  { %1539 = vpow2.f32 %v890_v38  ;;  %v1911_v48 = vadd.f32 %v1889_v18, %v803_v39  ;;  %v806_v34 = vadd.f32 %v805_v46, %v660_v16 }
 0x201   :  { %v878_v29 = vmin.f32 %v1908_v43, 20.0  ;;  %v1915_v51 = vadd.f32 %v1889_v18, %v814_v45  ;;  %vm1022_vm4 = vcmp.gt.f32.partialorder %v1908_v43, 20.0 }
 0x202   :  { %v876_v52 = vmin.f32 %v1911_v48, 20.0  ;;  %v1919_v53 = vadd.f32 %v1889_v18, %v806_v34  ;;  %vm1020_vm5 = vcmp.gt.f32.partialorder %v1911_v48, 20.0 }
 0x203   :  { %v900_v56 = vmul.f32 1.442695, %v878_v29  ;;  %v879_v57 = vmin.f32 %v1915_v51, 20.0  ;;  %vm1023_vm6 = vcmp.gt.f32.partialorder %v1915_v51, 20.0 }
 0x204   :  { %v896_v61 = vmul.f32 1.442695, %v876_v52  ;;  %v877_v42 = vmin.f32 %v1919_v53, 20.0  ;;  %vm1021_vm7 = vcmp.gt.f32.partialorder %v1919_v53, 20.0 }
 0x205   :  { %1541 = vpow2.f32 %v900_v56  ;;  %v902_v47 = vmul.f32 1.442695, %v879_v57 }
 0x206   :  { %1543 = vpow2.f32 %v896_v61  ;;  %v898_v62 = vmul.f32 1.442695, %v877_v42 }
 0x207   :  { %v1534_v1 = vpop.eup %1533  ;;  %1545 = vpow2.f32 %v902_v47 }
 0x208   :  { %v1391_v11 = vpop.f32.mrb[8].mxu1  ;;  %v1536_v20 = vpop.eup %1535  ;;  %v922_v3 = vadd.f32 2.0, %v1534_v1  ;;  %1547 = vpow2.f32 %v898_v62 }
 0x209   :  { %v1924_v59 = vadd.f32 %v1391_v11, %v1889_v18  ;;  %v818_v4 = vpop.f32.mrb[9].mxu1  ;;  %v1538_v6 = vpop.eup %1537  ;;  %v920_v15 = vadd.f32 2.0, %v1536_v20 }
 0x20a   :  { %v1927_v32 = vadd.f32 %v1889_v18, %v818_v4  ;;  %v1392_v7 = vpop.f32.mrb[10].mxu1  ;;  %v1540_v44 = vpop.eup %1539  ;;  %v938_v9 = vmul.f32 %v1534_v1, %v922_v3  ;;  %v923_v10 = vadd.f32 2.0, %v1538_v6 }
 0x20b   :  { %v882_v50 = vmin.f32 %v1924_v59, 20.0  ;;  %v821_v0 = vpop.f32.mrb[11].mxu1  ;;  %v936_v12 = vmul.f32 %v1536_v20, %v920_v15  ;;  %v921_v13 = vadd.f32 2.0, %v1540_v44  ;;  %v1932_v54 = vadd.f32 %v1392_v7, %v1889_v18 }
 0x20c   :  { %v880_v5 = vmin.f32 %v1927_v32, 20.0  ;;  %v970_v8 = vadd.f32 2.0, %v938_v9  ;;  %v939_v49 = vmul.f32 %v1538_v6, %v923_v10  ;;  %v1935_v24 = vadd.f32 %v1889_v18, %v821_v0 }
 0x20d   :  { %v968_v14 = vadd.f32 2.0, %v936_v12  ;;  %v937_v55 = vmul.f32 %v1540_v44, %v921_v13  ;;  %v908_v17 = vmul.f32 1.442695, %v882_v50  ;;  %v883_v26 = vmin.f32 %v1932_v54, 20.0 }
 0x20e   :  { %1549 = vrcp.f32 %v970_v8  ;;  %v971_v16 = vadd.f32 2.0, %v939_v49  ;;  %v904_v21 = vmul.f32 1.442695, %v880_v5  ;;  %v881_v36 = vmin.f32 %v1935_v24, 20.0 }
 0x20f   :  { %v1542_v19 = vpop.eup %1541  ;;  %1551 = vrcp.f32 %v968_v14  ;;  %v969_v22 = vadd.f32 2.0, %v937_v55  ;;  %v910_v60 = vmul.f32 1.442695, %v883_v26  ;;  %v954_v42 = vmul.f32 %v938_v9, %v1892_v23 }
 0x210   :  { %v1544_v25 = vpop.eup %1543  ;;  %1553 = vrcp.f32 %v971_v16  ;;  %v926_v28 = vadd.f32 2.0, %v1542_v19  ;;  %v906_v39 = vmul.f32 1.442695, %v881_v36  ;;  %v952_v11 = vmul.f32 %v936_v12, %v1895_v27 }
 0x211   :  { %v1546_v33 = vpop.eup %1545  ;;  %1555 = vrcp.f32 %v969_v22  ;;  %v924_v40 = vadd.f32 2.0, %v1544_v25  ;;  %v1395_v2 = vpop.f32.mrb[12].mxu1  ;;  %v955_v15 = vmul.f32 %v939_v49, %v1899_v30  ;;  %v953_v10 = vmul.f32 %v937_v55, %v1903_v35 }
 0x212   :  { %v1548_v58 = vpop.eup %1547  ;;  %v1940_v63 = vmul.f32 %v1542_v19, %v926_v28  ;;  %v927_v31 = vadd.f32 2.0, %v1546_v33  ;;  %1557 = vpow2.f32 %v908_v17  ;;  %v834_v41 = vpop.f32.mrb[13].mxu1  ;;  %v1952_v61 = vadd.f32 %v1395_v2, %v1889_v18 }
 0x213   :  { %v1942_v37 = vmul.f32 %v1544_v25, %v924_v40  ;;  %v925_v38 = vadd.f32 2.0, %v1548_v58  ;;  %1559 = vpow2.f32 %v904_v21  ;;  %v1396_v34 = vpop.f32.mrb[14].mxu1  ;;  %v1957_v62 = vadd.f32 %v1889_v18, %v834_v41 }
 0x214   :  { %v974_v45 = vadd.f32 2.0, %v1940_v63  ;;  %v943_v46 = vmul.f32 %v1546_v33, %v927_v31  ;;  %1561 = vpow2.f32 %v910_v60  ;;  %v837_v56 = vpop.f32.mrb[15].mxu1  ;;  %v886_v20 = vmin.f32 %v1952_v61, 20.0 }
 0x215   :  { %v972_v29 = vadd.f32 2.0, %v1942_v37  ;;  %v1948_v52 = vmul.f32 %v1548_v58, %v925_v38  ;;  %1563 = vpow2.f32 %v906_v39  ;;  %v1962_v3 = vadd.f32 %v1396_v34, %v1889_v18 }
 0x216   :  { %1565 = vrcp.f32 %v974_v45  ;;  %v975_v57 = vadd.f32 2.0, %v943_v46  ;;  %v884_v7 = vmin.f32 %v1957_v62, 20.0  ;;  %v916_v50 = vmul.f32 1.442695, %v886_v20 }
 0x217   :  { %1567 = vrcp.f32 %v972_v29  ;;  %v973_v47 = vadd.f32 2.0, %v1948_v52  ;;  %v887_v0 = vmin.f32 %v1962_v3, 20.0  ;;  %v1972_v14 = vadd.f32 %v1889_v18, %v837_v56 }
 0x218   :  { %v1550_v1 = vpop.eup %1549  ;;  %1569 = vrcp.f32 %v975_v57  ;;  %v912_v8 = vmul.f32 1.442695, %v884_v7  ;;  %v958_v40 = vmul.f32 %v1940_v63, %v1908_v43  ;;  %v956_v31 = vmul.f32 %v1942_v37, %v1911_v48 }
 0x219   :  { %v1552_v4 = vpop.eup %1551  ;;  %v1002_v6 = vmul.f32 %v1550_v1, %v954_v42  ;;  %1571 = vrcp.f32 %v973_v47  ;;  %v918_v55 = vmul.f32 1.442695, %v887_v0  ;;  %v885_v18 = vmin.f32 %v1972_v14, 20.0 }
 0x21a   :  { %v1554_v44 = vpop.eup %1553  ;;  %v1000_v9 = vmul.f32 %v1552_v4, %v952_v11  ;;  %1573 = vpow2.f32 %v916_v50  ;;  %v959_v60 = vmul.f32 %v943_v46, %v1915_v51  ;;  %v957_v56 = vmul.f32 %v1948_v52, %v1919_v53 }
 0x21b   :  { %v1556_v12 = vpop.eup %1555  ;;  %v1034_v13 = vsel %vm1018_vm0, %v1892_v23, %v1002_v6  ;;  %v1003_v5 = vmul.f32 %v1554_v44, %v955_v15  ;;  %1575 = vpow2.f32 %v912_v8  ;;  %v914_v45 = vmul.f32 1.442695, %v885_v18 }
 0x21c   :  { %v1558_v49 = vpop.eup %1557  ;;  %v1032_v16 = vsel %vm1016_vm1, %v1895_v27, %v1000_v9  ;;  %v1001_v17 = vmul.f32 %v1556_v12, %v953_v10  ;;  %1577 = vpow2.f32 %v918_v55  ;;  %vm1026_vm8 = vcmp.gt.f32.partialorder %v1924_v59, 20.0 }
 0x21d   :  { %v1560_v19 = vpop.eup %1559  ;;  %v1035_v23 = vsel %vm1019_vm2, %v1899_v30, %v1003_v5  ;;  %v930_v22 = vadd.f32 2.0, %v1558_v49  ;;  %vm1027_vm9 = vcmp.gt.f32.partialorder %v1932_v54, 20.0  ;;  %vm1024_vm10 = vcmp.gt.f32.partialorder %v1927_v32, 20.0 }
 0x21e   :  { %v1562_v21 = vpop.eup %1561  ;;  %v1214_v25 = vpack.c.bf16 %v1035_v23, %v1034_v13  ;;  %v1033_v27 = vsel %vm1017_vm3, %v1903_v35, %v1001_v17  ;;  %v928_v28 = vadd.f32 2.0, %v1560_v19  ;;  %vm1025_vm11 = vcmp.gt.f32.partialorder %v1935_v24, 20.0 }
 0x21f   :  { %v1564_v26 = vpop.eup %1563  ;;  %v1209_v33 = vpack.c.bf16 %v1033_v27, %v1032_v16  ;;  %v946_v36 = vmul.f32 %v1558_v49, %v930_v22  ;;  %v931_v58 = vadd.f32 2.0, %v1562_v21  ;;  %vm1030_vm12 = vcmp.gt.f32.partialorder %v1952_v61, 20.0 }
 0x220   :  { %v1566_v30 = vpop.eup %1565  ;;  %1246 = vst [vmem:[%s2056_s7 + $0x8] sm:$0xff] %v1214_v25   ;;  %v944_v35 = vmul.f32 %v1560_v19, %v928_v28  ;;  %v929_v2 = vadd.f32 2.0, %v1564_v26  ;;  %vm1031_vm13 = vcmp.gt.f32.partialorder %v1962_v3, 20.0  ;;  %vm1028_vm14 = vcmp.gt.f32.partialorder %v1957_v62, 20.0 }
 0x221   :  { %v1568_v38 = vpop.eup %1567  ;;  %1210 = vst [vmem:[%s2056_s7] sm:$0xff] %v1209_v33   ;;  %v1006_v63 = vmul.f32 %v1566_v30, %v958_v40  ;;  %v978_v39 = vadd.f32 2.0, %v946_v36  ;;  %v947_v41 = vmul.f32 %v1562_v21, %v931_v58  ;;  %v962_v5 = vmul.f32 %v946_v36, %v1924_v59 }
 0x222   :  { %v1570_v34 = vpop.eup %1569  ;;  %v1004_v29 = vmul.f32 %v1568_v38, %v956_v31  ;;  %v976_v57 = vadd.f32 2.0, %v944_v35  ;;  %v945_v37 = vmul.f32 %v1564_v26, %v929_v2  ;;  %v960_v16 = vmul.f32 %v944_v35, %v1927_v32 }
 0x223   :  { %v1572_v42 = vpop.eup %1571  ;;  %v1007_v46 = vmul.f32 %v1570_v34, %v959_v60  ;;  %1579 = vrcp.f32 %v978_v39  ;;  %v979_v1 = vadd.f32 2.0, %v947_v41  ;;  %v1038_v11 = vsel %vm1022_vm4, %v1908_v43, %v1006_v63 }
 0x224   :  { %v1005_v47 = vmul.f32 %v1572_v42, %v957_v56  ;;  %1581 = vrcp.f32 %v976_v57  ;;  %v977_v20 = vadd.f32 2.0, %v945_v37  ;;  %v1574_v4 = vpop.eup %1573  ;;  %v1036_v6 = vsel %vm1020_vm5, %v1911_v48, %v1004_v29 }
 0x225   :  { %v1039_v52 = vsel %vm1023_vm6, %v1915_v51, %v1007_v46  ;;  %1583 = vpow2.f32 %v914_v45  ;;  %v1576_v44 = vpop.eup %1575  ;;  %v934_v10 = vadd.f32 2.0, %v1574_v4  ;;  %v963_v23 = vmul.f32 %v947_v41, %v1932_v54 }
 0x226   :  { %v1224_v15 = vpack.c.bf16 %v1039_v52, %v1038_v11  ;;  %v1037_v7 = vsel %vm1021_vm7, %v1919_v53, %v1005_v47  ;;  %1585 = vrcp.f32 %v979_v1  ;;  %v1578_v50 = vpop.eup %1577  ;;  %v932_v43 = vadd.f32 2.0, %v1576_v44 }
 0x227   :  { %v1219_v9 = vpack.c.bf16 %v1037_v7, %v1036_v6  ;;  %1587 = vrcp.f32 %v977_v20  ;;  %v950_v51 = vmul.f32 %v1574_v4, %v934_v10  ;;  %v935_v48 = vadd.f32 2.0, %v1578_v50 }
 0x228   :  { %1248 = vst [vmem:[%s2056_s7 + $0x18] sm:$0xff] %v1224_v15   ;;  %v948_v0 = vmul.f32 %v1576_v44, %v932_v43  ;;  %v961_v21 = vmul.f32 %v945_v37, %v1935_v24  ;;  %vm1029_vm15 = vcmp.gt.f32.partialorder %v1972_v14, 20.0 }
 0x229   :  { %1247 = vst [vmem:[%s2056_s7 + $0x10] sm:$0xff] %v1219_v9   ;;  %v982_v12 = vadd.f32 2.0, %v950_v51  ;;  %v951_v53 = vmul.f32 %v1578_v50, %v935_v48  ;;  %v966_v2 = vmul.f32 %v950_v51, %v1952_v61 }
 0x22a   :  { %v980_v17 = vadd.f32 2.0, %v948_v0  ;;  %v964_v45 = vmul.f32 %v948_v0, %v1957_v62 }
 0x22b   :  { %1589 = vrcp.f32 %v982_v12  ;;  %v983_v8 = vadd.f32 2.0, %v951_v53 }
 0x22d   :  { %v1580_v13 = vpop.eup %1579  ;;  %1591 = vrcp.f32 %v983_v8 }
 0x22e   :  { %v1582_v49 = vpop.eup %1581  ;;  %v1010_v19 = vmul.f32 %v1580_v13, %v962_v5  ;;  %1593 = vrcp.f32 %v980_v17 }
 0x22f   :  { %v1584_v55 = vpop.eup %1583  ;;  %v1008_v18 = vmul.f32 %v1582_v49, %v960_v16 }
 0x230   :  { %v1586_v22 = vpop.eup %1585  ;;  %v933_v25 = vadd.f32 2.0, %v1584_v55  ;;  %v1042_v40 = vsel %vm1026_vm8, %v1924_v59, %v1010_v19 }
 0x231   :  { %v1588_v27 = vpop.eup %1587  ;;  %v1011_v28 = vmul.f32 %v1586_v22, %v963_v23  ;;  %v1040_v58 = vsel %vm1024_vm10, %v1927_v32, %v1008_v18  ;;  %v967_v32 = vmul.f32 %v951_v53, %v1962_v3 }
 0x232   :  { %v1009_v26 = vmul.f32 %v1588_v27, %v961_v21  ;;  %v949_v33 = vmul.f32 %v1584_v55, %v933_v25 }
 0x233   :  { %v1043_v36 = vsel %vm1027_vm9, %v1932_v54, %v1011_v28 }
 0x234   :  { %v1234_v30 = vpack.c.bf16 %v1043_v36, %v1042_v40  ;;  %v1041_v31 = vsel %vm1025_vm11, %v1935_v24, %v1009_v26  ;;  %v981_v60 = vadd.f32 2.0, %v949_v33  ;;  %v965_v56 = vmul.f32 %v949_v33, %v1972_v14 }
 0x235   :  { %v1229_v35 = vpack.c.bf16 %v1041_v31, %v1040_v58  ;;  %v1590_v59 = vpop.eup %1589 }
 0x236   :  { %1250 = vst [vmem:[%s2056_s7 + $0x28] sm:$0xff] %v1234_v30   ;;  %1595 = vrcp.f32 %v981_v60  ;;  %v1014_v54 = vmul.f32 %v1590_v59, %v966_v2 }
 0x237   :  { %1249 = vst [vmem:[%s2056_s7 + $0x20] sm:$0xff] %v1229_v35   ;;  %v1592_v38 = vpop.eup %1591 }
 0x238   :  { %v1015_v63 = vmul.f32 %v1592_v38, %v967_v32  ;;  %v1594_v24 = vpop.eup %1593  ;;  %v1046_v39 = vsel %vm1030_vm12, %v1952_v61, %v1014_v54 }
 0x239   :  { %v1012_v29 = vmul.f32 %v1594_v24, %v964_v45 }
 0x23a   :  { %v1047_v41 = vsel %vm1031_vm13, %v1962_v3, %v1015_v63 }
 0x23b   :  { %v1244_v34 = vpack.c.bf16 %v1047_v41, %v1046_v39  ;;  %v1044_v61 = vsel %vm1028_vm14, %v1957_v62, %v1012_v29 }
 0x23d   :  { %1252 = vst [vmem:[%s2056_s7 + $0x38] sm:$0xff] %v1244_v34  }
 0x240   :  { %v1596_v57 = vpop.eup %1595 }
 0x241   :  { %v1013_v37 = vmul.f32 %v1596_v57, %v965_v56 }
 0x243   :  { %v1045_v3 = vsel %vm1029_vm15, %v1972_v14, %v1013_v37 }
 0x244   :  { %v1239_v42 = vpack.c.bf16 %v1045_v3, %v1044_v61 }
 0x246   :  { %1251 = vst [vmem:[%s2056_s7 + $0x30] sm:$0xff] %v1239_v42  }

</bundles_post_ra>
